<compile_context>
chip_gen: v7x
topology: tpu7x:2x2x1
jax: 0.10.0
libtpu: 0.0.40
codegen_flags: <defaults>
</compile_context>

<pallas_src>
import functools

import jax
import jax.numpy as jnp
from jax.experimental import pallas as pl
from jax.experimental.pallas import tpu as pltpu

D_IN = 784
D_H = 400
D_Z = 20

# Fused mu/logvar head is 2 vregs (256 lanes) wide so both slices start on a
# 128-lane vreg boundary: mu in lanes [0, 20), logvar in lanes [128, 148).
MV_WIDTH = 256
MU_OFF = 0
LV_OFF = 128


def vae_generator_kernel(
    x_ref, eps_ref,
    w1_ref, b1_ref,
    wmv_ref, bmv_ref,
    w3_ref, b3_ref,
    w4_ref, b4_ref,
    recon_ref, mu_ref, logvar_ref,
):
    # x arrives f32 (no wrapper convert pass); cast to bf16 in VMEM for the MXU.
    x = x_ref[...].astype(jnp.bfloat16)                       # (TB, 784)

    # encode: h1 = relu(x @ W1 + b1)   (bf16 matmul, f32 accumulate)
    h1 = jnp.dot(x, w1_ref[...], preferred_element_type=jnp.float32) + b1_ref[...]
    h1 = jnp.maximum(h1, 0.0)

    # fused mu/logvar head: (TB, 400) @ (400, 256) -> (TB, 256).
    # mu lives in lanes 0..19, logvar in lanes 128..147: both slices are
    # vreg-aligned sub-views (no cross-lane rotate to line up with eps).
    mulv = (jnp.dot(h1.astype(jnp.bfloat16), wmv_ref[...],
                    preferred_element_type=jnp.float32) + bmv_ref[...])
    mu = mulv[:, MU_OFF:MU_OFF + D_Z]
    logvar = mulv[:, LV_OFF:LV_OFF + D_Z]

    # reparametrize (f32 elementwise): z = eps * exp(0.5 * logvar) + mu
    z = eps_ref[...] * jnp.exp(0.5 * logvar) + mu

    # decode: h3 = relu(z @ W3 + b3) ; recon = sigmoid(h3 @ W4 + b4)
    h3 = (jnp.dot(z.astype(jnp.bfloat16), w3_ref[...],
                  preferred_element_type=jnp.float32) + b3_ref[...])
    h3 = jnp.maximum(h3, 0.0)
    logits = (jnp.dot(h3.astype(jnp.bfloat16), w4_ref[...],
                      preferred_element_type=jnp.float32) + b4_ref[...])
    # exact sigmoid: exp on the EUP, one divide; result guaranteed in [0, 1].
    recon = 1.0 / (1.0 + jnp.exp(-logits))

    recon_ref[...] = recon.astype(recon_ref.dtype)            # bf16 writeback
    mu_ref[...] = mu
    logvar_ref[...] = logvar


def _num_tensorcores():
    # v7x has 2 TensorCores per chip; v5e/v6e have 1. The "parallel" grid axis
    # shards batch tiles across them, so we want >= 2 tiles on v7x.
    try:
        if "v7" in jax.devices()[0].device_kind.lower():
            return 2
    except Exception:
        pass
    return 1


def _choose_tiling(B, max_tile_b):
    """Pick (n_tiles, tile_b, padded_B); prefers a padding-free split of B."""
    n_tc = _num_tensorcores()
    want = max(n_tc if B >= 16 * n_tc else 1, pl.cdiv(B, max_tile_b))
    # Smallest tile count >= `want` that splits B evenly into 16-row-aligned tiles
    # (16 = bf16 sublane packing); a single tile may be any size (block == array).
    for n in range(want, want + 8):
        if B % n == 0:
            tile = B // n
            if n == 1 or tile % 16 == 0:
                return n, tile, B
    # Fallback (rare): pad the batch; costs one extra wrapper pass over x / eps.
    tile = (-(-B // want) + 15) // 16 * 16
    n = -(-B // tile)
    return n, tile, n * tile


@functools.partial(jax.jit, static_argnames=("max_tile_b",))
def generator_forward(x_nchw, eps, params, max_tile_b=512):
    B = x_nchw.shape[0]
    x = x_nchw.reshape(B, D_IN)              # x.view(-1, 784); free, no copy
    eps = eps.astype(jnp.float32)

    (w1, b1, wmv, bmv, w3, b3, w4, b4) = params

    n_tiles, tile_b, Bp = _choose_tiling(B, max_tile_b)
    if Bp != B:
        # TODO(synk): ragged last tile falls back to a wrapper pad (one extra HBM
        # pass over x/eps); only hit when no 16-aligned even split of B exists.
        x = jnp.pad(x, ((0, Bp - B), (0, 0)))
        eps = jnp.pad(eps, ((0, Bp - B), (0, 0)))

    def _weight_spec(shape):
        # Full-extent block + constant index_map -> VMEM-resident across grid steps.
        return pl.BlockSpec(shape, lambda b: (0,) * len(shape))

    in_specs = [
        pl.BlockSpec((tile_b, D_IN), lambda b: (b, 0)),       # x tile (f32)
        pl.BlockSpec((tile_b, D_Z), lambda b: (b, 0)),        # eps tile
        _weight_spec(w1.shape), _weight_spec(b1.shape),
        _weight_spec(wmv.shape), _weight_spec(bmv.shape),
        _weight_spec(w3.shape), _weight_spec(b3.shape),
        _weight_spec(w4.shape), _weight_spec(b4.shape),
    ]
    out_shapes = (
        jax.ShapeDtypeStruct((Bp, D_IN), jnp.bfloat16),       # reconstruction
        jax.ShapeDtypeStruct((Bp, D_Z), jnp.float32),         # mu
        jax.ShapeDtypeStruct((Bp, D_Z), jnp.float32),         # logvar
    )
    out_specs = (
        pl.BlockSpec((tile_b, D_IN), lambda b: (b, 0)),
        pl.BlockSpec((tile_b, D_Z), lambda b: (b, 0)),
        pl.BlockSpec((tile_b, D_Z), lambda b: (b, 0)),
    )

    recon, mu, logvar = pl.pallas_call(
        vae_generator_kernel,
        out_shape=out_shapes,
        grid_spec=pltpu.PrefetchScalarGridSpec(
            num_scalar_prefetch=0,
            grid=(n_tiles,),
            in_specs=in_specs,
            out_specs=out_specs,
        ),
        compiler_params=pltpu.CompilerParams(
            dimension_semantics=("parallel",),
            # tile_b=512 double-buffered f32 x / bf16 recon tiles + resident weights
            # is ~12-15 MB: over v5e's 16 MiB scoped default, well under 32 MiB.
            vmem_limit_bytes=32 * 1024 * 1024,
        ),
    )(x, eps, w1, b1, wmv, bmv, w3, b3, w4, b4)

    if Bp != B:
        recon, mu, logvar = recon[:B], mu[:B], logvar[:B]
    return recon, mu, logvar


def init_params(key):
    """nn.Linear-style init: U(-1/sqrt(fan_in), 1/sqrt(fan_in)).
    Weights stored transposed as (in, out); matmul weights bf16, biases f32.
    fc21/fc22 are fused into one (400, 256) weight with mu columns at lane 0 and
    logvar columns at lane 128 (vreg-aligned slices inside the kernel)."""
    def linear(k, fan_in, fan_out):
        kw, kb = jax.random.split(k)
        bound = 1.0 / jnp.sqrt(fan_in)
        w = jax.random.uniform(kw, (fan_in, fan_out), jnp.float32, -bound, bound)
        b = jax.random.uniform(kb, (1, fan_out), jnp.float32, -bound, bound)
        return w, b

    k1, k21, k22, k3, k4 = jax.random.split(key, 5)
    w1, b1 = linear(k1, D_IN, D_H)     # fc1
    w21, b21 = linear(k21, D_H, D_Z)   # fc21 (mu)
    w22, b22 = linear(k22, D_H, D_Z)   # fc22 (logvar)
    w3, b3 = linear(k3, D_Z, D_H)      # fc3
    w4, b4 = linear(k4, D_H, D_IN)     # fc4

    wmv = jnp.zeros((D_H, MV_WIDTH), jnp.float32)
    wmv = wmv.at[:, MU_OFF:MU_OFF + D_Z].set(w21)
    wmv = wmv.at[:, LV_OFF:LV_OFF + D_Z].set(w22)
    bmv = jnp.zeros((1, MV_WIDTH), jnp.float32)
    bmv = bmv.at[:, MU_OFF:MU_OFF + D_Z].set(b21)
    bmv = bmv.at[:, LV_OFF:LV_OFF + D_Z].set(b22)

    bf16 = lambda w: w.astype(jnp.bfloat16)
    return (bf16(w1), b1, bf16(wmv), bmv, bf16(w3), b3, bf16(w4), b4)


def reference_forward(x_nchw, eps, params):
    """Pure-JAX reference mirroring the kernel's precision (bf16 matmul, f32 accum)."""
    (w1, b1, wmv, bmv, w3, b3, w4, b4) = params
    x = x_nchw.reshape(x_nchw.shape[0], D_IN).astype(jnp.bfloat16)
    dot = lambda a, b: jnp.dot(a, b, preferred_element_type=jnp.float32)
    h1 = jax.nn.relu(dot(x, w1) + b1)
    mulv = dot(h1.astype(jnp.bfloat16), wmv) + bmv
    mu = mulv[:, MU_OFF:MU_OFF + D_Z]
    logvar = mulv[:, LV_OFF:LV_OFF + D_Z]
    z = eps * jnp.exp(0.5 * logvar) + mu
    h3 = jax.nn.relu(dot(z.astype(jnp.bfloat16), w3) + b3)
    recon = jax.nn.sigmoid(dot(h3.astype(jnp.bfloat16), w4) + b4)
    return recon, mu, logvar


if __name__ == "__main__":
    key = jax.random.PRNGKey(0)
    kp, kx, keps = jax.random.split(key, 3)

    B = 64
    params = init_params(kp)
    x = jax.random.uniform(kx, (B, 1, 28, 28), jnp.float32)   # MNIST-like NCHW input
    eps = jax.random.normal(keps, (B, D_Z), jnp.float32)      # reparametrization noise
    # TODO(synk): PyTorch draws eps with torch's RNG inside forward(); here eps is an
    # explicit deterministic input so the kernel is reproducible.

    recon, mu, logvar = generator_forward(x, eps, params)
    jax.block_until_ready((recon, mu, logvar))

    # sanity check against a pure-JAX reference with matching precision
    r_ref, m_ref, lv_ref = reference_forward(x, eps, params)
    assert jnp.allclose(recon.astype(jnp.float32), r_ref, atol=2e-2, rtol=2e-2), "recon mismatch"
    assert jnp.allclose(mu, m_ref, atol=1e-2, rtol=1e-2), "mu mismatch"
    assert jnp.allclose(logvar, lv_ref, atol=1e-2, rtol=1e-2), "logvar mismatch"

    print("KERNEL_OK")
</pallas_src>

<mosaic_0001>
module attributes {stable_mosaic.version = 11 : i64} {
  func.func @vae_generator_kernel(%arg0: i32, %arg1: memref<64x784xf32, #tpu.memory_space<vmem>>, %arg2: memref<64x20xf32, #tpu.memory_space<vmem>>, %arg3: memref<784x400xbf16, #tpu.memory_space<vmem>>, %arg4: memref<1x400xf32, #tpu.memory_space<vmem>>, %arg5: memref<400x256xbf16, #tpu.memory_space<vmem>>, %arg6: memref<1x256xf32, #tpu.memory_space<vmem>>, %arg7: memref<20x400xbf16, #tpu.memory_space<vmem>>, %arg8: memref<1x400xf32, #tpu.memory_space<vmem>>, %arg9: memref<400x784xbf16, #tpu.memory_space<vmem>>, %arg10: memref<1x784xf32, #tpu.memory_space<vmem>>, %arg11: memref<64x784xbf16, #tpu.memory_space<vmem>>, %arg12: memref<64x20xf32, #tpu.memory_space<vmem>>, %arg13: memref<64x20xf32, #tpu.memory_space<vmem>>) attributes {dimension_semantics = [#tpu.dimension_semantics<parallel>], iteration_bounds = array<i64: 1>, scalar_prefetch = 0 : i64, scratch_operands = 0 : i64, tpu.core_type = #tpu.core_type<tc>, window_params = [{transform_indices = @transform_0, window_bounds = array<i64: 64, 784>}, {transform_indices = @transform_1, window_bounds = array<i64: 64, 20>}, {pipeline_mode = #tpu.pipeline_mode<synchronous>, transform_indices = @transform_2, window_bounds = array<i64: 784, 400>}, {pipeline_mode = #tpu.pipeline_mode<synchronous>, transform_indices = @transform_3, window_bounds = array<i64: 1, 400>}, {pipeline_mode = #tpu.pipeline_mode<synchronous>, transform_indices = @transform_4, window_bounds = array<i64: 400, 256>}, {pipeline_mode = #tpu.pipeline_mode<synchronous>, transform_indices = @transform_5, window_bounds = array<i64: 1, 256>}, {pipeline_mode = #tpu.pipeline_mode<synchronous>, transform_indices = @transform_6, window_bounds = array<i64: 20, 400>}, {pipeline_mode = #tpu.pipeline_mode<synchronous>, transform_indices = @transform_7, window_bounds = array<i64: 1, 400>}, {pipeline_mode = #tpu.pipeline_mode<synchronous>, transform_indices = @transform_8, window_bounds = array<i64: 400, 784>}, {pipeline_mode = #tpu.pipeline_mode<synchronous>, transform_indices = @transform_9, window_bounds = array<i64: 1, 784>}, {transform_indices = @transform_10, window_bounds = array<i64: 64, 784>}, {transform_indices = @transform_11, window_bounds = array<i64: 64, 20>}, {transform_indices = @transform_12, window_bounds = array<i64: 64, 20>}]} {
    %c0 = arith.constant 0 : index
    %c0_0 = arith.constant 0 : index
    %0 = vector.load %arg1[%c0, %c0_0] : memref<64x784xf32, #tpu.memory_space<vmem>>, vector<64x784xf32>
    %1 = arith.truncf %0 : vector<64x784xf32> to vector<64x784xbf16>
    %c0_1 = arith.constant 0 : index
    %c0_2 = arith.constant 0 : index
    %2 = vector.load %arg3[%c0_1, %c0_2] : memref<784x400xbf16, #tpu.memory_space<vmem>>, vector<784x400xbf16>
    %cst = arith.constant dense<0.000000e+00> : vector<64x400xf32>
    %3 = tpu.matmul %1, %2, %cst {dimension_numbers = #tpu.dot_dimension_numbers<[1], [0], [0], [1], [0, 0, 1, 1], [], []>} : vector<64x784xbf16>, vector<784x400xbf16>, vector<64x400xf32> -> vector<64x400xf32>
    %c0_3 = arith.constant 0 : index
    %c0_4 = arith.constant 0 : index
    %4 = vector.load %arg4[%c0_3, %c0_4] : memref<1x400xf32, #tpu.memory_space<vmem>>, vector<1x400xf32>
    %5 = vector.broadcast %4 : vector<1x400xf32> to vector<64x400xf32>
    %6 = arith.addf %3, %5 : vector<64x400xf32>
    %cst_5 = arith.constant 0.000000e+00 : f32
    %7 = vector.broadcast %cst_5 : f32 to vector<64x400xf32>
    %8 = arith.maximumf %6, %7 : vector<64x400xf32>
    %9 = arith.truncf %8 : vector<64x400xf32> to vector<64x400xbf16>
    %c0_6 = arith.constant 0 : index
    %c0_7 = arith.constant 0 : index
    %10 = vector.load %arg5[%c0_6, %c0_7] : memref<400x256xbf16, #tpu.memory_space<vmem>>, vector<400x256xbf16>
    %cst_8 = arith.constant dense<0.000000e+00> : vector<64x256xf32>
    %11 = tpu.matmul %9, %10, %cst_8 {dimension_numbers = #tpu.dot_dimension_numbers<[1], [0], [0], [1], [0, 0, 1, 1], [], []>} : vector<64x400xbf16>, vector<400x256xbf16>, vector<64x256xf32> -> vector<64x256xf32>
    %c0_9 = arith.constant 0 : index
    %c0_10 = arith.constant 0 : index
    %12 = vector.load %arg6[%c0_9, %c0_10] : memref<1x256xf32, #tpu.memory_space<vmem>>, vector<1x256xf32>
    %13 = vector.broadcast %12 : vector<1x256xf32> to vector<64x256xf32>
    %14 = arith.addf %11, %13 : vector<64x256xf32>
    %15 = vector.extract_strided_slice %14 {offsets = [0, 0], sizes = [64, 20], strides = [1, 1]} : vector<64x256xf32> to vector<64x20xf32>
    %16 = vector.extract_strided_slice %14 {offsets = [0, 128], sizes = [64, 20], strides = [1, 1]} : vector<64x256xf32> to vector<64x20xf32>
    %c0_11 = arith.constant 0 : index
    %c0_12 = arith.constant 0 : index
    %17 = vector.load %arg2[%c0_11, %c0_12] : memref<64x20xf32, #tpu.memory_space<vmem>>, vector<64x20xf32>
    %cst_13 = arith.constant 5.000000e-01 : f32
    %18 = vector.broadcast %cst_13 : f32 to vector<64x20xf32>
    %19 = arith.mulf %18, %16 : vector<64x20xf32>
    %20 = math.exp %19 : vector<64x20xf32>
    %21 = arith.mulf %17, %20 : vector<64x20xf32>
    %22 = arith.addf %21, %15 : vector<64x20xf32>
    %23 = arith.truncf %22 : vector<64x20xf32> to vector<64x20xbf16>
    %c0_14 = arith.constant 0 : index
    %c0_15 = arith.constant 0 : index
    %24 = vector.load %arg7[%c0_14, %c0_15] : memref<20x400xbf16, #tpu.memory_space<vmem>>, vector<20x400xbf16>
    %cst_16 = arith.constant dense<0.000000e+00> : vector<64x400xf32>
    %25 = tpu.matmul %23, %24, %cst_16 {dimension_numbers = #tpu.dot_dimension_numbers<[1], [0], [0], [1], [0, 0, 1, 1], [], []>} : vector<64x20xbf16>, vector<20x400xbf16>, vector<64x400xf32> -> vector<64x400xf32>
    %c0_17 = arith.constant 0 : index
    %c0_18 = arith.constant 0 : index
    %26 = vector.load %arg8[%c0_17, %c0_18] : memref<1x400xf32, #tpu.memory_space<vmem>>, vector<1x400xf32>
    %27 = vector.broadcast %26 : vector<1x400xf32> to vector<64x400xf32>
    %28 = arith.addf %25, %27 : vector<64x400xf32>
    %cst_19 = arith.constant 0.000000e+00 : f32
    %29 = vector.broadcast %cst_19 : f32 to vector<64x400xf32>
    %30 = arith.maximumf %28, %29 : vector<64x400xf32>
    %31 = arith.truncf %30 : vector<64x400xf32> to vector<64x400xbf16>
    %c0_20 = arith.constant 0 : index
    %c0_21 = arith.constant 0 : index
    %32 = vector.load %arg9[%c0_20, %c0_21] : memref<400x784xbf16, #tpu.memory_space<vmem>>, vector<400x784xbf16>
    %cst_22 = arith.constant dense<0.000000e+00> : vector<64x784xf32>
    %33 = tpu.matmul %31, %32, %cst_22 {dimension_numbers = #tpu.dot_dimension_numbers<[1], [0], [0], [1], [0, 0, 1, 1], [], []>} : vector<64x400xbf16>, vector<400x784xbf16>, vector<64x784xf32> -> vector<64x784xf32>
    %c0_23 = arith.constant 0 : index
    %c0_24 = arith.constant 0 : index
    %34 = vector.load %arg10[%c0_23, %c0_24] : memref<1x784xf32, #tpu.memory_space<vmem>>, vector<1x784xf32>
    %35 = vector.broadcast %34 : vector<1x784xf32> to vector<64x784xf32>
    %36 = arith.addf %33, %35 : vector<64x784xf32>
    %cst_25 = arith.constant 0.000000e+00 : f32
    %37 = vector.broadcast %cst_25 : f32 to vector<64x784xf32>
    %38 = arith.subf %37, %36 : vector<64x784xf32>
    %39 = math.exp %38 : vector<64x784xf32>
    %cst_26 = arith.constant 1.000000e+00 : f32
    %40 = vector.broadcast %cst_26 : f32 to vector<64x784xf32>
    %41 = arith.addf %40, %39 : vector<64x784xf32>
    %cst_27 = arith.constant 1.000000e+00 : f32
    %42 = vector.broadcast %cst_27 : f32 to vector<64x784xf32>
    %43 = arith.divf %42, %41 : vector<64x784xf32>
    %44 = arith.truncf %43 : vector<64x784xf32> to vector<64x784xbf16>
    %c0_28 = arith.constant 0 : index
    %c0_29 = arith.constant 0 : index
    %45 = vector.load %arg11[%c0_28, %c0_29] : memref<64x784xbf16, #tpu.memory_space<vmem>>, vector<64x784xbf16>
    tpu.vector_store %arg11[%c0_28, %c0_29], %44 {strides = array<i32>} : memref<64x784xbf16, #tpu.memory_space<vmem>>, vector<64x784xbf16>,
    %c0_30 = arith.constant 0 : index
    %c0_31 = arith.constant 0 : index
    %46 = vector.load %arg12[%c0_30, %c0_31] : memref<64x20xf32, #tpu.memory_space<vmem>>, vector<64x20xf32>
    tpu.vector_store %arg12[%c0_30, %c0_31], %15 {strides = array<i32>} : memref<64x20xf32, #tpu.memory_space<vmem>>, vector<64x20xf32>,
    %c0_32 = arith.constant 0 : index
    %c0_33 = arith.constant 0 : index
    %47 = vector.load %arg13[%c0_32, %c0_33] : memref<64x20xf32, #tpu.memory_space<vmem>>, vector<64x20xf32>
    tpu.vector_store %arg13[%c0_32, %c0_33], %16 {strides = array<i32>} : memref<64x20xf32, #tpu.memory_space<vmem>>, vector<64x20xf32>,
    return
  }
  func.func @transform_0(%arg0: i32) -> (i32, i32) {
    %c0_i32 = arith.constant 0 : i32
    %c0_i32_0 = arith.constant 0 : i32
    return %arg0, %c0_i32 : i32, i32
  }
  func.func @transform_1(%arg0: i32) -> (i32, i32) {
    %c0_i32 = arith.constant 0 : i32
    %c0_i32_0 = arith.constant 0 : i32
    return %arg0, %c0_i32 : i32, i32
  }
  func.func @transform_2(%arg0: i32) -> (i32, i32) {
    %c0_i32 = arith.constant 0 : i32
    %c0_i32_0 = arith.constant 0 : i32
    %c0_i32_1 = arith.constant 0 : i32
    return %c0_i32, %c0_i32_0 : i32, i32
  }
  func.func @transform_3(%arg0: i32) -> (i32, i32) {
    %c0_i32 = arith.constant 0 : i32
    %c0_i32_0 = arith.constant 0 : i32
    %c0_i32_1 = arith.constant 0 : i32
    return %c0_i32, %c0_i32_0 : i32, i32
  }
  func.func @transform_4(%arg0: i32) -> (i32, i32) {
    %c0_i32 = arith.constant 0 : i32
    %c0_i32_0 = arith.constant 0 : i32
    %c0_i32_1 = arith.constant 0 : i32
    return %c0_i32, %c0_i32_0 : i32, i32
  }
  func.func @transform_5(%arg0: i32) -> (i32, i32) {
    %c0_i32 = arith.constant 0 : i32
    %c0_i32_0 = arith.constant 0 : i32
    %c0_i32_1 = arith.constant 0 : i32
    return %c0_i32, %c0_i32_0 : i32, i32
  }
  func.func @transform_6(%arg0: i32) -> (i32, i32) {
    %c0_i32 = arith.constant 0 : i32
    %c0_i32_0 = arith.constant 0 : i32
    %c0_i32_1 = arith.constant 0 : i32
    return %c0_i32, %c0_i32_0 : i32, i32
  }
  func.func @transform_7(%arg0: i32) -> (i32, i32) {
    %c0_i32 = arith.constant 0 : i32
    %c0_i32_0 = arith.constant 0 : i32
    %c0_i32_1 = arith.constant 0 : i32
    return %c0_i32, %c0_i32_0 : i32, i32
  }
  func.func @transform_8(%arg0: i32) -> (i32, i32) {
    %c0_i32 = arith.constant 0 : i32
    %c0_i32_0 = arith.constant 0 : i32
    %c0_i32_1 = arith.constant 0 : i32
    return %c0_i32, %c0_i32_0 : i32, i32
  }
  func.func @transform_9(%arg0: i32) -> (i32, i32) {
    %c0_i32 = arith.constant 0 : i32
    %c0_i32_0 = arith.constant 0 : i32
    %c0_i32_1 = arith.constant 0 : i32
    return %c0_i32, %c0_i32_0 : i32, i32
  }
  func.func @transform_10(%arg0: i32) -> (i32, i32) {
    %c0_i32 = arith.constant 0 : i32
    %c0_i32_0 = arith.constant 0 : i32
    return %arg0, %c0_i32 : i32, i32
  }
  func.func @transform_11(%arg0: i32) -> (i32, i32) {
    %c0_i32 = arith.constant 0 : i32
    %c0_i32_0 = arith.constant 0 : i32
    return %arg0, %c0_i32 : i32, i32
  }
  func.func @transform_12(%arg0: i32) -> (i32, i32) {
    %c0_i32 = arith.constant 0 : i32
    %c0_i32_0 = arith.constant 0 : i32
    return %arg0, %c0_i32 : i32, i32
  }
}

</mosaic_0001>

<bundles_post_ra>
// kernel: generator_forward.1
= control target key start
LH: loop header
LB: loop body
LE: loop exit
PB: predicated region body
PF: predicated region fallthrough
CT: control target
= control target key end

     0   :  { %vm1322_vm0 = vcmask 130048   ;;  %s8881_s0 = inlined_call_operand.vmem [shape: f32[64,784], index: 0, kind: input, shape index: {}]   ;;  %s8882_s1 = inlined_call_operand.vmem [shape: f32[64,20], index: 1, kind: input, shape index: {}]   ;;  %s8883_s2 = inlined_call_operand.vmem [shape: bf16[784,400], index: 2, kind: input, shape index: {}]   ;;  %s8884_s3 = inlined_call_operand.vmem [shape: f32[1,400], index: 3, kind: input, shape index: {}]   ;;  %s8885_s4 = inlined_call_operand.vmem [shape: bf16[400,256], index: 4, kind: input, shape index: {}]   ;;  %s8886_s5 = inlined_call_operand.vmem [shape: f32[1,256], index: 5, kind: input, shape index: {}]   ;;  %s8887_s6 = inlined_call_operand.vmem [shape: bf16[20,400], index: 6, kind: input, shape index: {}]   ;;  %s8888_s7 = inlined_call_operand.vmem [shape: f32[1,400], index: 7, kind: input, shape index: {}]   ;;  %s8889_s8 = inlined_call_operand.vmem [shape: bf16[400,784], index: 8, kind: input, shape index: {}]   ;;  %s8890_s9 = inlined_call_operand.vmem [shape: f32[1,784], index: 9, kind: input, shape index: {}]   ;;  %s8891_s10 = inlined_call_operand.hbm [shape: bf16[64,784], index: 10, kind: output, shape index: {0}]   ;;  %s8892_s11 = inlined_call_operand.vmem [shape: f32[64,20], index: 11, kind: output, shape index: {1}]   ;;  %s8893_s12 = inlined_call_operand.vmem [shape: f32[64,20], index: 12, kind: output, shape index: {2}]  }
   0x1   :  { %v5900_v0 = vld [vmem:[%s8883_s2 + $0x4] ss:$16 sps:$4 sm:$0xff]   ;;  %v5902_v1 = vld [vmem:[%s8883_s2 + $0xc] ss:$16 sps:$4 sm:$0xff]   ;;  %v5904_v2 = vld [vmem:[%s8883_s2] ss:$16 sps:$4 sm:$0xff]  }
   0x2   :  { %1335 = vmatprep.subr.bf16.mxu0 %v5900_v0  ;;  %v5905_v3 = vld [vmem:[%s8883_s2 + $0x8] ss:$16 sps:$4 sm:$0xff]   ;;  %1627 = vmatprep.subr.bf16.mxu1 %v5902_v1  ;;  %v5906_v4 = vld [vmem:[%s8883_s2 + $0x24] ss:$16 sps:$4 sm:$0xff]   ;;  %v5908_v5 = vld [vmem:[%s8883_s2 + $0x2c] ss:$16 sps:$4 sm:$0xff]  }
   0x3   :  { %1336 = vmatpush1.bf16.msra.mxu0 %v5904_v2  ;;  %1628 = vmatpush1.bf16.msra.mxu1 %v5905_v3  ;;  %v5910_v6 = vld [vmem:[%s8883_s2 + $0x20] ss:$16 sps:$4 sm:$0xff]   ;;  %v5911_v7 = vld [vmem:[%s8883_s2 + $0x28] ss:$16 sps:$4 sm:$0xff]   ;;  %v5912_v8 = vld [vmem:[%s8883_s2 + $0x44] ss:$16 sps:$4 sm:$0xff]  }
   0x4   :  { %1337 = vmatprep.subr.bf16.mxu0 %v5906_v4  ;;  %1629 = vmatprep.subr.bf16.mxu1 %v5908_v5  ;;  %v5914_v9 = vld [vmem:[%s8883_s2 + $0x4c] ss:$16 sps:$4 sm:$0xff]   ;;  %v5916_v10 = vld [vmem:[%s8883_s2 + $0x40] ss:$16 sps:$4 sm:$0xff]   ;;  %v5917_v11 = vld [vmem:[%s8883_s2 + $0x48] ss:$16 sps:$4 sm:$0xff]  }
   0x5   :  { %v5918_v12 = vld [vmem:[%s8883_s2 + $0x64] ss:$16 sps:$4 sm:$0xff]   ;;  %v5920_v13 = vld [vmem:[%s8883_s2 + $0x6c] ss:$16 sps:$4 sm:$0xff]   ;;  %v5922_v14 = vld [vmem:[%s8883_s2 + $0x60] ss:$16 sps:$4 sm:$0xff]  }
   0x6   :  { %v5923_v15 = vld [vmem:[%s8883_s2 + $0x68] ss:$16 sps:$4 sm:$0xff]   ;;  %v5924_v16 = vld [vmem:[%s8883_s2 + $0x84] ss:$16 sps:$4 sm:$0xff]   ;;  %v5926_v17 = vld [vmem:[%s8883_s2 + $0x8c] ss:$16 sps:$4 sm:$0xff]  }
   0x7   :  { %1338 = vmatpush1.bf16.msra.mxu0 %v5910_v6  ;;  %1630 = vmatpush1.bf16.msra.mxu1 %v5911_v7  ;;  %v5928_v18 = vld [vmem:[%s8883_s2 + $0x80] ss:$16 sps:$4 sm:$0xff]   ;;  %v5929_v19 = vld [vmem:[%s8883_s2 + $0x88] ss:$16 sps:$4 sm:$0xff]   ;;  %v5930_v20 = vld [vmem:[%s8883_s2 + $0xa4] ss:$16 sps:$4 sm:$0xff]  }
   0x8   :  { %1339 = vmatprep.subr.bf16.mxu0 %v5912_v8  ;;  %1631 = vmatprep.subr.bf16.mxu1 %v5914_v9  ;;  %v5932_v21 = vld [vmem:[%s8883_s2 + $0xac] ss:$16 sps:$4 sm:$0xff]   ;;  %v5934_v22 = vld [vmem:[%s8883_s2 + $0xa0] ss:$16 sps:$4 sm:$0xff]   ;;  %v5935_v23 = vld [vmem:[%s8883_s2 + $0xa8] ss:$16 sps:$4 sm:$0xff]  }
   0x9   :  { %v5936_v24 = vld [vmem:[%s8883_s2 + $0xc4] ss:$16 sps:$4 sm:$0xff]   ;;  %v5938_v25 = vld [vmem:[%s8883_s2 + $0xcc] ss:$16 sps:$4 sm:$0xff]   ;;  %v5940_v26 = vld [vmem:[%s8883_s2 + $0xc0] ss:$16 sps:$4 sm:$0xff]  }
   0xa   :  { %v5941_v27 = vld [vmem:[%s8883_s2 + $0xc8] ss:$16 sps:$4 sm:$0xff]   ;;  %v5942_v28 = vld [vmem:[%s8883_s2 + $0xe4] ss:$16 sps:$4 sm:$0xff]   ;;  %v5944_v29 = vld [vmem:[%s8883_s2 + $0xec] ss:$16 sps:$4 sm:$0xff]  }
   0xb   :  { %1340 = vmatpush1.bf16.msra.mxu0 %v5916_v10  ;;  %1632 = vmatpush1.bf16.msra.mxu1 %v5917_v11  ;;  %v5946_v30 = vld [vmem:[%s8883_s2 + $0xe0] ss:$16 sps:$4 sm:$0xff]   ;;  %v5947_v31 = vld [vmem:[%s8883_s2 + $0xe8] ss:$16 sps:$4 sm:$0xff]   ;;  %v5948_v32 = vld [vmem:[%s8883_s2 + $0x104] ss:$16 sps:$4 sm:$0xff]  }
   0xc   :  { %1341 = vmatprep.subr.bf16.mxu0 %v5918_v12  ;;  %1633 = vmatprep.subr.bf16.mxu1 %v5920_v13  ;;  %v5950_v33 = vld [vmem:[%s8883_s2 + $0x10c] ss:$16 sps:$4 sm:$0xff]   ;;  %v5952_v34 = vld [vmem:[%s8883_s2 + $0x100] ss:$16 sps:$4 sm:$0xff]   ;;  %v5953_v35 = vld [vmem:[%s8883_s2 + $0x108] ss:$16 sps:$4 sm:$0xff]  }
   0xd   :  { %v5954_v36 = vld [vmem:[%s8883_s2 + $0x124] ss:$16 sps:$4 sm:$0xff]   ;;  %v5956_v37 = vld [vmem:[%s8883_s2 + $0x12c] ss:$16 sps:$4 sm:$0xff]   ;;  %v5958_v38 = vld [vmem:[%s8883_s2 + $0x120] ss:$16 sps:$4 sm:$0xff]  }
   0xe   :  { %v5959_v39 = vld [vmem:[%s8883_s2 + $0x128] ss:$16 sps:$4 sm:$0xff]   ;;  %v5960_v40 = vld [vmem:[%s8883_s2 + $0x144] ss:$16 sps:$4 sm:$0xff]   ;;  %v5962_v41 = vld [vmem:[%s8883_s2 + $0x14c] ss:$16 sps:$4 sm:$0xff]  }
   0xf   :  { %1342 = vmatpush1.bf16.msra.mxu0 %v5922_v14  ;;  %1634 = vmatpush1.bf16.msra.mxu1 %v5923_v15  ;;  %v5964_v42 = vld [vmem:[%s8883_s2 + $0x140] ss:$16 sps:$4 sm:$0xff]   ;;  %v5965_v43 = vld [vmem:[%s8883_s2 + $0x148] ss:$16 sps:$4 sm:$0xff]   ;;  %v5966_v44 = vld [vmem:[%s8883_s2 + $0x164] ss:$16 sps:$4 sm:$0xff]  }
  0x10   :  { %1343 = vmatprep.subr.bf16.mxu0 %v5924_v16  ;;  %1635 = vmatprep.subr.bf16.mxu1 %v5926_v17  ;;  %v5968_v45 = vld [vmem:[%s8883_s2 + $0x16c] ss:$16 sps:$4 sm:$0xff]   ;;  %v48_v47 = vld [vmem:[%s8881_s0 + $0x40] sm:$0xff]  ;;  %v5971_v49 = vld [vmem:[%s8883_s2 + $0x168] ss:$16 sps:$4 sm:$0xff]  }
  0x11   :  { %v41_v46 = vld [vmem:[%s8881_s0 + $0x8] sm:$0xff]  ;;  %v5970_v48 = vld [vmem:[%s8883_s2 + $0x160] ss:$16 sps:$4 sm:$0xff]   ;;  %v5972_v51 = vld [vmem:[%s8883_s2 + $0x184] ss:$16 sps:$4 sm:$0xff]  }
  0x12   :  { %v97_v50 = vpack.c.bf16 %v48_v47, %v41_v46  ;;  %v5974_v52 = vld [vmem:[%s8883_s2 + $0x18c] ss:$16 sps:$4 sm:$0xff]   ;;  %v5976_v53 = vld [vmem:[%s8883_s2 + $0x180] ss:$16 sps:$4 sm:$0xff]   ;;  %v5977_v54 = vld [vmem:[%s8883_s2 + $0x188] ss:$16 sps:$4 sm:$0xff]  }
  0x13   :  { %1344 = vmatpush1.bf16.msra.mxu0 %v5928_v18  ;;  %1636 = vmatpush1.bf16.msra.mxu1 %v5929_v19  ;;  %v5978_v55 = vld [vmem:[%s8883_s2 + $0x1a4] ss:$16 sps:$4 sm:$0xff]   ;;  %v5980_v56 = vld [vmem:[%s8883_s2 + $0x1ac] ss:$16 sps:$4 sm:$0xff]   ;;  %v5982_v57 = vld [vmem:[%s8883_s2 + $0x1a0] ss:$16 sps:$4 sm:$0xff]  }
  0x14   :  { %1345 = vmatprep.subr.bf16.mxu0 %v5930_v20  ;;  %1637 = vmatprep.subr.bf16.mxu1 %v5932_v21  ;;  %v5983_v58 = vld [vmem:[%s8883_s2 + $0x1a8] ss:$16 sps:$4 sm:$0xff]   ;;  %v5984_v59 = vld [vmem:[%s8883_s2 + $0x1c4] ss:$16 sps:$4 sm:$0xff]   ;;  %v5986_v60 = vld [vmem:[%s8883_s2 + $0x1cc] ss:$16 sps:$4 sm:$0xff]  }
  0x15   :  { %1367 = vmatprep.mubr.bf16.mxu0 %v97_v50  ;;  %1659 = vmatprep.mubr.bf16.mxu1 %v97_v50  ;;  %v5988_v61 = vld [vmem:[%s8883_s2 + $0x1c0] ss:$16 sps:$4 sm:$0xff]   ;;  %v5989_v62 = vld [vmem:[%s8883_s2 + $0x1c8] ss:$16 sps:$4 sm:$0xff]   ;;  %v5990_v63 = vld [vmem:[%s8883_s2 + $0x1e4] ss:$16 sps:$4 sm:$0xff]  }
  0x16   :  { %v5992_v0 = vld [vmem:[%s8883_s2 + $0x1ec] ss:$16 sps:$4 sm:$0xff]   ;;  %v5994_v1 = vld [vmem:[%s8883_s2 + $0x1e0] ss:$16 sps:$4 sm:$0xff]   ;;  %v5995_v2 = vld [vmem:[%s8883_s2 + $0x1e8] ss:$16 sps:$4 sm:$0xff]  }
  0x17   :  { %1346 = vmatpush1.bf16.msra.mxu0 %v5934_v22  ;;  %1638 = vmatpush1.bf16.msra.mxu1 %v5935_v23  ;;  %v5998_v3 = vld [vmem:[%s8883_s2 + $0x204] ss:$16 sps:$4 sm:$0xff]   ;;  %v47_v5 = vld [vmem:[%s8881_s0 + $0x38] sm:$0xff]  ;;  %v5996_v7 = vld [vmem:[%s8883_s2 + $0x200] ss:$16 sps:$4 sm:$0xff]  }
  0x18   :  { %1347 = vmatprep.subr.bf16.mxu0 %v5936_v24  ;;  %1639 = vmatprep.subr.bf16.mxu1 %v5938_v25  ;;  %v40_v4 = vld [vmem:[%s8881_s0] sm:$0xff]  ;;  %v6001_v6 = vld [vmem:[%s8883_s2 + $0x20c] ss:$16 sps:$4 sm:$0xff]   ;;  %v5999_v8 = vld [vmem:[%s8883_s2 + $0x208] ss:$16 sps:$4 sm:$0xff]  }
  0x19   :  { %v96_v9 = vpack.c.bf16 %v47_v5, %v40_v4  ;;  %v6004_v10 = vld [vmem:[%s8883_s2 + $0x224] ss:$16 sps:$4 sm:$0xff]   ;;  %v6007_v11 = vld [vmem:[%s8883_s2 + $0x22c] ss:$16 sps:$4 sm:$0xff]   ;;  %v6002_v12 = vld [vmem:[%s8883_s2 + $0x220] ss:$16 sps:$4 sm:$0xff]  }
  0x1a   :  { %v6005_v13 = vld [vmem:[%s8883_s2 + $0x228] ss:$16 sps:$4 sm:$0xff]   ;;  %v6010_v14 = vld [vmem:[%s8883_s2 + $0x244] ss:$16 sps:$4 sm:$0xff]   ;;  %v6013_v15 = vld [vmem:[%s8883_s2 + $0x24c] ss:$16 sps:$4 sm:$0xff]  }
  0x1b   :  { %1348 = vmatpush1.bf16.msra.mxu0 %v5940_v26  ;;  %1640 = vmatpush1.bf16.msra.mxu1 %v5941_v27  ;;  %v55_v16 = vld [vmem:[%s8881_s0 + $0x78] sm:$0xff]  ;;  %v62_v17 = vld [vmem:[%s8881_s0 + $0xb0] sm:$0xff]  ;;  %v61_v24 = vld [vmem:[%s8881_s0 + $0xa8] sm:$0xff] }
  0x1c   :  { %1349 = vmatprep.subr.bf16.mxu0 %v5942_v28  ;;  %1641 = vmatprep.subr.bf16.mxu1 %v5944_v29  ;;  %v6008_v18 = vld [vmem:[%s8883_s2 + $0x240] ss:$16 sps:$4 sm:$0xff]   ;;  %v6011_v19 = vld [vmem:[%s8883_s2 + $0x248] ss:$16 sps:$4 sm:$0xff]   ;;  %v104_v20 = vpack.c.bf16 %v62_v17, %v55_v16  ;;  %v6016_v21 = vld [vmem:[%s8883_s2 + $0x264] ss:$16 sps:$4 sm:$0xff]  }
  0x1d   :  { %v6019_v22 = vld [vmem:[%s8883_s2 + $0x26c] ss:$16 sps:$4 sm:$0xff]   ;;  %v54_v23 = vld [vmem:[%s8881_s0 + $0x70] sm:$0xff]  ;;  %v6017_v26 = vld [vmem:[%s8883_s2 + $0x268] ss:$16 sps:$4 sm:$0xff]  }
  0x1e   :  { %v6014_v25 = vld [vmem:[%s8883_s2 + $0x260] ss:$16 sps:$4 sm:$0xff]   ;;  %v103_v27 = vpack.c.bf16 %v61_v24, %v54_v23  ;;  %v6022_v28 = vld [vmem:[%s8883_s2 + $0x284] ss:$16 sps:$4 sm:$0xff]   ;;  %v6025_v29 = vld [vmem:[%s8883_s2 + $0x28c] ss:$16 sps:$4 sm:$0xff]  }
  0x1f   :  { %1350 = vmatpush1.bf16.msra.mxu0 %v5946_v30  ;;  %1642 = vmatpush1.bf16.msra.mxu1 %v5947_v31  ;;  %v69_v30 = vld [vmem:[%s8881_s0 + $0xe8] sm:$0xff]  ;;  %v76_v31 = vld [vmem:[%s8881_s0 + $0x120] sm:$0xff] }
  0x20   :  { %1351 = vmatprep.subr.bf16.mxu0 %v5948_v32  ;;  %1643 = vmatprep.subr.bf16.mxu1 %v5950_v33  ;;  %v6020_v32 = vld [vmem:[%s8883_s2 + $0x280] ss:$16 sps:$4 sm:$0xff]   ;;  %v111_v33 = vpack.c.bf16 %v76_v31, %v69_v30  ;;  %v89_v50 = vld [vmem:[%s8881_s0 + $0x188] sm:$0xff]  ;;  %v6088_v23 = vld [vmem:[%s8883_s2 + $0x3e4] ss:$16 sps:$4 sm:$0xff]  }
  0x21   :  { %v6032_v47 = vld [vmem:[%s8883_s2 + $0x2c0] ss:$16 sps:$4 sm:$0xff]   ;;  %v6061_v4 = vld [vmem:[%s8883_s2 + $0x34c] ss:$16 sps:$4 sm:$0xff]  }
  0x22   :  { %v6056_v5 = vld [vmem:[%s8883_s2 + $0x340] ss:$16 sps:$4 sm:$0xff]   ;;  %v6079_v16 = vld [vmem:[%s8883_s2 + $0x3ac] ss:$16 sps:$4 sm:$0xff]  }
  0x23   :  { %1352 = vmatpush1.bf16.msra.mxu0 %v5952_v34  ;;  %1644 = vmatpush1.bf16.msra.mxu1 %v5953_v35  ;;  %v6023_v34 = vld [vmem:[%s8883_s2 + $0x288] ss:$16 sps:$4 sm:$0xff]   ;;  %v6028_v35 = vld [vmem:[%s8883_s2 + $0x2a4] ss:$16 sps:$4 sm:$0xff]   ;;  %v6074_v17 = vld [vmem:[%s8883_s2 + $0x3a0] ss:$16 sps:$4 sm:$0xff]  }
  0x24   :  { %1353 = vmatprep.subr.bf16.mxu0 %v5954_v36  ;;  %1645 = vmatprep.subr.bf16.mxu1 %v5956_v37  ;;  %v6031_v36 = vld [vmem:[%s8883_s2 + $0x2ac] ss:$16 sps:$4 sm:$0xff]   ;;  %v68_v37 = vld [vmem:[%s8881_s0 + $0xe0] sm:$0xff] }
  0x25   :  { %v6091_v24 = vld [vmem:[%s8883_s2 + $0x3ec] ss:$16 sps:$4 sm:$0xff]   ;;  %v6092_v31 = vld [vmem:[%s8883_s2 + $0x400] ss:$16 sps:$4 sm:$0xff]  }
  0x26   :  { %v6097_v30 = vld [vmem:[%s8883_s2 + $0x40c] ss:$16 sps:$4 sm:$0xff]  }
  0x27   :  { %1354 = vmatpush1.bf16.msra.mxu0 %v5958_v38  ;;  %1646 = vmatpush1.bf16.msra.mxu1 %v5959_v39  ;;  %v75_v38 = vld [vmem:[%s8881_s0 + $0x118] sm:$0xff] }
  0x28   :  { %1355 = vmatprep.subr.bf16.mxu0 %v5960_v40  ;;  %1647 = vmatprep.subr.bf16.mxu1 %v5962_v41  ;;  %v110_v39 = vpack.c.bf16 %v75_v38, %v68_v37  ;;  %v6026_v40 = vld [vmem:[%s8883_s2 + $0x2a0] ss:$16 sps:$4 sm:$0xff]   ;;  %v6029_v41 = vld [vmem:[%s8883_s2 + $0x2a8] ss:$16 sps:$4 sm:$0xff]   ;;  %v6103_v37 = vld [vmem:[%s8883_s2 + $0x42c] ss:$16 sps:$4 sm:$0xff]  }
  0x2b   :  { %1356 = vmatpush1.bf16.msra.mxu0 %v5964_v42  ;;  %1648 = vmatpush1.bf16.msra.mxu1 %v5965_v43  ;;  %v83_v42 = vld [vmem:[%s8881_s0 + $0x158] sm:$0xff]  ;;  %v90_v43 = vld [vmem:[%s8881_s0 + $0x190] sm:$0xff] }
  0x2c   :  { %1357 = vmatprep.subr.bf16.mxu0 %v5966_v44  ;;  %1649 = vmatprep.subr.bf16.mxu1 %v5968_v45  ;;  %v6034_v44 = vld [vmem:[%s8883_s2 + $0x2c4] ss:$16 sps:$4 sm:$0xff]   ;;  %v6037_v45 = vld [vmem:[%s8883_s2 + $0x2cc] ss:$16 sps:$4 sm:$0xff]   ;;  %v118_v46 = vpack.c.bf16 %v90_v43, %v83_v42 }
  0x2d   :  { %v56_v42 = vld [vmem:[%s8881_s0 + $0x80] sm:$0xff]  ;;  %v63_v43 = vld [vmem:[%s8881_s0 + $0xb8] sm:$0xff] }
  0x2f   :  { %1358 = vmatpush1.bf16.msra.mxu0 %v5970_v48  ;;  %1650 = vmatpush1.bf16.msra.mxu1 %v5971_v49  ;;  %v6035_v48 = vld [vmem:[%s8883_s2 + $0x2c8] ss:$16 sps:$4 sm:$0xff]   ;;  %v82_v49 = vld [vmem:[%s8881_s0 + $0x150] sm:$0xff] }
  0x30   :  { %1359 = vmatprep.subr.bf16.mxu0 %v5972_v51  ;;  %1651 = vmatprep.subr.bf16.mxu1 %v5974_v52  ;;  %v6040_v51 = vld [vmem:[%s8883_s2 + $0x2e4] ss:$16 sps:$4 sm:$0xff]   ;;  %v6043_v52 = vld [vmem:[%s8883_s2 + $0x2ec] ss:$16 sps:$4 sm:$0xff]  }
  0x33   :  { %1360 = vmatpush1.bf16.msra.mxu0 %v5976_v53  ;;  %1652 = vmatpush1.bf16.msra.mxu1 %v5977_v54  ;;  %v117_v53 = vpack.c.bf16 %v89_v50, %v82_v49  ;;  %v43_v54 = vld [vmem:[%s8881_s0 + $0x18] sm:$0xff]  ;;  %v78_v49 = vld [vmem:[%s8881_s0 + $0x130] sm:$0xff] }
  0x34   :  { %1361 = vmatprep.subr.bf16.mxu0 %v5978_v55  ;;  %1653 = vmatprep.subr.bf16.mxu1 %v5980_v56  ;;  %v50_v55 = vld [vmem:[%s8881_s0 + $0x50] sm:$0xff] }
  0x35   :  { %v6038_v56 = vld [vmem:[%s8883_s2 + $0x2e0] ss:$16 sps:$4 sm:$0xff]   ;;  %v6112_v50 = vld [vmem:[%s8883_s2 + $0x464] ss:$16 sps:$4 sm:$0xff]  }
  0x37   :  { %1362 = vmatpush1.bf16.msra.mxu0 %v5982_v57  ;;  %1654 = vmatpush1.bf16.msra.mxu1 %v5983_v58  ;;  %v6041_v57 = vld [vmem:[%s8883_s2 + $0x2e8] ss:$16 sps:$4 sm:$0xff]   ;;  %v99_v58 = vpack.c.bf16 %v50_v55, %v43_v54  ;;  %v70_v55 = vld [vmem:[%s8881_s0 + $0xf0] sm:$0xff] }
  0x38   :  { %1363 = vmatprep.subr.bf16.mxu0 %v5984_v59  ;;  %1655 = vmatprep.subr.bf16.mxu1 %v5986_v60  ;;  %v6046_v59 = vld [vmem:[%s8883_s2 + $0x304] ss:$16 sps:$4 sm:$0xff]   ;;  %v6049_v60 = vld [vmem:[%s8883_s2 + $0x30c] ss:$16 sps:$4 sm:$0xff]   ;;  %v6113_v54 = vld [vmem:[%s8883_s2 + $0x468] ss:$16 sps:$4 sm:$0xff]  }
  0x3b   :  { %1364 = vmatpush1.bf16.msra.mxu0 %v5988_v61  ;;  %1656 = vmatpush1.bf16.msra.mxu1 %v5989_v62  ;;  %v6044_v61 = vld [vmem:[%s8883_s2 + $0x300] ss:$16 sps:$4 sm:$0xff]   ;;  %v6047_v62 = vld [vmem:[%s8883_s2 + $0x308] ss:$16 sps:$4 sm:$0xff]  }
  0x3c   :  { %1365 = vmatprep.subr.bf16.mxu0 %v5990_v63  ;;  %1657 = vmatprep.subr.bf16.mxu1 %v5992_v0  ;;  %v6052_v63 = vld [vmem:[%s8883_s2 + $0x324] ss:$16 sps:$4 sm:$0xff]   ;;  %v6055_v0 = vld [vmem:[%s8883_s2 + $0x32c] ss:$16 sps:$4 sm:$0xff]  }
  0x3f   :  { %1366 = vmatpush1.bf16.msra.mxu0 %v5994_v1  ;;  %1658 = vmatpush1.bf16.msra.mxu1 %v5995_v2  ;;  %v6050_v1 = vld [vmem:[%s8883_s2 + $0x320] ss:$16 sps:$4 sm:$0xff]   ;;  %v6053_v2 = vld [vmem:[%s8883_s2 + $0x328] ss:$16 sps:$4 sm:$0xff]  }
  0x40   :  { %1408 = vmatprep.subr.bf16.mxu0 %v5998_v3  ;;  %1700 = vmatprep.subr.bf16.mxu1 %v6001_v6  ;;  %v6058_v3 = vld [vmem:[%s8883_s2 + $0x344] ss:$16 sps:$4 sm:$0xff]   ;;  %v6059_v6 = vld [vmem:[%s8883_s2 + $0x348] ss:$16 sps:$4 sm:$0xff]  }
  0x42   :  { %1368 = vmatmul.mubr.bf16.vlgmr.msra.gmra.mrb[0].mxu0 %v96_v9  ;;  %1660 = vmatmul.mubr.bf16.vlgmr.msra.gmra.mrb[0].mxu1 %v96_v9  ;;  %v6062_v9 = vld [vmem:[%s8883_s2 + $0x360] ss:$16 sps:$4 sm:$0xff]  }
  0x43   :  { %1409 = vmatpush1.bf16.msra.mxu0 %v5996_v7  ;;  %1701 = vmatpush1.bf16.msra.mxu1 %v5999_v8  ;;  %v6064_v7 = vld [vmem:[%s8883_s2 + $0x364] ss:$16 sps:$4 sm:$0xff]   ;;  %v6067_v8 = vld [vmem:[%s8883_s2 + $0x36c] ss:$16 sps:$4 sm:$0xff]  }
  0x44   :  { %1410 = vmatprep.subr.bf16.mxu0 %v6004_v10  ;;  %1702 = vmatprep.subr.bf16.mxu1 %v6007_v11  ;;  %v6065_v10 = vld [vmem:[%s8883_s2 + $0x368] ss:$16 sps:$4 sm:$0xff]   ;;  %v6070_v11 = vld [vmem:[%s8883_s2 + $0x384] ss:$16 sps:$4 sm:$0xff]  }
  0x45   :  { %1377 = vmatprep.mubr.bf16.mxu0 %v104_v20  ;;  %1669 = vmatprep.mubr.bf16.mxu1 %v104_v20  ;;  %v6085_v20 = vld [vmem:[%s8883_s2 + $0x3cc] ss:$16 sps:$4 sm:$0xff]  }
  0x47   :  { %1411 = vmatpush1.bf16.msra.mxu0 %v6002_v12  ;;  %1703 = vmatpush1.bf16.msra.mxu1 %v6005_v13  ;;  %v6073_v12 = vld [vmem:[%s8883_s2 + $0x38c] ss:$16 sps:$4 sm:$0xff]   ;;  %v6068_v13 = vld [vmem:[%s8883_s2 + $0x380] ss:$16 sps:$4 sm:$0xff]  }
  0x48   :  { %1412 = vmatprep.subr.bf16.mxu0 %v6010_v14  ;;  %1704 = vmatprep.subr.bf16.mxu1 %v6013_v15  ;;  %v6071_v14 = vld [vmem:[%s8883_s2 + $0x388] ss:$16 sps:$4 sm:$0xff]   ;;  %v6076_v15 = vld [vmem:[%s8883_s2 + $0x3a4] ss:$16 sps:$4 sm:$0xff]  }
  0x4a   :  { %1378 = vmatmul.mubr.bf16.gmra.mrb[4].mxu0 %v103_v27  ;;  %1670 = vmatmul.mubr.bf16.gmra.mrb[4].mxu1 %v103_v27  ;;  %v42_v27 = vld [vmem:[%s8881_s0 + $0x10] sm:$0xff] }
  0x4b   :  { %1413 = vmatpush1.bf16.msra.mxu0 %v6008_v18  ;;  %1705 = vmatpush1.bf16.msra.mxu1 %v6011_v19  ;;  %v6077_v18 = vld [vmem:[%s8883_s2 + $0x3a8] ss:$16 sps:$4 sm:$0xff]   ;;  %v6082_v19 = vld [vmem:[%s8883_s2 + $0x3c4] ss:$16 sps:$4 sm:$0xff]  }
  0x4c   :  { %1414 = vmatprep.subr.bf16.mxu0 %v6016_v21  ;;  %1706 = vmatprep.subr.bf16.mxu1 %v6019_v22  ;;  %v6080_v21 = vld [vmem:[%s8883_s2 + $0x3c0] ss:$16 sps:$4 sm:$0xff]   ;;  %v6083_v22 = vld [vmem:[%s8883_s2 + $0x3c8] ss:$16 sps:$4 sm:$0xff]  }
  0x4d   :  { %1387 = vmatprep.mubr.bf16.mxu0 %v111_v33  ;;  %1679 = vmatprep.mubr.bf16.mxu1 %v111_v33 }
  0x4f   :  { %1415 = vmatpush1.bf16.msra.mxu0 %v6014_v25  ;;  %1707 = vmatpush1.bf16.msra.mxu1 %v6017_v26  ;;  %v6086_v25 = vld [vmem:[%s8883_s2 + $0x3e0] ss:$16 sps:$4 sm:$0xff]   ;;  %v6089_v26 = vld [vmem:[%s8883_s2 + $0x3e8] ss:$16 sps:$4 sm:$0xff]  }
  0x50   :  { %1416 = vmatprep.subr.bf16.mxu0 %v6022_v28  ;;  %1708 = vmatprep.subr.bf16.mxu1 %v6025_v29  ;;  %v49_v28 = vld [vmem:[%s8881_s0 + $0x48] sm:$0xff]  ;;  %v6094_v29 = vld [vmem:[%s8883_s2 + $0x404] ss:$16 sps:$4 sm:$0xff]  }
  0x51   :  { %v98_v33 = vpack.c.bf16 %v49_v28, %v42_v27  ;;  %v6154_v27 = vld [vmem:[%s8883_s2 + $0x544] ss:$16 sps:$4 sm:$0xff]   ;;  %v6157_v28 = vld [vmem:[%s8883_s2 + $0x54c] ss:$16 sps:$4 sm:$0xff]  }
  0x52   :  { %1388 = vmatmul.mubr.bf16.gmra.mrb[8].mxu0 %v110_v39  ;;  %1680 = vmatmul.mubr.bf16.gmra.mrb[8].mxu1 %v110_v39  ;;  %v6098_v39 = vld [vmem:[%s8883_s2 + $0x420] ss:$16 sps:$4 sm:$0xff]  }
  0x53   :  { %1417 = vmatpush1.bf16.msra.mxu0 %v6020_v32  ;;  %1709 = vmatpush1.bf16.msra.mxu1 %v6023_v34  ;;  %v6095_v32 = vld [vmem:[%s8883_s2 + $0x408] ss:$16 sps:$4 sm:$0xff]  }
  0x54   :  { %1418 = vmatprep.subr.bf16.mxu0 %v6028_v35  ;;  %1710 = vmatprep.subr.bf16.mxu1 %v6031_v36  ;;  %v57_v34 = vld [vmem:[%s8881_s0 + $0x88] sm:$0xff]  ;;  %v64_v35 = vld [vmem:[%s8881_s0 + $0xc0] sm:$0xff] }
  0x55   :  { %1397 = vmatprep.mubr.bf16.mxu0 %v118_v46  ;;  %1689 = vmatprep.mubr.bf16.mxu1 %v118_v46  ;;  %v6100_v36 = vld [vmem:[%s8883_s2 + $0x424] ss:$16 sps:$4 sm:$0xff]   ;;  %v106_v38 = vpack.c.bf16 %v64_v35, %v57_v34  ;;  %v6107_v46 = vld [vmem:[%s8883_s2 + $0x448] ss:$16 sps:$4 sm:$0xff]  }
  0x56   :  { %v6161_v34 = vld [vmem:[%s8883_s2 + $0x568] ss:$16 sps:$4 sm:$0xff]   ;;  %v6166_v35 = vld [vmem:[%s8883_s2 + $0x584] ss:$16 sps:$4 sm:$0xff]  }
  0x57   :  { %1419 = vmatpush1.bf16.msra.mxu0 %v6026_v40  ;;  %1711 = vmatpush1.bf16.msra.mxu1 %v6029_v41  ;;  %v6101_v40 = vld [vmem:[%s8883_s2 + $0x428] ss:$16 sps:$4 sm:$0xff]   ;;  %v6106_v41 = vld [vmem:[%s8883_s2 + $0x444] ss:$16 sps:$4 sm:$0xff]  }
  0x58   :  { %1420 = vmatprep.subr.bf16.mxu0 %v6034_v44  ;;  %1712 = vmatprep.subr.bf16.mxu1 %v6037_v45  ;;  %v6109_v44 = vld [vmem:[%s8883_s2 + $0x44c] ss:$16 sps:$4 sm:$0xff]   ;;  %v6104_v45 = vld [vmem:[%s8883_s2 + $0x440] ss:$16 sps:$4 sm:$0xff]  }
  0x5a   :  { %1398 = vmatmul.mubr.bf16.gmra.mrb[12].mxu0 %v117_v53  ;;  %1690 = vmatmul.mubr.bf16.gmra.mrb[12].mxu1 %v117_v53  ;;  %v6110_v53 = vld [vmem:[%s8883_s2 + $0x460] ss:$16 sps:$4 sm:$0xff]  }
  0x5b   :  { %1421 = vmatpush1.bf16.msra.mxu0 %v6032_v47  ;;  %1713 = vmatpush1.bf16.msra.mxu1 %v6035_v48  ;;  %v105_v47 = vpack.c.bf16 %v63_v43, %v56_v42  ;;  %v71_v48 = vld [vmem:[%s8881_s0 + $0xf8] sm:$0xff]  ;;  %v6178_v43 = vld [vmem:[%s8883_s2 + $0x5c4] ss:$16 sps:$4 sm:$0xff]  }
  0x5c   :  { %1422 = vmatprep.subr.bf16.mxu0 %v6040_v51  ;;  %1714 = vmatprep.subr.bf16.mxu1 %v6043_v52  ;;  %v6115_v51 = vld [vmem:[%s8883_s2 + $0x46c] ss:$16 sps:$4 sm:$0xff]   ;;  %v113_v52 = vpack.c.bf16 %v78_v49, %v71_v48  ;;  %v6173_v42 = vld [vmem:[%s8883_s2 + $0x5a8] ss:$16 sps:$4 sm:$0xff]   ;;  %v6182_v49 = vld [vmem:[%s8883_s2 + $0x5e0] ss:$16 sps:$4 sm:$0xff]  }
  0x5d   :  { %1440 = vmatprep.mubr.bf16.mxu0 %v99_v58  ;;  %1732 = vmatprep.mubr.bf16.mxu1 %v99_v58  ;;  %v6121_v58 = vld [vmem:[%s8883_s2 + $0x48c] ss:$16 sps:$4 sm:$0xff]  }
  0x5e   :  { %v6187_v48 = vld [vmem:[%s8883_s2 + $0x5ec] ss:$16 sps:$4 sm:$0xff]  }
  0x5f   :  { %1423 = vmatpush1.bf16.msra.mxu0 %v6038_v56  ;;  %1715 = vmatpush1.bf16.msra.mxu1 %v6041_v57  ;;  %v77_v56 = vld [vmem:[%s8881_s0 + $0x128] sm:$0xff]  ;;  %v6118_v57 = vld [vmem:[%s8883_s2 + $0x484] ss:$16 sps:$4 sm:$0xff]  }
  0x60   :  { %1424 = vmatprep.subr.bf16.mxu0 %v6046_v59  ;;  %1716 = vmatprep.subr.bf16.mxu1 %v6049_v60  ;;  %v112_v59 = vpack.c.bf16 %v77_v56, %v70_v55  ;;  %v85_v60 = vld [vmem:[%s8881_s0 + $0x168] sm:$0xff]  ;;  %v66_v55 = vld [vmem:[%s8881_s0 + $0xd0] sm:$0xff] }
  0x61   :  { %v6193_v56 = vld [vmem:[%s8883_s2 + $0x60c] ss:$16 sps:$4 sm:$0xff]  }
  0x63   :  { %1425 = vmatpush1.bf16.msra.mxu0 %v6044_v61  ;;  %1717 = vmatpush1.bf16.msra.mxu1 %v6047_v62  ;;  %v92_v61 = vld [vmem:[%s8881_s0 + $0x1a0] sm:$0xff] }
  0x64   :  { %1426 = vmatprep.subr.bf16.mxu0 %v6052_v63  ;;  %1718 = vmatprep.subr.bf16.mxu1 %v6055_v0  ;;  %v6116_v62 = vld [vmem:[%s8883_s2 + $0x480] ss:$16 sps:$4 sm:$0xff]   ;;  %v6119_v63 = vld [vmem:[%s8883_s2 + $0x488] ss:$16 sps:$4 sm:$0xff]   ;;  %v6124_v0 = vld [vmem:[%s8883_s2 + $0x4a4] ss:$16 sps:$4 sm:$0xff]  }
  0x67   :  { %1427 = vmatpush1.bf16.msra.mxu0 %v6050_v1  ;;  %1719 = vmatpush1.bf16.msra.mxu1 %v6053_v2  ;;  %v6127_v1 = vld [vmem:[%s8883_s2 + $0x4ac] ss:$16 sps:$4 sm:$0xff]   ;;  %v120_v2 = vpack.c.bf16 %v92_v61, %v85_v60 }
  0x68   :  { %1428 = vmatprep.subr.bf16.mxu0 %v6058_v3  ;;  %1720 = vmatprep.subr.bf16.mxu1 %v6061_v4  ;;  %v6122_v3 = vld [vmem:[%s8883_s2 + $0x4a0] ss:$16 sps:$4 sm:$0xff]   ;;  %v6125_v4 = vld [vmem:[%s8883_s2 + $0x4a8] ss:$16 sps:$4 sm:$0xff]   ;;  %v6196_v61 = vld [vmem:[%s8885_s4 + $0x4] ss:$8 sps:$4 sm:$0xff]  }
  0x6b   :  { %1429 = vmatpush1.bf16.msra.mxu0 %v6056_v5  ;;  %1721 = vmatpush1.bf16.msra.mxu1 %v6059_v6  ;;  %v6130_v5 = vld [vmem:[%s8883_s2 + $0x4c4] ss:$16 sps:$4 sm:$0xff]  }
  0x6c   :  { %1430 = vmatprep.subr.bf16.mxu0 %v6064_v7  ;;  %1722 = vmatprep.subr.bf16.mxu1 %v6067_v8  ;;  %v84_v6 = vld [vmem:[%s8881_s0 + $0x160] sm:$0xff]  ;;  %v91_v7 = vld [vmem:[%s8881_s0 + $0x198] sm:$0xff] }
  0x6d   :  { %v6133_v8 = vld [vmem:[%s8883_s2 + $0x4cc] ss:$16 sps:$4 sm:$0xff]  }
  0x6f   :  { %1431 = vmatpush1.bf16.msra.mxu0 %v6062_v9  ;;  %1723 = vmatpush1.bf16.msra.mxu1 %v6065_v10  ;;  %v6128_v9 = vld [vmem:[%s8883_s2 + $0x4c0] ss:$16 sps:$4 sm:$0xff]   ;;  %v6131_v10 = vld [vmem:[%s8883_s2 + $0x4c8] ss:$16 sps:$4 sm:$0xff]  }
  0x70   :  { %1432 = vmatprep.subr.bf16.mxu0 %v6070_v11  ;;  %1724 = vmatprep.subr.bf16.mxu1 %v6073_v12  ;;  %v119_v11 = vpack.c.bf16 %v91_v7, %v84_v6  ;;  %v45_v12 = vld [vmem:[%s8881_s0 + $0x28] sm:$0xff]  ;;  %v87_v6 = vld [vmem:[%s8881_s0 + $0x178] sm:$0xff]  ;;  %v94_v7 = vld [vmem:[%s8881_s0 + $0x1b0] sm:$0xff] }
  0x73   :  { %1433 = vmatpush1.bf16.msra.mxu0 %v6068_v13  ;;  %1725 = vmatpush1.bf16.msra.mxu1 %v6071_v14  ;;  %v52_v13 = vld [vmem:[%s8881_s0 + $0x60] sm:$0xff] }
  0x74   :  { %1434 = vmatprep.subr.bf16.mxu0 %v6076_v15  ;;  %1726 = vmatprep.subr.bf16.mxu1 %v6079_v16  ;;  %v6136_v14 = vld [vmem:[%s8883_s2 + $0x4e4] ss:$16 sps:$4 sm:$0xff]   ;;  %v6139_v15 = vld [vmem:[%s8883_s2 + $0x4ec] ss:$16 sps:$4 sm:$0xff]   ;;  %v101_v16 = vpack.c.bf16 %v52_v13, %v45_v12 }
  0x75   :  { %v46_v13 = vld [vmem:[%s8881_s0 + $0x30] sm:$0xff] }
  0x77   :  { %1435 = vmatpush1.bf16.msra.mxu0 %v6074_v17  ;;  %1727 = vmatpush1.bf16.msra.mxu1 %v6077_v18  ;;  %v6134_v17 = vld [vmem:[%s8883_s2 + $0x4e0] ss:$16 sps:$4 sm:$0xff]   ;;  %v6137_v18 = vld [vmem:[%s8883_s2 + $0x4e8] ss:$16 sps:$4 sm:$0xff]  }
  0x78   :  { %1436 = vmatprep.subr.bf16.mxu0 %v6082_v19  ;;  %1728 = vmatprep.subr.bf16.mxu1 %v6085_v20  ;;  %v6142_v19 = vld [vmem:[%s8883_s2 + $0x504] ss:$16 sps:$4 sm:$0xff]   ;;  %v6145_v20 = vld [vmem:[%s8883_s2 + $0x50c] ss:$16 sps:$4 sm:$0xff]  }
  0x7b   :  { %1437 = vmatpush1.bf16.msra.mxu0 %v6080_v21  ;;  %1729 = vmatpush1.bf16.msra.mxu1 %v6083_v22  ;;  %v6140_v21 = vld [vmem:[%s8883_s2 + $0x500] ss:$16 sps:$4 sm:$0xff]   ;;  %v6143_v22 = vld [vmem:[%s8883_s2 + $0x508] ss:$16 sps:$4 sm:$0xff]  }
  0x7c   :  { %1438 = vmatprep.subr.bf16.mxu0 %v6088_v23  ;;  %1730 = vmatprep.subr.bf16.mxu1 %v6091_v24  ;;  %v6148_v23 = vld [vmem:[%s8883_s2 + $0x524] ss:$16 sps:$4 sm:$0xff]   ;;  %v6151_v24 = vld [vmem:[%s8883_s2 + $0x52c] ss:$16 sps:$4 sm:$0xff]  }
  0x7f   :  { %1439 = vmatpush1.bf16.msra.mxu0 %v6086_v25  ;;  %1731 = vmatpush1.bf16.msra.mxu1 %v6089_v26  ;;  %v6146_v25 = vld [vmem:[%s8883_s2 + $0x520] ss:$16 sps:$4 sm:$0xff]   ;;  %v6149_v26 = vld [vmem:[%s8883_s2 + $0x528] ss:$16 sps:$4 sm:$0xff]  }
  0x80   :  { %1481 = vmatprep.subr.bf16.mxu0 %v6094_v29  ;;  %1773 = vmatprep.subr.bf16.mxu1 %v6097_v30  ;;  %v6152_v29 = vld [vmem:[%s8883_s2 + $0x540] ss:$16 sps:$4 sm:$0xff]   ;;  %v6155_v30 = vld [vmem:[%s8883_s2 + $0x548] ss:$16 sps:$4 sm:$0xff]  }
  0x82   :  { %1441 = vmatmul.mubr.bf16.vlgmr.msra.gmra.mrb[0].mxu0 %v98_v33  ;;  %1733 = vmatmul.mubr.bf16.vlgmr.msra.gmra.mrb[0].mxu1 %v98_v33  ;;  %v6158_v33 = vld [vmem:[%s8883_s2 + $0x560] ss:$16 sps:$4 sm:$0xff]  }
  0x83   :  { %1482 = vmatpush1.bf16.msra.mxu0 %v6092_v31  ;;  %1774 = vmatpush1.bf16.msra.mxu1 %v6095_v32  ;;  %v6160_v31 = vld [vmem:[%s8883_s2 + $0x564] ss:$16 sps:$4 sm:$0xff]   ;;  %v6163_v32 = vld [vmem:[%s8883_s2 + $0x56c] ss:$16 sps:$4 sm:$0xff]  }
  0x84   :  { %1483 = vmatprep.subr.bf16.mxu0 %v6100_v36  ;;  %1775 = vmatprep.subr.bf16.mxu1 %v6103_v37  ;;  %v6169_v36 = vld [vmem:[%s8883_s2 + $0x58c] ss:$16 sps:$4 sm:$0xff]   ;;  %v6164_v37 = vld [vmem:[%s8883_s2 + $0x580] ss:$16 sps:$4 sm:$0xff]  }
  0x85   :  { %1450 = vmatprep.mubr.bf16.mxu0 %v106_v38  ;;  %1742 = vmatprep.mubr.bf16.mxu1 %v106_v38  ;;  %v6167_v38 = vld [vmem:[%s8883_s2 + $0x588] ss:$16 sps:$4 sm:$0xff]  }
  0x87   :  { %1484 = vmatpush1.bf16.msra.mxu0 %v6098_v39  ;;  %1776 = vmatpush1.bf16.msra.mxu1 %v6101_v40  ;;  %v6172_v39 = vld [vmem:[%s8883_s2 + $0x5a4] ss:$16 sps:$4 sm:$0xff]   ;;  %v6175_v40 = vld [vmem:[%s8883_s2 + $0x5ac] ss:$16 sps:$4 sm:$0xff]  }
  0x88   :  { %1485 = vmatprep.subr.bf16.mxu0 %v6106_v41  ;;  %1777 = vmatprep.subr.bf16.mxu1 %v6109_v44  ;;  %v6170_v41 = vld [vmem:[%s8883_s2 + $0x5a0] ss:$16 sps:$4 sm:$0xff]   ;;  %v6181_v44 = vld [vmem:[%s8883_s2 + $0x5cc] ss:$16 sps:$4 sm:$0xff]  }
  0x8a   :  { %1451 = vmatmul.mubr.bf16.gmra.mrb[4].mxu0 %v105_v47  ;;  %1743 = vmatmul.mubr.bf16.gmra.mrb[4].mxu1 %v105_v47  ;;  %v6184_v47 = vld [vmem:[%s8883_s2 + $0x5e4] ss:$16 sps:$4 sm:$0xff]  }
  0x8b   :  { %1486 = vmatpush1.bf16.msra.mxu0 %v6104_v45  ;;  %1778 = vmatpush1.bf16.msra.mxu1 %v6107_v46  ;;  %v6176_v45 = vld [vmem:[%s8883_s2 + $0x5c0] ss:$16 sps:$4 sm:$0xff]   ;;  %v6179_v46 = vld [vmem:[%s8883_s2 + $0x5c8] ss:$16 sps:$4 sm:$0xff]  }
  0x8c   :  { %1487 = vmatprep.subr.bf16.mxu0 %v6112_v50  ;;  %1779 = vmatprep.subr.bf16.mxu1 %v6115_v51  ;;  %v6185_v50 = vld [vmem:[%s8883_s2 + $0x5e8] ss:$16 sps:$4 sm:$0xff]   ;;  %v44_v51 = vld [vmem:[%s8881_s0 + $0x20] sm:$0xff] }
  0x8d   :  { %1460 = vmatprep.mubr.bf16.mxu0 %v113_v52  ;;  %1752 = vmatprep.mubr.bf16.mxu1 %v113_v52  ;;  %v51_v52 = vld [vmem:[%s8881_s0 + $0x58] sm:$0xff] }
  0x8f   :  { %1488 = vmatpush1.bf16.msra.mxu0 %v6110_v53  ;;  %1780 = vmatpush1.bf16.msra.mxu1 %v6113_v54  ;;  %v6190_v53 = vld [vmem:[%s8883_s2 + $0x604] ss:$16 sps:$4 sm:$0xff]   ;;  %v59_v54 = vld [vmem:[%s8881_s0 + $0x98] sm:$0xff] }
  0x90   :  { %1489 = vmatprep.subr.bf16.mxu0 %v6118_v57  ;;  %1781 = vmatprep.subr.bf16.mxu1 %v6121_v58  ;;  %v6188_v57 = vld [vmem:[%s8883_s2 + $0x600] ss:$16 sps:$4 sm:$0xff]   ;;  %v100_v58 = vpack.c.bf16 %v51_v52, %v44_v51  ;;  %v108_v60 = vpack.c.bf16 %v66_v55, %v59_v54 }
  0x92   :  { %1461 = vmatmul.mubr.bf16.gmra.mrb[8].mxu0 %v112_v59  ;;  %1753 = vmatmul.mubr.bf16.gmra.mrb[8].mxu1 %v112_v59  ;;  %v6191_v59 = vld [vmem:[%s8883_s2 + $0x608] ss:$16 sps:$4 sm:$0xff]  }
  0x93   :  { %1490 = vmatpush1.bf16.msra.mxu0 %v6116_v62  ;;  %1782 = vmatpush1.bf16.msra.mxu1 %v6119_v63  ;;  %v58_v62 = vld [vmem:[%s8881_s0 + $0x90] sm:$0xff]  ;;  %v65_v63 = vld [vmem:[%s8881_s0 + $0xc8] sm:$0xff] }
  0x94   :  { %1491 = vmatprep.subr.bf16.mxu0 %v6124_v0  ;;  %1783 = vmatprep.subr.bf16.mxu1 %v6127_v1  ;;  %v73_v0 = vld [vmem:[%s8881_s0 + $0x108] sm:$0xff]  ;;  %v80_v1 = vld [vmem:[%s8881_s0 + $0x140] sm:$0xff] }
  0x95   :  { %1470 = vmatprep.mubr.bf16.mxu0 %v120_v2  ;;  %1762 = vmatprep.mubr.bf16.mxu1 %v120_v2  ;;  %v107_v2 = vpack.c.bf16 %v65_v63, %v58_v62 }
  0x97   :  { %1492 = vmatpush1.bf16.msra.mxu0 %v6122_v3  ;;  %1784 = vmatpush1.bf16.msra.mxu1 %v6125_v4  ;;  %v115_v3 = vpack.c.bf16 %v80_v1, %v73_v0  ;;  %v72_v4 = vld [vmem:[%s8881_s0 + $0x100] sm:$0xff] }
  0x98   :  { %1493 = vmatprep.subr.bf16.mxu0 %v6130_v5  ;;  %1785 = vmatprep.subr.bf16.mxu1 %v6133_v8  ;;  %v79_v5 = vld [vmem:[%s8881_s0 + $0x138] sm:$0xff] }
  0x99   :  { %v114_v8 = vpack.c.bf16 %v79_v5, %v72_v4 }
  0x9a   :  { %1471 = vmatmul.mubr.bf16.gmra.mrb[12].mxu0 %v119_v11  ;;  %1763 = vmatmul.mubr.bf16.gmra.mrb[12].mxu1 %v119_v11  ;;  %v93_v11 = vld [vmem:[%s8881_s0 + $0x1a8] sm:$0xff] }
  0x9b   :  { %1494 = vmatpush1.bf16.msra.mxu0 %v6128_v9  ;;  %1786 = vmatpush1.bf16.msra.mxu1 %v6131_v10  ;;  %v122_v9 = vpack.c.bf16 %v94_v7, %v87_v6  ;;  %v86_v10 = vld [vmem:[%s8881_s0 + $0x170] sm:$0xff] }
  0x9c   :  { %1495 = vmatprep.subr.bf16.mxu0 %v6136_v14  ;;  %1787 = vmatprep.subr.bf16.mxu1 %v6139_v15  ;;  %v121_v12 = vpack.c.bf16 %v93_v11, %v86_v10  ;;  %v53_v14 = vld [vmem:[%s8881_s0 + $0x68] sm:$0xff]  ;;  %v6793_v15 = vmov 0  }
  0x9d   :  { %1513 = vmatprep.mubr.bf16.mxu0 %v101_v16  ;;  %1805 = vmatprep.mubr.bf16.mxu1 %v101_v16  ;;  %v102_v16 = vpack.c.bf16 %v53_v14, %v46_v13 }
  0x9f   :  { %1496 = vmatpush1.bf16.msra.mxu0 %v6134_v17  ;;  %1788 = vmatpush1.bf16.msra.mxu1 %v6137_v18  ;;  %v6194_v17 = vld [vmem:[%s8885_s4] ss:$8 sps:$4 sm:$0xff]   ;;  %v6199_v18 = vld [vmem:[%s8885_s4 + $0x14] ss:$8 sps:$4 sm:$0xff]  }
  0xa0   :  { %1497 = vmatprep.subr.bf16.mxu0 %v6142_v19  ;;  %1789 = vmatprep.subr.bf16.mxu1 %v6145_v20  ;;  %v60_v19 = vld [vmem:[%s8881_s0 + $0xa0] sm:$0xff]  ;;  %v67_v20 = vld [vmem:[%s8881_s0 + $0xd8] sm:$0xff] }
  0xa3   :  { %1498 = vmatpush1.bf16.msra.mxu0 %v6140_v21  ;;  %1790 = vmatpush1.bf16.msra.mxu1 %v6143_v22  ;;  %v6197_v21 = vld [vmem:[%s8885_s4 + $0x10] ss:$8 sps:$4 sm:$0xff]   ;;  %v6202_v22 = vld [vmem:[%s8885_s4 + $0x24] ss:$8 sps:$4 sm:$0xff]  }
  0xa4   :  { %1499 = vmatprep.subr.bf16.mxu0 %v6148_v23  ;;  %1791 = vmatprep.subr.bf16.mxu1 %v6151_v24  ;;  %v109_v23 = vpack.c.bf16 %v67_v20, %v60_v19  ;;  %v6200_v24 = vld [vmem:[%s8885_s4 + $0x20] ss:$8 sps:$4 sm:$0xff]  }
  0xa7   :  { %1500 = vmatpush1.bf16.msra.mxu0 %v6146_v25  ;;  %1792 = vmatpush1.bf16.msra.mxu1 %v6149_v26  ;;  %v6205_v25 = vld [vmem:[%s8885_s4 + $0x34] ss:$8 sps:$4 sm:$0xff]  }
  0xa8   :  { %1501 = vmatprep.subr.bf16.mxu0 %v6154_v27  ;;  %1793 = vmatprep.subr.bf16.mxu1 %v6157_v28  ;;  %v74_v26 = vld [vmem:[%s8881_s0 + $0x110] sm:$0xff]  ;;  %v81_v27 = vld [vmem:[%s8881_s0 + $0x148] sm:$0xff] }
  0xa9   :  { %v6203_v28 = vld [vmem:[%s8885_s4 + $0x30] ss:$8 sps:$4 sm:$0xff]  }
  0xab   :  { %1502 = vmatpush1.bf16.msra.mxu0 %v6152_v29  ;;  %1794 = vmatpush1.bf16.msra.mxu1 %v6155_v30  ;;  %v6208_v29 = vld [vmem:[%s8885_s4 + $0x44] ss:$8 sps:$4 sm:$0xff]   ;;  %v116_v30 = vpack.c.bf16 %v81_v27, %v74_v26 }
  0xac   :  { %1503 = vmatprep.subr.bf16.mxu0 %v6160_v31  ;;  %1795 = vmatprep.subr.bf16.mxu1 %v6163_v32  ;;  %v6206_v31 = vld [vmem:[%s8885_s4 + $0x40] ss:$8 sps:$4 sm:$0xff]   ;;  %v6211_v32 = vld [vmem:[%s8885_s4 + $0x54] ss:$8 sps:$4 sm:$0xff]  }
  0xaf   :  { %1504 = vmatpush1.bf16.msra.mxu0 %v6158_v33  ;;  %1796 = vmatpush1.bf16.msra.mxu1 %v6161_v34 }
  0xb0   :  { %1505 = vmatprep.subr.bf16.mxu0 %v6166_v35  ;;  %1797 = vmatprep.subr.bf16.mxu1 %v6169_v36 }
  0xb3   :  { %1506 = vmatpush1.bf16.msra.mxu0 %v6164_v37  ;;  %1798 = vmatpush1.bf16.msra.mxu1 %v6167_v38 }
  0xb4   :  { %1507 = vmatprep.subr.bf16.mxu0 %v6172_v39  ;;  %1799 = vmatprep.subr.bf16.mxu1 %v6175_v40 }
  0xb7   :  { %1508 = vmatpush1.bf16.msra.mxu0 %v6170_v41  ;;  %1800 = vmatpush1.bf16.msra.mxu1 %v6173_v42 }
  0xb8   :  { %1509 = vmatprep.subr.bf16.mxu0 %v6178_v43  ;;  %1801 = vmatprep.subr.bf16.mxu1 %v6181_v44 }
  0xbb   :  { %1510 = vmatpush1.bf16.msra.mxu0 %v6176_v45  ;;  %1802 = vmatpush1.bf16.msra.mxu1 %v6179_v46 }
  0xbc   :  { %1511 = vmatprep.subr.bf16.mxu0 %v6184_v47  ;;  %1803 = vmatprep.subr.bf16.mxu1 %v6187_v48 }
  0xbf   :  { %1512 = vmatpush1.bf16.msra.mxu0 %v6182_v49  ;;  %1804 = vmatpush1.bf16.msra.mxu1 %v6185_v50 }
  0xc0   :  { %1554 = vmatprep.subr.bf16.mxu0 %v6190_v53  ;;  %1846 = vmatprep.subr.bf16.mxu1 %v6193_v56 }
  0xc2   :  { %1514 = vmatmul.mubr.bf16.vlgmr.msra.gmra.mrb[0].mxu0 %v100_v58  ;;  %1806 = vmatmul.mubr.bf16.vlgmr.msra.gmra.mrb[0].mxu1 %v100_v58 }
  0xc3   :  { %1555 = vmatpush1.bf16.msra.mxu0 %v6188_v57  ;;  %1523 = vmatprep.mubr.bf16.mxu0 %v108_v60 }
  0xc4   :  { %1815 = vmatprep.mubr.bf16.mxu1 %v108_v60  ;;  %1847 = vmatpush1.bf16.msra.mxu1 %v6191_v59 }
  0xc5   :  { %2291 = vmatprep.subr.bf16.mxu0 %v6196_v61 }
  0xca   :  { %1524 = vmatmul.mubr.bf16.gmra.mrb[4].mxu0 %v107_v2  ;;  %1816 = vmatmul.mubr.bf16.gmra.mrb[4].mxu1 %v107_v2 }
  0xcb   :  { %1533 = vmatprep.mubr.bf16.mxu0 %v115_v3  ;;  %1825 = vmatprep.mubr.bf16.mxu1 %v115_v3 }
  0xd2   :  { %1534 = vmatmul.mubr.bf16.gmra.mrb[8].mxu0 %v114_v8  ;;  %1826 = vmatmul.mubr.bf16.gmra.mrb[8].mxu1 %v114_v8 }
  0xd3   :  { %1543 = vmatprep.mubr.bf16.mxu0 %v122_v9  ;;  %1835 = vmatprep.mubr.bf16.mxu1 %v122_v9 }
  0xda   :  { %1544 = vmatmul.mubr.bf16.gmra.mrb[12].mxu0 %v121_v12  ;;  %1836 = vmatmul.mubr.bf16.gmra.mrb[12].mxu1 %v121_v12 }
  0xdb   :  { %1586 = vmatprep.mubr.bf16.mxu0 %v6793_v15  ;;  %1878 = vmatprep.mubr.bf16.mxu1 %v6793_v15 }
  0xe2   :  { %5265 = vmatmul.mubr.msk.bf16.vlgmr.msra.gmra.mrb[0].mxu0 %vm1322_vm0, %v102_v16  ;;  %5269 = vmatmul.mubr.msk.bf16.vlgmr.msra.gmra.mrb[0].mxu1 %vm1322_vm0, %v102_v16 }
  0xe3   :  { %1596 = vmatprep.mubr.bf16.mxu0 %v6793_v15  ;;  %1888 = vmatprep.mubr.bf16.mxu1 %v6793_v15 }
  0xe4   :  { %2292 = vmatpush1.bf16.msra.mxu0 %v6194_v17 }
  0xe5   :  { %2293 = vmatprep.subr.bf16.mxu0 %v6199_v18 }
  0xe8   :  { %2294 = vmatpush1.bf16.msra.mxu0 %v6197_v21 }
  0xe9   :  { %2295 = vmatprep.subr.bf16.mxu0 %v6202_v22 }
  0xea   :  { %5266 = vmatmul.mubr.msk.bf16.gmra.mrb[4].mxu0 %vm1322_vm0, %v109_v23  ;;  %5270 = vmatmul.mubr.msk.bf16.gmra.mrb[4].mxu1 %vm1322_vm0, %v109_v23 }
  0xeb   :  { %1606 = vmatprep.mubr.bf16.mxu0 %v6793_v15  ;;  %1898 = vmatprep.mubr.bf16.mxu1 %v6793_v15 }
  0xec   :  { %2296 = vmatpush1.bf16.msra.mxu0 %v6200_v24 }
  0xed   :  { %2297 = vmatprep.subr.bf16.mxu0 %v6205_v25 }
  0xf0   :  { %2298 = vmatpush1.bf16.msra.mxu0 %v6203_v28 }
  0xf1   :  { %2299 = vmatprep.subr.bf16.mxu0 %v6208_v29 }
  0xf2   :  { %5267 = vmatmul.mubr.msk.bf16.gmra.mrb[8].mxu0 %vm1322_vm0, %v116_v30  ;;  %5271 = vmatmul.mubr.msk.bf16.gmra.mrb[8].mxu1 %vm1322_vm0, %v116_v30 }
  0xf3   :  { %18 = vsyncpa [#allocation3], 0  ;;  %1616 = vmatprep.mubr.bf16.mxu0 %v6793_v15  ;;  %1908 = vmatprep.mubr.bf16.mxu1 %v6793_v15  ;;  %v88_v33 = vld [vmem:[%s8881_s0 + $0x180] sm:$0xff]  ;;  %v95_v34 = vld [vmem:[%s8881_s0 + $0x1b8] sm:$0xff]  ;;  %v322_v60 = vlaneseq  ;;  %vm2560_vm1 = vcmask 1041408   ;;  %vm2547_vm2 = vcmask 162816  }
  0xf4   :  { %2300 = vmatpush1.bf16.msra.mxu0 %v6206_v31  ;;  %v6209_v35 = vld [vmem:[%s8885_s4 + $0x50] ss:$8 sps:$4 sm:$0xff]   ;;  %v6214_v36 = vld [vmem:[%s8885_s4 + $0x64] ss:$8 sps:$4 sm:$0xff]   ;;  %v123_v37 = vpack.c.bf16 %v95_v34, %v88_v33  ;;  %v6212_v38 = vld [vmem:[%s8885_s4 + $0x60] ss:$8 sps:$4 sm:$0xff]  }
  0xf5   :  { %2301 = vmatprep.subr.bf16.mxu0 %v6211_v32  ;;  %v6217_v39 = vld [vmem:[%s8885_s4 + $0x74] ss:$8 sps:$4 sm:$0xff]   ;;  %v6215_v40 = vld [vmem:[%s8885_s4 + $0x70] ss:$8 sps:$4 sm:$0xff]   ;;  %v6220_v41 = vld [vmem:[%s8885_s4 + $0x84] ss:$8 sps:$4 sm:$0xff]  }
  0xf6   :  { %v6218_v42 = vld [vmem:[%s8885_s4 + $0x80] ss:$8 sps:$4 sm:$0xff]   ;;  %v6223_v43 = vld [vmem:[%s8885_s4 + $0x94] ss:$8 sps:$4 sm:$0xff]   ;;  %v6221_v44 = vld [vmem:[%s8885_s4 + $0x90] ss:$8 sps:$4 sm:$0xff]  }
  0xf7   :  { %v6226_v45 = vld [vmem:[%s8885_s4 + $0xa4] ss:$8 sps:$4 sm:$0xff]   ;;  %v6224_v46 = vld [vmem:[%s8885_s4 + $0xa0] ss:$8 sps:$4 sm:$0xff]   ;;  %v6229_v47 = vld [vmem:[%s8885_s4 + $0xb4] ss:$8 sps:$4 sm:$0xff]  }
  0xf8   :  { %2302 = vmatpush1.bf16.msra.mxu0 %v6209_v35  ;;  %v6227_v48 = vld [vmem:[%s8885_s4 + $0xb0] ss:$8 sps:$4 sm:$0xff]   ;;  %v6232_v49 = vld [vmem:[%s8885_s4 + $0xc4] ss:$8 sps:$4 sm:$0xff]   ;;  %v6230_v50 = vld [vmem:[%s8885_s4 + $0xc0] ss:$8 sps:$4 sm:$0xff]  }
  0xf9   :  { %2303 = vmatprep.subr.bf16.mxu0 %v6214_v36  ;;  %v6235_v51 = vld [vmem:[%s8885_s4 + $0xd4] ss:$8 sps:$4 sm:$0xff]   ;;  %v6233_v52 = vld [vmem:[%s8885_s4 + $0xd0] ss:$8 sps:$4 sm:$0xff]   ;;  %v6238_v53 = vld [vmem:[%s8885_s4 + $0xe4] ss:$8 sps:$4 sm:$0xff]  }
  0xfa   :  { %5268 = vmatmul.mubr.msk.bf16.gmra.mrb[12].mxu0 %vm1322_vm0, %v123_v37  ;;  %5272 = vmatmul.mubr.msk.bf16.gmra.mrb[12].mxu1 %vm1322_vm0, %v123_v37  ;;  %v6236_v54 = vld [vmem:[%s8885_s4 + $0xe0] ss:$8 sps:$4 sm:$0xff]   ;;  %v6241_v55 = vld [vmem:[%s8885_s4 + $0xf4] ss:$8 sps:$4 sm:$0xff]   ;;  %v6239_v56 = vld [vmem:[%s8885_s4 + $0xf0] ss:$8 sps:$4 sm:$0xff]  }
  0xfb   :  { %2605 = vmatprep.mubr.bf16.mxu1 %v6793_v15  ;;  %v6244_v57 = vld [vmem:[%s8885_s4 + $0x104] ss:$8 sps:$4 sm:$0xff]   ;;  %v6269_v58 = vld [vmem:[%s8887_s6] ss:$16 sps:$4 sm:$0xff]   ;;  %v7740_v61 = vshrl.u32 %v322_v60, 7  ;;  %vm4999_vm3 = vcmask 125952  }
  0xfc   :  { %2304 = vmatpush1.bf16.msra.mxu0 %v6212_v38  ;;  %v6271_v59 = vld [vmem:[%s8887_s6 + $0x4] ss:$16 sps:$4 sm:$0xff]   ;;  %v320_v0 = vld [vmem:[%s8884_s3] sm:$0xf] }
  0xfd   :  { %2305 = vmatprep.subr.bf16.mxu0 %v6217_v39  ;;  %2573 = vmatprep.subr.bf16.mxu1 %v6271_v59  ;;  %v7743_v62 = vsub.s32 0, %v7740_v61  ;;  %v7746_v63 = vsub.s32 2, %v7740_v61  ;;  %v7752_v1 = vsub.s32 1, %v7740_v61  ;;  %v7755_v2 = vsub.s32 3, %v7740_v61  ;;  %v6242_v38 = vld [vmem:[%s8885_s4 + $0x100] ss:$8 sps:$4 sm:$0xff]  }
  0xfe   :  { %2574 = vmatpush1.bf16.msra.mxu1 %v6269_v58  ;;  %v6250_v59 = vld [vmem:[%s8885_s4 + $0x124] ss:$8 sps:$4 sm:$0xff]  }
  0xff   :  { %v7758_v3 = vrot.slane %v320_v0, %v7743_v62  ;;  %v7761_v4 = vrot.slane %v320_v0, %v7746_v63  ;;  %v7764_v5 = vrot.slane %v320_v0, %v7752_v1  ;;  %v7767_v6 = vrot.slane %v320_v0, %v7755_v2 }
 0x100   :  { %2306 = vmatpush1.bf16.msra.mxu0 %v6215_v40 }
 0x101   :  { %2307 = vmatprep.subr.bf16.mxu0 %v6220_v41 }
 0x104   :  { %2308 = vmatpush1.bf16.msra.mxu0 %v6218_v42 }
 0x105   :  { %2309 = vmatprep.subr.bf16.mxu0 %v6223_v43  ;;  %v6247_v43 = vld [vmem:[%s8885_s4 + $0x114] ss:$8 sps:$4 sm:$0xff]  }
 0x108   :  { %2310 = vmatpush1.bf16.msra.mxu0 %v6221_v44 }
 0x109   :  { %2311 = vmatprep.subr.bf16.mxu0 %v6226_v45 }
 0x10c   :  { %2312 = vmatpush1.bf16.msra.mxu0 %v6224_v46 }
 0x10d   :  { %2313 = vmatprep.subr.bf16.mxu0 %v6229_v47 }
 0x110   :  { %2314 = vmatpush1.bf16.msra.mxu0 %v6227_v48 }
 0x111   :  { %2315 = vmatprep.subr.bf16.mxu0 %v6232_v49 }
 0x114   :  { %2316 = vmatpush1.bf16.msra.mxu0 %v6230_v50 }
 0x115   :  { %2317 = vmatprep.subr.bf16.mxu0 %v6235_v51 }
 0x118   :  { %2318 = vmatpush1.bf16.msra.mxu0 %v6233_v52 }
 0x119   :  { %2319 = vmatprep.subr.bf16.mxu0 %v6238_v53 }
 0x11c   :  { %2320 = vmatpush1.bf16.msra.mxu0 %v6236_v54  ;;  %v6245_v54 = vld [vmem:[%s8885_s4 + $0x110] ss:$8 sps:$4 sm:$0xff]  }
 0x11d   :  { %2321 = vmatprep.subr.bf16.mxu0 %v6241_v55 }
 0x120   :  { %2322 = vmatpush1.bf16.msra.mxu0 %v6239_v56 }
 0x121   :  { %2364 = vmatprep.subr.bf16.mxu0 %v6244_v57 }
 0x1b5   :  { %v1588_v7 = vpop.f32.mrb[0].mxu0  ;;  %v1880_v8 = vpop.f32.mrb[0].mxu1 }
 0x1b6   :  { %v5640_v9 = vadd.f32 %v1588_v7, %v7758_v3  ;;  %v5656_v10 = vadd.f32 %v1880_v8, %v7761_v4  ;;  %v1590_v11 = vpop.f32.mrb[1].mxu0  ;;  %v1882_v12 = vpop.f32.mrb[1].mxu1 }
 0x1b7   :  { %v5641_v13 = vadd.f32 %v1590_v11, %v7764_v5  ;;  %v5657_v14 = vadd.f32 %v1882_v12, %v7767_v6  ;;  %v1592_v16 = vpop.f32.mrb[2].mxu0  ;;  %v1884_v17 = vpop.f32.mrb[2].mxu1 }
 0x1b8   :  { %v5642_v18 = vadd.f32 %v1592_v16, %v7758_v3  ;;  %v5658_v19 = vadd.f32 %v1884_v17, %v7761_v4  ;;  %v1594_v20 = vpop.f32.mrb[3].mxu0  ;;  %v1886_v21 = vpop.f32.mrb[3].mxu1  ;;  %v1919_v24 = vmax.f32 %v5640_v9, 0.0  ;;  %v1921_v25 = vmax.f32 %v5656_v10, 0.0  ;;  %v6248_v16 = vld [vmem:[%s8885_s4 + $0x120] ss:$8 sps:$4 sm:$0xff]  }
 0x1b9   :  { %v5643_v22 = vadd.f32 %v1594_v20, %v7764_v5  ;;  %v5659_v23 = vadd.f32 %v1886_v21, %v7767_v6  ;;  %v1920_v28 = vmax.f32 %v5641_v13, 0.0  ;;  %v1922_v29 = vmax.f32 %v5657_v14, 0.0  ;;  %v6253_v21 = vld [vmem:[%s8885_s4 + $0x134] ss:$8 sps:$4 sm:$0xff]  }
 0x1ba   :  { %v1923_v26 = vmax.f32 %v5642_v18, 0.0  ;;  %v1925_v27 = vmax.f32 %v5658_v19, 0.0 }
 0x1bb   :  { %v1924_v30 = vmax.f32 %v5643_v22, 0.0  ;;  %v1926_v31 = vmax.f32 %v5659_v23, 0.0 }
 0x1bc   :  { %v1951_v32 = vpack.c.bf16 %v1923_v26, %v1919_v24  ;;  %v7777_v33 = vpack.c.bf16 %v1925_v27, %v1921_v25 }
 0x1bd   :  { %v1952_v34 = vpack.c.bf16 %v1924_v30, %v1920_v28  ;;  %v7779_v35 = vpack.c.bf16 %v1926_v31, %v1922_v29  ;;  %v1598_v36 = vpop.f32.mrb[4].mxu0  ;;  %v1890_v37 = vpop.f32.mrb[4].mxu1 }
 0x1be   :  { %v5644_v39 = vadd.f32 %v1598_v36, %v7758_v3  ;;  %v5660_v40 = vadd.f32 %v1890_v37, %v7761_v4  ;;  %v1600_v41 = vpop.f32.mrb[5].mxu0  ;;  %v1892_v42 = vpop.f32.mrb[5].mxu1 }
 0x1bf   :  { %v5645_v44 = vadd.f32 %v1600_v41, %v7764_v5  ;;  %v5661_v45 = vadd.f32 %v1892_v42, %v7767_v6  ;;  %v1602_v46 = vpop.f32.mrb[6].mxu0  ;;  %v1894_v47 = vpop.f32.mrb[6].mxu1  ;;  %2323 = vmatprep.mubr.bf16.mxu0 %v1952_v34 }
 0x1c0   :  { %v5646_v48 = vadd.f32 %v1602_v46, %v7758_v3  ;;  %v5662_v49 = vadd.f32 %v1894_v47, %v7761_v4  ;;  %v1604_v50 = vpop.f32.mrb[7].mxu0  ;;  %v1896_v51 = vpop.f32.mrb[7].mxu1  ;;  %2324 = vmatmul.mubr.bf16.vlgmr.msra.gmra.mrb[16].mxu0 %v1951_v32  ;;  %v1927_v55 = vmax.f32 %v5644_v39, 0.0  ;;  %v1929_v56 = vmax.f32 %v5660_v40, 0.0  ;;  %v6251_v32 = vld [vmem:[%s8885_s4 + $0x130] ss:$8 sps:$4 sm:$0xff]  }
 0x1c1   :  { %v5647_v52 = vadd.f32 %v1604_v50, %v7764_v5  ;;  %v5663_v53 = vadd.f32 %v1896_v51, %v7767_v6  ;;  %2365 = vmatpush1.bf16.msra.mxu0 %v6242_v38  ;;  %v1928_v60 = vmax.f32 %v5645_v44, 0.0  ;;  %v1930_v0 = vmax.f32 %v5661_v45, 0.0  ;;  %v6256_v39 = vld [vmem:[%s8885_s4 + $0x144] ss:$8 sps:$4 sm:$0xff]   ;;  %v6254_v50 = vld [vmem:[%s8885_s4 + $0x140] ss:$8 sps:$4 sm:$0xff]  }
 0x1c2   :  { %v1931_v57 = vmax.f32 %v5646_v48, 0.0  ;;  %v1933_v58 = vmax.f32 %v5662_v49, 0.0  ;;  %2366 = vmatprep.subr.bf16.mxu0 %v6247_v43 }
 0x1c3   :  { %v1932_v7 = vmax.f32 %v5647_v52, 0.0  ;;  %v1934_v8 = vmax.f32 %v5663_v53, 0.0 }
 0x1c4   :  { %v1955_v9 = vpack.c.bf16 %v1931_v57, %v1927_v55  ;;  %v7801_v10 = vpack.c.bf16 %v1933_v58, %v1929_v56  ;;  %v6259_v55 = vld [vmem:[%s8885_s4 + $0x154] ss:$8 sps:$4 sm:$0xff]  }
 0x1c5   :  { %v1956_v11 = vpack.c.bf16 %v1932_v7, %v1928_v60  ;;  %v7803_v12 = vpack.c.bf16 %v1934_v8, %v1930_v0  ;;  %2367 = vmatpush1.bf16.msra.mxu0 %v6245_v54  ;;  %v1608_v13 = vpop.f32.mrb[8].mxu0  ;;  %v1900_v14 = vpop.f32.mrb[8].mxu1 }
 0x1c6   :  { %v5648_v17 = vadd.f32 %v1608_v13, %v7758_v3  ;;  %v5664_v18 = vadd.f32 %v1900_v14, %v7761_v4  ;;  %v1610_v19 = vpop.f32.mrb[9].mxu0  ;;  %v1902_v20 = vpop.f32.mrb[9].mxu1  ;;  %2368 = vmatprep.subr.bf16.mxu0 %v6250_v59  ;;  %v6257_v13 = vld [vmem:[%s8885_s4 + $0x150] ss:$8 sps:$4 sm:$0xff]  }
 0x1c7   :  { %v5649_v22 = vadd.f32 %v1610_v19, %v7764_v5  ;;  %v5665_v23 = vadd.f32 %v1902_v20, %v7767_v6  ;;  %v1612_v24 = vpop.f32.mrb[10].mxu0  ;;  %v1904_v25 = vpop.f32.mrb[10].mxu1  ;;  %2333 = vmatprep.mubr.bf16.mxu0 %v1956_v11 }
 0x1c8   :  { %v5650_v26 = vadd.f32 %v1612_v24, %v7758_v3  ;;  %v5666_v27 = vadd.f32 %v1904_v25, %v7761_v4  ;;  %v1614_v28 = vpop.f32.mrb[11].mxu0  ;;  %v1906_v29 = vpop.f32.mrb[11].mxu1  ;;  %2334 = vmatmul.mubr.bf16.gmra.mrb[20].mxu0 %v1955_v9  ;;  %v1935_v34 = vmax.f32 %v5648_v17, 0.0  ;;  %v1937_v36 = vmax.f32 %v5664_v18, 0.0  ;;  %v6260_v24 = vld [vmem:[%s8885_s4 + $0x160] ss:$8 sps:$4 sm:$0xff]  }
 0x1c9   :  { %v5651_v30 = vadd.f32 %v1614_v28, %v7764_v5  ;;  %v5667_v31 = vadd.f32 %v1906_v29, %v7767_v6  ;;  %2369 = vmatpush1.bf16.msra.mxu0 %v6248_v16  ;;  %v1936_v40 = vmax.f32 %v5649_v22, 0.0  ;;  %v1938_v41 = vmax.f32 %v5665_v23, 0.0  ;;  %v6265_v25 = vld [vmem:[%s8885_s4 + $0x174] ss:$8 sps:$4 sm:$0xff]   ;;  %v6266_v28 = vld [vmem:[%s8885_s4 + $0x180] ss:$8 sps:$4 sm:$0xff]  }
 0x1ca   :  { %v1939_v37 = vmax.f32 %v5650_v26, 0.0  ;;  %v1941_v38 = vmax.f32 %v5666_v27, 0.0  ;;  %2370 = vmatprep.subr.bf16.mxu0 %v6253_v21  ;;  %v6263_v26 = vld [vmem:[%s8885_s4 + $0x170] ss:$8 sps:$4 sm:$0xff]   ;;  %v6268_v27 = vld [vmem:[%s8885_s4 + $0x184] ss:$8 sps:$4 sm:$0xff]  }
 0x1cb   :  { %v1940_v42 = vmax.f32 %v5651_v30, 0.0  ;;  %v1942_v43 = vmax.f32 %v5667_v31, 0.0  ;;  %v6284_v31 = vld [vmem:[%s8889_s8 + $0xc] ss:$28 sps:$4 sm:$0xff]  }
 0x1cc   :  { %v1959_v44 = vpack.c.bf16 %v1939_v37, %v1935_v34  ;;  %v1961_v45 = vpack.c.bf16 %v1941_v38, %v1937_v36  ;;  %v6288_v34 = vld [vmem:[%s8889_s8 + $0x40] ss:$28 sps:$4 sm:$0xff]   ;;  %v6294_v37 = vld [vmem:[%s8889_s8 + $0x78] ss:$28 sps:$4 sm:$0xff]  }
 0x1cd   :  { %v1960_v46 = vpack.c.bf16 %v1940_v42, %v1936_v40  ;;  %v1962_v47 = vpack.c.bf16 %v1942_v43, %v1938_v41  ;;  %2371 = vmatpush1.bf16.msra.mxu0 %v6251_v32  ;;  %v1618_v48 = vpop.f32.mrb[12].mxu0  ;;  %v1910_v49 = vpop.f32.mrb[12].mxu1  ;;  %v6290_v32 = vld [vmem:[%s8889_s8 + $0x44] ss:$28 sps:$4 sm:$0xff]   ;;  %v6296_v36 = vld [vmem:[%s8889_s8 + $0x7c] ss:$28 sps:$4 sm:$0xff]  }
 0x1ce   :  { %v5652_v51 = vadd.f32 %v1618_v48, %v7758_v3  ;;  %v5668_v52 = vadd.f32 %v1910_v49, %v7761_v4  ;;  %v1620_v53 = vpop.f32.mrb[13].mxu0  ;;  %v1912_v54 = vpop.f32.mrb[13].mxu1  ;;  %2372 = vmatprep.subr.bf16.mxu0 %v6256_v39  ;;  %v6302_v38 = vld [vmem:[%s8889_s8 + $0xb4] ss:$28 sps:$4 sm:$0xff]   ;;  %v6308_v40 = vld [vmem:[%s8889_s8 + $0xec] ss:$28 sps:$4 sm:$0xff]  }
 0x1cf   :  { %v5653_v56 = vadd.f32 %v1620_v53, %v7764_v5  ;;  %v5669_v57 = vadd.f32 %v1912_v54, %v7767_v6  ;;  %v1622_v58 = vpop.f32.mrb[14].mxu0  ;;  %v1914_v59 = vpop.f32.mrb[14].mxu1  ;;  %2343 = vmatprep.mubr.bf16.mxu0 %v1960_v46  ;;  %v6300_v39 = vld [vmem:[%s8889_s8 + $0xb0] ss:$28 sps:$4 sm:$0xff]   ;;  %v6306_v41 = vld [vmem:[%s8889_s8 + $0xe8] ss:$28 sps:$4 sm:$0xff]  }
 0x1d0   :  { %v5654_v60 = vadd.f32 %v1622_v58, %v7758_v3  ;;  %v5670_v0 = vadd.f32 %v1914_v59, %v7761_v4  ;;  %v1624_v7 = vpop.f32.mrb[15].mxu0  ;;  %v1916_v8 = vpop.f32.mrb[15].mxu1  ;;  %2344 = vmatmul.mubr.bf16.gmra.mrb[24].mxu0 %v1959_v44  ;;  %v1943_v14 = vmax.f32 %v5652_v51, 0.0  ;;  %v1945_v16 = vmax.f32 %v5668_v52, 0.0  ;;  %v6262_v3 = vld [vmem:[%s8885_s4 + $0x164] ss:$8 sps:$4 sm:$0xff]  }
 0x1d1   :  { %v5655_v9 = vadd.f32 %v1624_v7, %v7764_v5  ;;  %v5671_v11 = vadd.f32 %v1916_v8, %v7767_v6  ;;  %2373 = vmatpush1.bf16.msra.mxu0 %v6254_v50  ;;  %v1944_v4 = vmax.f32 %v5653_v56, 0.0  ;;  %v1946_v19 = vmax.f32 %v5669_v57, 0.0  ;;  %v6314_v42 = vld [vmem:[%s8889_s8 + $0x124] ss:$28 sps:$4 sm:$0xff]   ;;  %v6320_v44 = vld [vmem:[%s8889_s8 + $0x15c] ss:$28 sps:$4 sm:$0xff]  }
 0x1d2   :  { %v1947_v17 = vmax.f32 %v5654_v60, 0.0  ;;  %v1949_v18 = vmax.f32 %v5670_v0, 0.0  ;;  %2374 = vmatprep.subr.bf16.mxu0 %v6259_v55  ;;  %v6312_v43 = vld [vmem:[%s8889_s8 + $0x120] ss:$28 sps:$4 sm:$0xff]   ;;  %v6326_v46 = vld [vmem:[%s8889_s8 + $0x194] ss:$28 sps:$4 sm:$0xff]  }
 0x1d3   :  { %v1948_v20 = vmax.f32 %v5655_v9, 0.0  ;;  %v1950_v5 = vmax.f32 %v5671_v11, 0.0  ;;  %v6332_v48 = vld [vmem:[%s8889_s8 + $0x1cc] ss:$28 sps:$4 sm:$0xff]   ;;  %v6338_v50 = vld [vmem:[%s8889_s8 + $0x204] ss:$28 sps:$4 sm:$0xff]  }
 0x1d4   :  { %v1963_v21 = vpack.c.bf16 %v1947_v17, %v1943_v14  ;;  %v1965_v6 = vpack.c.bf16 %v1949_v18, %v1945_v16  ;;  %v6330_v49 = vld [vmem:[%s8889_s8 + $0x1c8] ss:$28 sps:$4 sm:$0xff]   ;;  %v6336_v51 = vld [vmem:[%s8889_s8 + $0x200] ss:$28 sps:$4 sm:$0xff]   ;;  %v6342_v54 = vld [vmem:[%s8889_s8 + $0x238] ss:$28 sps:$4 sm:$0xff]  }
 0x1d5   :  { %v1964_v22 = vpack.c.bf16 %v1948_v20, %v1944_v4  ;;  %v1966_v23 = vpack.c.bf16 %v1950_v5, %v1946_v19  ;;  %2375 = vmatpush1.bf16.msra.mxu0 %v6257_v13  ;;  %v6344_v52 = vld [vmem:[%s8889_s8 + $0x23c] ss:$28 sps:$4 sm:$0xff]   ;;  %v2017_v53 = vld [vmem:[%s8886_s5] sm:$0x3]  ;;  %v6350_v55 = vld [vmem:[%s8889_s8 + $0x274] ss:$28 sps:$4 sm:$0xff]  }
 0x1d6   :  { %2376 = vmatprep.subr.bf16.mxu0 %v6262_v3  ;;  %v7949_v56 = vrot.slane %v2017_v53, %v7743_v62  ;;  %v7952_v57 = vrot.slane %v2017_v53, %v7752_v1  ;;  %v6348_v58 = vld [vmem:[%s8889_s8 + $0x270] ss:$28 sps:$4 sm:$0xff]   ;;  %v6354_v14 = vld [vmem:[%s8889_s8 + $0x2a8] ss:$28 sps:$4 sm:$0xff]   ;;  %v6360_v19 = vld [vmem:[%s8889_s8 + $0x2e0] ss:$28 sps:$4 sm:$0xff]  }
 0x1d7   :  { %2353 = vmatprep.mubr.bf16.mxu0 %v1964_v22  ;;  %v6356_v60 = vld [vmem:[%s8889_s8 + $0x2ac] ss:$28 sps:$4 sm:$0xff]   ;;  %v6362_v18 = vld [vmem:[%s8889_s8 + $0x2e4] ss:$28 sps:$4 sm:$0xff]  }
 0x1d8   :  { %2354 = vmatmul.mubr.bf16.gmra.mrb[28].mxu0 %v1963_v21 }
 0x1d9   :  { %2377 = vmatpush1.bf16.msra.mxu0 %v6260_v24  ;;  %5323 = vmatprep.mubr.msk.bf16.mxu0 %vm1322_vm0, %v7779_v35  ;;  %v2493_v35 = vld [vmem:[%s8887_s6 + $0x20] sm:$0x33] }
 0x1da   :  { %2378 = vmatprep.subr.bf16.mxu0 %v6265_v25  ;;  %v5332_v29 = vcombine.high %v2493_v35, %v2493_v35  ;;  %v5331_v30 = vcombine.low %v2493_v35, %v2493_v35 }
 0x1dc   :  { %5335 = vmatprep.subr.msk.bf16.mxu1 %vm2560_vm1, %v5332_v29  ;;  %v2437_v29 = vld [vmem:[%s8882_s1] sm:$0xff] }
 0x1dd   :  { %2379 = vmatpush1.bf16.msra.mxu0 %v6263_v26 }
 0x1de   :  { %2380 = vmatprep.subr.bf16.mxu0 %v6268_v27 }
 0x1e1   :  { %2381 = vmatpush1.bf16.msra.mxu0 %v6266_v28 }
 0x1e2   :  { %4062 = vmatprep.subr.bf16.mxu0 %v6284_v31 }
 0x1e4   :  { %2397 = vmatmul.mubr.bf16.vlgmr.msra.gmra.mrb[16].mxu0 %v7777_v33  ;;  %v2562_v33 = vsel %vm2560_vm1, %v5331_v30, 0 }
 0x1e5   :  { %5324 = vmatprep.mubr.msk.bf16.mxu0 %vm1322_vm0, %v7803_v12  ;;  %2576 = vmatpush1.bf16.msra.mxu1 %v2562_v33  ;;  %v6282_v12 = vld [vmem:[%s8889_s8 + $0x8] ss:$28 sps:$4 sm:$0xff]  }
 0x1e6   :  { %4063 = vmatpush1.bf16.msra.mxu0 %v6282_v12 }
 0x1e7   :  { %4064 = vmatprep.subr.bf16.mxu0 %v6290_v32  ;;  %v2438_v32 = vld [vmem:[%s8882_s1 + $0x8] sm:$0xff] }
 0x1ea   :  { %4065 = vmatpush1.bf16.msra.mxu0 %v6288_v34 }
 0x1eb   :  { %4066 = vmatprep.subr.bf16.mxu0 %v6296_v36 }
 0x1ec   :  { %2407 = vmatmul.mubr.bf16.gmra.mrb[20].mxu0 %v7801_v10  ;;  %v6276_v10 = vld [vmem:[%s8887_s6 + $0xc] ss:$16 sps:$4 sm:$0xff]  }
 0x1ed   :  { %5325 = vmatprep.mubr.msk.bf16.mxu0 %vm1322_vm0, %v1962_v47  ;;  %2646 = vmatprep.subr.bf16.mxu1 %v6276_v10  ;;  %v6324_v47 = vld [vmem:[%s8889_s8 + $0x190] ss:$28 sps:$4 sm:$0xff]  }
 0x1ee   :  { %4067 = vmatpush1.bf16.msra.mxu0 %v6294_v37 }
 0x1ef   :  { %4068 = vmatprep.subr.bf16.mxu0 %v6302_v38 }
 0x1f2   :  { %4069 = vmatpush1.bf16.msra.mxu0 %v6300_v39 }
 0x1f3   :  { %4070 = vmatprep.subr.bf16.mxu0 %v6308_v40 }
 0x1f4   :  { %2417 = vmatmul.mubr.bf16.gmra.mrb[24].mxu0 %v1961_v45  ;;  %v6318_v45 = vld [vmem:[%s8889_s8 + $0x158] ss:$28 sps:$4 sm:$0xff]  }
 0x1f5   :  { %5326 = vmatprep.mubr.msk.bf16.mxu0 %vm1322_vm0, %v1966_v23 }
 0x1f6   :  { %4071 = vmatpush1.bf16.msra.mxu0 %v6306_v41 }
 0x1f7   :  { %4072 = vmatprep.subr.bf16.mxu0 %v6314_v42 }
 0x1fa   :  { %4073 = vmatpush1.bf16.msra.mxu0 %v6312_v43 }
 0x1fb   :  { %4074 = vmatprep.subr.bf16.mxu0 %v6320_v44 }
 0x1fc   :  { %2427 = vmatmul.mubr.bf16.gmra.mrb[28].mxu0 %v1965_v6 }
 0x1fe   :  { %4075 = vmatpush1.bf16.msra.mxu0 %v6318_v45 }
 0x1ff   :  { %4076 = vmatprep.subr.bf16.mxu0 %v6326_v46 }
 0x202   :  { %4077 = vmatpush1.bf16.msra.mxu0 %v6324_v47  ;;  %v2494_v47 = vld [vmem:[%s8887_s6 + $0x28] sm:$0x33] }
 0x203   :  { %4078 = vmatprep.subr.bf16.mxu0 %v6332_v48 }
 0x206   :  { %4079 = vmatpush1.bf16.msra.mxu0 %v6330_v49 }
 0x207   :  { %4080 = vmatprep.subr.bf16.mxu0 %v6338_v50 }
 0x20a   :  { %4081 = vmatpush1.bf16.msra.mxu0 %v6336_v51  ;;  %v6274_v51 = vld [vmem:[%s8887_s6 + $0x8] ss:$16 sps:$4 sm:$0xff]  }
 0x20b   :  { %4082 = vmatprep.subr.bf16.mxu0 %v6344_v52  ;;  %v2439_v52 = vld [vmem:[%s8882_s1 + $0x10] sm:$0xff] }
 0x20e   :  { %4083 = vmatpush1.bf16.msra.mxu0 %v6342_v54 }
 0x20f   :  { %4084 = vmatprep.subr.bf16.mxu0 %v6350_v55 }
 0x212   :  { %4085 = vmatpush1.bf16.msra.mxu0 %v6348_v58  ;;  %v5334_v58 = vcombine.high %v2494_v47, %v2494_v47 }
 0x213   :  { %4086 = vmatprep.subr.bf16.mxu0 %v6356_v60 }
 0x216   :  { %4087 = vmatpush1.bf16.msra.mxu0 %v6354_v14 }
 0x217   :  { %4088 = vmatprep.subr.bf16.mxu0 %v6362_v18 }
 0x21a   :  { %4089 = vmatpush1.bf16.msra.mxu0 %v6360_v19 }
 0x2b7   :  { %v2398_v59 = vpop.f32.mrb[16].mxu0 }
 0x2b8   :  { %v5672_v0 = vadd.f32 %v2398_v59, %v7949_v56  ;;  %v2400_v7 = vpop.f32.mrb[17].mxu0  ;;  %v5333_v59 = vcombine.low %v2494_v47, %v2494_v47  ;;  %v6309_v47 = vld [vmem:[%s8889_s8 + $0x118] ss:$28 sps:$4 sm:$0xff]  }
 0x2b9   :  { %v5673_v8 = vadd.f32 %v2400_v7, %v7952_v57  ;;  %v2402_v9 = vpop.f32.mrb[18].mxu0 }
 0x2ba   :  { %5029 = vst.msk [vmem:[%s8892_s11] sm:$0xff] %vm2547_vm2, %v5672_v0  ;;  %v5674_v11 = vadd.f32 %v2402_v9, %v7949_v56  ;;  %v2404_v13 = vpop.f32.mrb[19].mxu0 }
 0x2bb   :  { %v2445_v16 = vmul.f32 0.5, %v5673_v8  ;;  %5037 = vst.msk [vmem:[%s8893_s12] sm:$0xff] %vm2547_vm2, %v5673_v8  ;;  %v5675_v17 = vadd.f32 %v2404_v13, %v7952_v57  ;;  %v2440_v8 = vld [vmem:[%s8882_s1 + $0x18] sm:$0xff] }
 0x2bc   :  { %5030 = vst.msk [vmem:[%s8892_s11 + $0x8] sm:$0xff] %vm2547_vm2, %v5674_v11 }
 0x2bd   :  { %v2453_v3 = vmul.f32 1.442695, %v2445_v16  ;;  %v2446_v4 = vmul.f32 0.5, %v5675_v17  ;;  %5038 = vst.msk [vmem:[%s8893_s12 + $0x8] sm:$0xff] %vm2547_vm2, %v5675_v17 }
 0x2bf   :  { %6529 = vpow2.f32 %v2453_v3  ;;  %v2455_v20 = vmul.f32 1.442695, %v2446_v4  ;;  %v2408_v5 = vpop.f32.mrb[20].mxu0  ;;  %v2568_v3 = vsel %vm2560_vm1, %v5333_v59, 0  ;;  %v6281_v4 = vld [vmem:[%s8889_s8 + $0x4] ss:$28 sps:$4 sm:$0xff]  }
 0x2c0   :  { %v7990_v21 = vadd.f32 %v2408_v5, %v7949_v56  ;;  %v2410_v6 = vpop.f32.mrb[21].mxu0  ;;  %v6339_v59 = vld [vmem:[%s8889_s8 + $0x230] ss:$28 sps:$4 sm:$0xff]  }
 0x2c1   :  { %6531 = vpow2.f32 %v2455_v20  ;;  %v5677_v22 = vadd.f32 %v2410_v6, %v7952_v57  ;;  %v2412_v23 = vpop.f32.mrb[22].mxu0 }
 0x2c2   :  { %5031 = vst.msk [vmem:[%s8892_s11 + $0x10] sm:$0xff] %vm2547_vm2, %v7990_v21  ;;  %v7999_v24 = vadd.f32 %v2412_v23, %v7949_v56  ;;  %v2414_v25 = vpop.f32.mrb[23].mxu0  ;;  %v2442_v23 = vld [vmem:[%s8882_s1 + $0x28] sm:$0xff] }
 0x2c3   :  { %v2447_v26 = vmul.f32 0.5, %v5677_v22  ;;  %5039 = vst.msk [vmem:[%s8893_s12 + $0x10] sm:$0xff] %vm2547_vm2, %v5677_v22  ;;  %v5679_v27 = vadd.f32 %v2414_v25, %v7952_v57 }
 0x2c4   :  { %5032 = vst.msk [vmem:[%s8892_s11 + $0x18] sm:$0xff] %vm2547_vm2, %v7999_v24 }
 0x2c5   :  { %v2457_v28 = vmul.f32 1.442695, %v2447_v26  ;;  %v2448_v35 = vmul.f32 0.5, %v5679_v27  ;;  %5040 = vst.msk [vmem:[%s8893_s12 + $0x18] sm:$0xff] %vm2547_vm2, %v5679_v27 }
 0x2c7   :  { %6533 = vpow2.f32 %v2457_v28  ;;  %v2459_v30 = vmul.f32 1.442695, %v2448_v35  ;;  %v2418_v33 = vpop.f32.mrb[24].mxu0  ;;  %v2443_v35 = vld [vmem:[%s8882_s1 + $0x30] sm:$0xff] }
 0x2c8   :  { %v8019_v10 = vadd.f32 %v2418_v33, %v7949_v56  ;;  %v2420_v12 = vpop.f32.mrb[25].mxu0  ;;  %v2444_v33 = vld [vmem:[%s8882_s1 + $0x38] sm:$0xff] }
 0x2c9   :  { %v6530_v31 = vpop.eup %6529  ;;  %6535 = vpow2.f32 %v2459_v30  ;;  %v5681_v34 = vadd.f32 %v2420_v12, %v7952_v57  ;;  %v2422_v36 = vpop.f32.mrb[26].mxu0 }
 0x2ca   :  { %v2469_v37 = vmul.f32 %v6530_v31, %v2437_v29  ;;  %5033 = vst.msk [vmem:[%s8892_s11 + $0x20] sm:$0xff] %vm2547_vm2, %v8019_v10  ;;  %v8031_v38 = vadd.f32 %v2422_v36, %v7949_v56  ;;  %v2424_v39 = vpop.f32.mrb[27].mxu0 }
 0x2cb   :  { %v6532_v40 = vpop.eup %6531  ;;  %v2449_v41 = vmul.f32 0.5, %v5681_v34  ;;  %5041 = vst.msk [vmem:[%s8893_s12 + $0x20] sm:$0xff] %vm2547_vm2, %v5681_v34  ;;  %v5683_v42 = vadd.f32 %v2424_v39, %v7952_v57  ;;  %v6285_v39 = vld [vmem:[%s8889_s8 + $0x38] ss:$28 sps:$4 sm:$0xff]  }
 0x2cc   :  { %v2477_v43 = vadd.f32 %v5672_v0, %v2469_v37  ;;  %v2470_v44 = vmul.f32 %v6532_v40, %v2438_v32  ;;  %5034 = vst.msk [vmem:[%s8892_s11 + $0x28] sm:$0xff] %vm2547_vm2, %v8031_v38  ;;  %v6279_v37 = vld [vmem:[%s8889_s8] ss:$28 sps:$4 sm:$0xff]   ;;  %v6293_v40 = vld [vmem:[%s8889_s8 + $0x74] ss:$28 sps:$4 sm:$0xff]  }
 0x2cd   :  { %v2461_v45 = vmul.f32 1.442695, %v2449_v41  ;;  %v2450_v46 = vmul.f32 0.5, %v5683_v42  ;;  %5042 = vst.msk [vmem:[%s8893_s12 + $0x28] sm:$0xff] %vm2547_vm2, %v5683_v42  ;;  %v6291_v41 = vld [vmem:[%s8889_s8 + $0x70] ss:$28 sps:$4 sm:$0xff]  }
 0x2ce   :  { %v2478_v48 = vadd.f32 %v5674_v11, %v2470_v44  ;;  %v6299_v42 = vld [vmem:[%s8889_s8 + $0xac] ss:$28 sps:$4 sm:$0xff]   ;;  %v6305_v44 = vld [vmem:[%s8889_s8 + $0xe4] ss:$28 sps:$4 sm:$0xff]  }
 0x2cf   :  { %6537 = vpow2.f32 %v2461_v45  ;;  %v2463_v49 = vmul.f32 1.442695, %v2450_v46  ;;  %v2428_v50 = vpop.f32.mrb[28].mxu0  ;;  %v6303_v45 = vld [vmem:[%s8889_s8 + $0xe0] ss:$28 sps:$4 sm:$0xff]  }
 0x2d0   :  { %v5684_v53 = vadd.f32 %v2428_v50, %v7949_v56  ;;  %v2430_v54 = vpop.f32.mrb[29].mxu0  ;;  %v2485_v55 = vpack.c.bf16 %v2478_v48, %v2477_v43  ;;  %v6297_v43 = vld [vmem:[%s8889_s8 + $0xa8] ss:$28 sps:$4 sm:$0xff]   ;;  %v6311_v46 = vld [vmem:[%s8889_s8 + $0x11c] ss:$28 sps:$4 sm:$0xff]  }
 0x2d1   :  { %v6534_v60 = vpop.eup %6533  ;;  %6539 = vpow2.f32 %v2463_v49  ;;  %v5685_v0 = vadd.f32 %v2430_v54, %v7952_v57  ;;  %v2432_v7 = vpop.f32.mrb[30].mxu0  ;;  %v6317_v48 = vld [vmem:[%s8889_s8 + $0x154] ss:$28 sps:$4 sm:$0xff]   ;;  %v6323_v50 = vld [vmem:[%s8889_s8 + $0x18c] ss:$28 sps:$4 sm:$0xff]  }
 0x2d2   :  { %5035 = vst.msk [vmem:[%s8892_s11 + $0x30] sm:$0xff] %vm2547_vm2, %v5684_v53  ;;  %v5686_v9 = vadd.f32 %v2432_v7, %v7949_v56  ;;  %v2434_v11 = vpop.f32.mrb[31].mxu0  ;;  %5336 = vmatmul.mubr.msk.bf16.vlgmr.msra.gmra.mrb[16].mxu1 %vm2547_vm2, %v2485_v55  ;;  %v2471_v13 = vmul.f32 %v6534_v60, %v2439_v52  ;;  %v6315_v49 = vld [vmem:[%s8889_s8 + $0x150] ss:$28 sps:$4 sm:$0xff]   ;;  %v6329_v52 = vld [vmem:[%s8889_s8 + $0x1c4] ss:$28 sps:$4 sm:$0xff]  }
 0x2d3   :  { %v6536_v14 = vpop.eup %6535  ;;  %v2451_v16 = vmul.f32 0.5, %v5685_v0  ;;  %5043 = vst.msk [vmem:[%s8893_s12 + $0x30] sm:$0xff] %vm2547_vm2, %v5685_v0  ;;  %v5687_v17 = vadd.f32 %v2434_v11, %v7952_v57  ;;  %2647 = vmatpush1.bf16.msra.mxu1 %v6274_v51  ;;  %2615 = vmatprep.mubr.bf16.mxu1 %v6793_v15  ;;  %v6321_v51 = vld [vmem:[%s8889_s8 + $0x188] ss:$28 sps:$4 sm:$0xff]   ;;  %v6335_v54 = vld [vmem:[%s8889_s8 + $0x1fc] ss:$28 sps:$4 sm:$0xff]  }
 0x2d4   :  { %5036 = vst.msk [vmem:[%s8892_s11 + $0x38] sm:$0xff] %vm2547_vm2, %v5686_v9  ;;  %v2472_v56 = vmul.f32 %v6536_v14, %v2440_v8  ;;  %v2479_v18 = vadd.f32 %v7990_v21, %v2471_v13  ;;  %5340 = vmatprep.subr.msk.bf16.mxu1 %vm2560_vm1, %v5334_v58  ;;  %v2441_v21 = vld [vmem:[%s8882_s1 + $0x20] sm:$0xff]  ;;  %v6341_v58 = vld [vmem:[%s8889_s8 + $0x234] ss:$28 sps:$4 sm:$0xff]   ;;  %v6347_v60 = vld [vmem:[%s8889_s8 + $0x26c] ss:$28 sps:$4 sm:$0xff]  }
 0x2d5   :  { %v2465_v57 = vmul.f32 1.442695, %v2451_v16  ;;  %v2452_v19 = vmul.f32 0.5, %v5687_v17  ;;  %5044 = vst.msk [vmem:[%s8893_s12 + $0x38] sm:$0xff] %vm2547_vm2, %v5687_v17  ;;  %v6345_v0 = vld [vmem:[%s8889_s8 + $0x268] ss:$28 sps:$4 sm:$0xff]  }
 0x2d6   :  { %v2480_v20 = vadd.f32 %v7999_v24, %v2472_v56  ;;  %v6353_v7 = vld [vmem:[%s8889_s8 + $0x2a4] ss:$28 sps:$4 sm:$0xff]   ;;  %v6357_v11 = vld [vmem:[%s8889_s8 + $0x2d8] ss:$28 sps:$4 sm:$0xff]   ;;  %v6363_v17 = vld [vmem:[%s8889_s8 + $0x310] ss:$28 sps:$4 sm:$0xff]  }
 0x2d7   :  { %6541 = vpow2.f32 %v2465_v57  ;;  %v2467_v5 = vmul.f32 1.442695, %v2452_v19  ;;  %2649 = vmatpush1.bf16.msra.mxu1 %v2568_v3  ;;  %v6351_v8 = vld [vmem:[%s8889_s8 + $0x2a0] ss:$28 sps:$4 sm:$0xff]   ;;  %v6365_v13 = vld [vmem:[%s8889_s8 + $0x314] ss:$28 sps:$4 sm:$0xff]  }
 0x2d8   :  { %v2486_v6 = vpack.c.bf16 %v2480_v20, %v2479_v18  ;;  %3916 = vmatprep.subr.bf16.mxu1 %v6281_v4  ;;  %v6368_v14 = vld [vmem:[%s8889_s8 + $0x31c] ss:$28 sps:$4 sm:$0xff]   ;;  %v6371_v56 = vld [vmem:[%s8889_s8 + $0x34c] ss:$28 sps:$4 sm:$0xff]   ;;  %v6374_v18 = vld [vmem:[%s8889_s8 + $0x354] ss:$28 sps:$4 sm:$0xff]  }
 0x2d9   :  { %v6538_v22 = vpop.eup %6537  ;;  %6543 = vpow2.f32 %v2467_v5  ;;  %v6366_v16 = vld [vmem:[%s8889_s8 + $0x318] ss:$28 sps:$4 sm:$0xff]   ;;  %4090 = vmatprep.subr.bf16.mxu0 %v6368_v14  ;;  %v6372_v3 = vld [vmem:[%s8889_s8 + $0x350] ss:$28 sps:$4 sm:$0xff]   ;;  %v6369_v4 = vld [vmem:[%s8889_s8 + $0x348] ss:$28 sps:$4 sm:$0xff]  }
 0x2da   :  { %5337 = vmatmul.mubr.msk.bf16.gmra.mrb[20].mxu1 %vm2547_vm2, %v2486_v6  ;;  %v2473_v25 = vmul.f32 %v6538_v22, %v2441_v21  ;;  %4091 = vmatpush1.bf16.msra.mxu0 %v6366_v16  ;;  %v6377_v57 = vld [vmem:[%s8889_s8 + $0x384] ss:$28 sps:$4 sm:$0xff]   ;;  %v6380_v19 = vld [vmem:[%s8889_s8 + $0x38c] ss:$28 sps:$4 sm:$0xff]  }
 0x2db   :  { %v6540_v26 = vpop.eup %6539  ;;  %2625 = vmatprep.mubr.bf16.mxu1 %v6793_v15  ;;  %4092 = vmatprep.subr.bf16.mxu0 %v6374_v18  ;;  %v8229_v20 = vld [vmem:[%s8888_s7] sm:$0xf] }
 0x2dc   :  { %v2474_v24 = vmul.f32 %v6540_v26, %v2442_v23  ;;  %v2481_v27 = vadd.f32 %v8019_v10, %v2473_v25  ;;  %v8233_v5 = vrot.slane %v8229_v20, %v7743_v62  ;;  %v8237_v21 = vrot.slane %v8229_v20, %v7752_v1 }
 0x2de   :  { %v2482_v28 = vadd.f32 %v8031_v38, %v2474_v24  ;;  %v6287_v38 = vld [vmem:[%s8889_s8 + $0x3c] ss:$28 sps:$4 sm:$0xff]   ;;  %4093 = vmatpush1.bf16.msra.mxu0 %v6372_v3 }
 0x2df   :  { %4135 = vmatprep.subr.bf16.mxu0 %v6380_v19 }
 0x2e0   :  { %v2487_v29 = vpack.c.bf16 %v2482_v28, %v2481_v27 }
 0x2e1   :  { %v6542_v30 = vpop.eup %6541 }
 0x2e2   :  { %5338 = vmatmul.mubr.msk.bf16.gmra.mrb[24].mxu1 %vm2547_vm2, %v2487_v29  ;;  %v2475_v12 = vmul.f32 %v6542_v30, %v2443_v35 }
 0x2e3   :  { %v6544_v31 = vpop.eup %6543  ;;  %2635 = vmatprep.mubr.bf16.mxu1 %v6793_v15 }
 0x2e4   :  { %v2476_v32 = vmul.f32 %v6544_v31, %v2444_v33  ;;  %v2483_v10 = vadd.f32 %v5684_v53, %v2475_v12  ;;  %v6327_v53 = vld [vmem:[%s8889_s8 + $0x1c0] ss:$28 sps:$4 sm:$0xff]  }
 0x2e6   :  { %v2484_v34 = vadd.f32 %v5686_v9, %v2476_v32  ;;  %v6359_v9 = vld [vmem:[%s8889_s8 + $0x2dc] ss:$28 sps:$4 sm:$0xff]  }
 0x2e8   :  { %v2488_v36 = vpack.c.bf16 %v2484_v34, %v2483_v10  ;;  %v6375_v10 = vld [vmem:[%s8889_s8 + $0x380] ss:$28 sps:$4 sm:$0xff]   ;;  %v6378_v34 = vld [vmem:[%s8889_s8 + $0x388] ss:$28 sps:$4 sm:$0xff]  }
 0x2ea   :  { %5339 = vmatmul.mubr.msk.bf16.gmra.mrb[28].mxu1 %vm2547_vm2, %v2488_v36 }
 0x2eb   :  { %2678 = vmatprep.mubr.bf16.mxu1 %v6793_v15 }
 0x2f2   :  { %5341 = vmatmul.mubr.msk.bf16.vlgmr.msra.gmra.mrb[32].mxu1 %vm2547_vm2, %v2485_v55  ;;  %v6333_v55 = vld [vmem:[%s8889_s8 + $0x1f8] ss:$28 sps:$4 sm:$0xff]  }
 0x2f3   :  { %2688 = vmatprep.mubr.bf16.mxu1 %v6793_v15  ;;  %3917 = vmatpush1.bf16.msra.mxu1 %v6279_v37 }
 0x2f4   :  { %3918 = vmatprep.subr.bf16.mxu1 %v6287_v38  ;;  %v6383_v38 = vld [vmem:[%s8889_s8 + $0x3bc] ss:$28 sps:$4 sm:$0xff]  }
 0x2f7   :  { %3919 = vmatpush1.bf16.msra.mxu1 %v6285_v39  ;;  %v6386_v39 = vld [vmem:[%s8889_s8 + $0x3c4] ss:$28 sps:$4 sm:$0xff]  }
 0x2f8   :  { %3920 = vmatprep.subr.bf16.mxu1 %v6293_v40 }
 0x2fa   :  { %5342 = vmatmul.mubr.msk.bf16.gmra.mrb[36].mxu1 %vm2547_vm2, %v2486_v6 }
 0x2fb   :  { %2698 = vmatprep.mubr.bf16.mxu1 %v6793_v15  ;;  %3921 = vmatpush1.bf16.msra.mxu1 %v6291_v41 }
 0x2fc   :  { %3922 = vmatprep.subr.bf16.mxu1 %v6299_v42 }
 0x2ff   :  { %3923 = vmatpush1.bf16.msra.mxu1 %v6297_v43 }
 0x300   :  { %3924 = vmatprep.subr.bf16.mxu1 %v6305_v44 }
 0x302   :  { %5343 = vmatmul.mubr.msk.bf16.gmra.mrb[40].mxu1 %vm2547_vm2, %v2487_v29 }
 0x303   :  { %2708 = vmatprep.mubr.bf16.mxu1 %v6793_v15  ;;  %3925 = vmatpush1.bf16.msra.mxu1 %v6303_v45  ;;  %v6381_v45 = vld [vmem:[%s8889_s8 + $0x3b8] ss:$28 sps:$4 sm:$0xff]  }
 0x304   :  { %3926 = vmatprep.subr.bf16.mxu1 %v6311_v46  ;;  %v6384_v46 = vld [vmem:[%s8889_s8 + $0x3c0] ss:$28 sps:$4 sm:$0xff]  }
 0x307   :  { %3927 = vmatpush1.bf16.msra.mxu1 %v6309_v47 }
 0x308   :  { %3928 = vmatprep.subr.bf16.mxu1 %v6317_v48 }
 0x30a   :  { %5344 = vmatmul.mubr.msk.bf16.gmra.mrb[44].mxu1 %vm2547_vm2, %v2488_v36 }
 0x30b   :  { %3929 = vmatpush1.bf16.msra.mxu1 %v6315_v49  ;;  %v6389_v49 = vld [vmem:[%s8889_s8 + $0x3f4] ss:$28 sps:$4 sm:$0xff]  }
 0x30c   :  { %3930 = vmatprep.subr.bf16.mxu1 %v6323_v50  ;;  %v6392_v50 = vld [vmem:[%s8889_s8 + $0x3fc] ss:$28 sps:$4 sm:$0xff]  }
 0x30f   :  { %3931 = vmatpush1.bf16.msra.mxu1 %v6321_v51 }
 0x310   :  { %3932 = vmatprep.subr.bf16.mxu1 %v6329_v52 }
 0x313   :  { %3933 = vmatpush1.bf16.msra.mxu1 %v6327_v53 }
 0x314   :  { %3934 = vmatprep.subr.bf16.mxu1 %v6335_v54 }
 0x317   :  { %3935 = vmatpush1.bf16.msra.mxu1 %v6333_v55 }
 0x318   :  { %3936 = vmatprep.subr.bf16.mxu1 %v6341_v58  ;;  %v6387_v58 = vld [vmem:[%s8889_s8 + $0x3f0] ss:$28 sps:$4 sm:$0xff]  }
 0x31b   :  { %3937 = vmatpush1.bf16.msra.mxu1 %v6339_v59  ;;  %v6390_v59 = vld [vmem:[%s8889_s8 + $0x3f8] ss:$28 sps:$4 sm:$0xff]  }
 0x31c   :  { %3938 = vmatprep.subr.bf16.mxu1 %v6347_v60 }
 0x31f   :  { %3939 = vmatpush1.bf16.msra.mxu1 %v6345_v0 }
 0x320   :  { %3940 = vmatprep.subr.bf16.mxu1 %v6353_v7  ;;  %v6395_v7 = vld [vmem:[%s8889_s8 + $0x42c] ss:$28 sps:$4 sm:$0xff]  }
 0x323   :  { %3941 = vmatpush1.bf16.msra.mxu1 %v6351_v8  ;;  %v6398_v8 = vld [vmem:[%s8889_s8 + $0x434] ss:$28 sps:$4 sm:$0xff]  }
 0x324   :  { %3942 = vmatprep.subr.bf16.mxu1 %v6359_v9 }
 0x327   :  { %3943 = vmatpush1.bf16.msra.mxu1 %v6357_v11 }
 0x328   :  { %3944 = vmatprep.subr.bf16.mxu1 %v6365_v13 }
 0x32b   :  { %3945 = vmatpush1.bf16.msra.mxu1 %v6363_v17  ;;  %v6393_v17 = vld [vmem:[%s8889_s8 + $0x428] ss:$28 sps:$4 sm:$0xff]  }
 0x32c   :  { %3946 = vmatprep.subr.bf16.mxu1 %v6371_v56  ;;  %v6396_v56 = vld [vmem:[%s8889_s8 + $0x430] ss:$28 sps:$4 sm:$0xff]  }
 0x32f   :  { %3947 = vmatpush1.bf16.msra.mxu1 %v6369_v4  ;;  %v6401_v4 = vld [vmem:[%s8889_s8 + $0x464] ss:$28 sps:$4 sm:$0xff]  }
 0x330   :  { %3989 = vmatprep.subr.bf16.mxu1 %v6377_v57  ;;  %v6404_v57 = vld [vmem:[%s8889_s8 + $0x46c] ss:$28 sps:$4 sm:$0xff]  }
 0x3a5   :  { %v2607_v6 = vpop.f32.mrb[16].mxu1 }
 0x3a6   :  { %v2608_v22 = vadd.f32 %v2607_v6, %v8233_v5  ;;  %v2609_v23 = vpop.f32.mrb[17].mxu1 }
 0x3a7   :  { %v2610_v25 = vadd.f32 %v2609_v23, %v8237_v21  ;;  %v2611_v26 = vpop.f32.mrb[18].mxu1 }
 0x3a8   :  { %v2612_v24 = vadd.f32 %v2611_v26, %v8233_v5  ;;  %v2613_v27 = vpop.f32.mrb[19].mxu1  ;;  %v2719_v35 = vmax.f32 %v2608_v22, 0.0  ;;  %v6399_v26 = vld [vmem:[%s8889_s8 + $0x460] ss:$28 sps:$4 sm:$0xff]  }
 0x3a9   :  { %v2614_v28 = vadd.f32 %v2613_v27, %v8237_v21  ;;  %v2720_v30 = vmax.f32 %v2610_v25, 0.0 }
 0x3aa   :  { %v2723_v29 = vmax.f32 %v2612_v24, 0.0  ;;  %v6402_v24 = vld [vmem:[%s8889_s8 + $0x468] ss:$28 sps:$4 sm:$0xff]  }
 0x3ab   :  { %v2724_v33 = vmax.f32 %v2614_v28, 0.0 }
 0x3ac   :  { %v8243_v12 = vpack.c.bf16 %v2723_v29, %v2719_v35  ;;  %v6407_v35 = vld [vmem:[%s8889_s8 + $0x49c] ss:$28 sps:$4 sm:$0xff]   ;;  %v6410_v29 = vld [vmem:[%s8889_s8 + $0x4a4] ss:$28 sps:$4 sm:$0xff]  }
 0x3ad   :  { %v8245_v31 = vpack.c.bf16 %v2724_v33, %v2720_v30  ;;  %v2617_v32 = vpop.f32.mrb[20].mxu1 }
 0x3ae   :  { %v2618_v36 = vadd.f32 %v2617_v32, %v8233_v5  ;;  %v2619_v37 = vpop.f32.mrb[21].mxu1 }
 0x3af   :  { %v2620_v40 = vadd.f32 %v2619_v37, %v8237_v21  ;;  %v2621_v41 = vpop.f32.mrb[22].mxu1  ;;  %3948 = vmatprep.mubr.bf16.mxu1 %v8245_v31  ;;  %4094 = vmatprep.mubr.bf16.mxu0 %v8245_v31  ;;  %v6408_v37 = vld [vmem:[%s8889_s8 + $0x4a0] ss:$28 sps:$4 sm:$0xff]  }
 0x3b0   :  { %v2622_v42 = vadd.f32 %v2621_v41, %v8233_v5  ;;  %v2623_v43 = vpop.f32.mrb[23].mxu1  ;;  %3949 = vmatmul.mubr.bf16.vlgmr.msra.gmra.mrb[48].mxu1 %v8243_v12  ;;  %4095 = vmatmul.mubr.bf16.vlgmr.msra.gmra.mrb[32].mxu0 %v8243_v12  ;;  %v2727_v47 = vmax.f32 %v2618_v36, 0.0  ;;  %v6405_v36 = vld [vmem:[%s8889_s8 + $0x498] ss:$28 sps:$4 sm:$0xff]  }
 0x3b1   :  { %v2624_v44 = vadd.f32 %v2623_v43, %v8237_v21  ;;  %3990 = vmatpush1.bf16.msra.mxu1 %v6375_v10  ;;  %4136 = vmatpush1.bf16.msra.mxu0 %v6378_v34  ;;  %v2728_v51 = vmax.f32 %v2620_v40, 0.0  ;;  %v6416_v40 = vld [vmem:[%s8889_s8 + $0x4dc] ss:$28 sps:$4 sm:$0xff]   ;;  %v8357_v43 = vrot.slane %v8229_v20, %v7755_v2 }
 0x3b2   :  { %v2731_v48 = vmax.f32 %v2622_v42, 0.0  ;;  %3991 = vmatprep.subr.bf16.mxu1 %v6383_v38  ;;  %4137 = vmatprep.subr.bf16.mxu0 %v6386_v39 }
 0x3b3   :  { %v2732_v52 = vmax.f32 %v2624_v44, 0.0 }
 0x3b4   :  { %v8279_v53 = vpack.c.bf16 %v2731_v48, %v2727_v47  ;;  %v6411_v47 = vld [vmem:[%s8889_s8 + $0x4d0] ss:$28 sps:$4 sm:$0xff]   ;;  %v6414_v48 = vld [vmem:[%s8889_s8 + $0x4d8] ss:$28 sps:$4 sm:$0xff]  }
 0x3b5   :  { %v8281_v54 = vpack.c.bf16 %v2732_v52, %v2728_v51  ;;  %3992 = vmatpush1.bf16.msra.mxu1 %v6381_v45  ;;  %4138 = vmatpush1.bf16.msra.mxu0 %v6384_v46  ;;  %v2627_v55 = vpop.f32.mrb[24].mxu1  ;;  %v6422_v51 = vld [vmem:[%s8889_s8 + $0x514] ss:$28 sps:$4 sm:$0xff]  }
 0x3b6   :  { %v2628_v60 = vadd.f32 %v2627_v55, %v8233_v5  ;;  %v2629_v0 = vpop.f32.mrb[25].mxu1  ;;  %3993 = vmatprep.subr.bf16.mxu1 %v6389_v49  ;;  %4139 = vmatprep.subr.bf16.mxu0 %v6392_v50 }
 0x3b7   :  { %v2630_v9 = vadd.f32 %v2629_v0, %v8237_v21  ;;  %v2631_v11 = vpop.f32.mrb[26].mxu1  ;;  %3958 = vmatprep.mubr.bf16.mxu1 %v8281_v54  ;;  %4104 = vmatprep.mubr.bf16.mxu0 %v8281_v54  ;;  %v6417_v0 = vld [vmem:[%s8889_s8 + $0x508] ss:$28 sps:$4 sm:$0xff]  }
 0x3b8   :  { %v2632_v13 = vadd.f32 %v2631_v11, %v8233_v5  ;;  %v2633_v14 = vpop.f32.mrb[27].mxu1  ;;  %3959 = vmatmul.mubr.bf16.gmra.mrb[52].mxu1 %v8279_v53  ;;  %4105 = vmatmul.mubr.bf16.gmra.mrb[36].mxu0 %v8279_v53  ;;  %v2735_v18 = vmax.f32 %v2628_v60, 0.0  ;;  %v6425_v11 = vld [vmem:[%s8889_s8 + $0x544] ss:$28 sps:$4 sm:$0xff]  }
 0x3b9   :  { %v2634_v16 = vadd.f32 %v2633_v14, %v8237_v21  ;;  %3994 = vmatpush1.bf16.msra.mxu1 %v6387_v58  ;;  %4140 = vmatpush1.bf16.msra.mxu0 %v6390_v59  ;;  %v2736_v19 = vmax.f32 %v2630_v9, 0.0 }
 0x3ba   :  { %v2739_v3 = vmax.f32 %v2632_v13, 0.0  ;;  %3995 = vmatprep.subr.bf16.mxu1 %v6395_v7  ;;  %4141 = vmatprep.subr.bf16.mxu0 %v6398_v8  ;;  %v6420_v7 = vld [vmem:[%s8889_s8 + $0x510] ss:$28 sps:$4 sm:$0xff]  }
 0x3bb   :  { %v2740_v6 = vmax.f32 %v2634_v16, 0.0  ;;  %v6428_v13 = vld [vmem:[%s8889_s8 + $0x54c] ss:$28 sps:$4 sm:$0xff]  }
 0x3bc   :  { %v8315_v22 = vpack.c.bf16 %v2739_v3, %v2735_v18  ;;  %v6423_v3 = vld [vmem:[%s8889_s8 + $0x540] ss:$28 sps:$4 sm:$0xff]  }
 0x3bd   :  { %v8317_v23 = vpack.c.bf16 %v2740_v6, %v2736_v19  ;;  %3996 = vmatpush1.bf16.msra.mxu1 %v6393_v17  ;;  %4142 = vmatpush1.bf16.msra.mxu0 %v6396_v56  ;;  %v2637_v25 = vpop.f32.mrb[28].mxu1  ;;  %v6431_v6 = vld [vmem:[%s8889_s8 + $0x14] ss:$28 sps:$4 sm:$0xff]  }
 0x3be   :  { %v2638_v27 = vadd.f32 %v2637_v25, %v8233_v5  ;;  %v2639_v28 = vpop.f32.mrb[29].mxu1  ;;  %3997 = vmatprep.subr.bf16.mxu1 %v6401_v4  ;;  %4143 = vmatprep.subr.bf16.mxu0 %v6404_v57  ;;  %v6426_v4 = vld [vmem:[%s8889_s8 + $0x548] ss:$28 sps:$4 sm:$0xff]   ;;  %v6432_v25 = vld [vmem:[%s8889_s8 + $0x1d8] ss:$28 sps:$4 sm:$0xff]  }
 0x3bf   :  { %v2640_v30 = vadd.f32 %v2639_v28, %v8237_v21  ;;  %v2641_v33 = vpop.f32.mrb[30].mxu1  ;;  %3968 = vmatprep.mubr.bf16.mxu1 %v8317_v23  ;;  %4114 = vmatprep.mubr.bf16.mxu0 %v8317_v23 }
 0x3c0   :  { %v2642_v32 = vadd.f32 %v2641_v33, %v8233_v5  ;;  %v2643_v10 = vpop.f32.mrb[31].mxu1  ;;  %3969 = vmatmul.mubr.bf16.gmra.mrb[56].mxu1 %v8315_v22  ;;  %4115 = vmatmul.mubr.bf16.gmra.mrb[40].mxu0 %v8315_v22  ;;  %v2743_v38 = vmax.f32 %v2638_v27, 0.0  ;;  %v8347_v5 = vrot.slane %v8229_v20, %v7746_v63  ;;  %v6419_v20 = vld [vmem:[%s8889_s8 + $0x50c] ss:$28 sps:$4 sm:$0xff]  }
 0x3c1   :  { %v2644_v34 = vadd.f32 %v2643_v10, %v8237_v21  ;;  %3998 = vmatpush1.bf16.msra.mxu1 %v6399_v26  ;;  %4144 = vmatpush1.bf16.msra.mxu0 %v6402_v24  ;;  %v6413_v21 = vld [vmem:[%s8889_s8 + $0x4d4] ss:$28 sps:$4 sm:$0xff]   ;;  %v2744_v41 = vmax.f32 %v2640_v30, 0.0  ;;  %v6436_v10 = vld [vmem:[%s8889_s8 + $0x4c] ss:$28 sps:$4 sm:$0xff]  }
 0x3c2   :  { %v2747_v39 = vmax.f32 %v2642_v32, 0.0  ;;  %3999 = vmatprep.subr.bf16.mxu1 %v6407_v35  ;;  %4145 = vmatprep.subr.bf16.mxu0 %v6410_v29  ;;  %v6429_v29 = vld [vmem:[%s8889_s8 + $0x10] ss:$28 sps:$4 sm:$0xff]   ;;  %v6433_v30 = vld [vmem:[%s8889_s8 + $0x18] ss:$28 sps:$4 sm:$0xff]  }
 0x3c3   :  { %v2748_v42 = vmax.f32 %v2644_v34, 0.0  ;;  %v6437_v34 = vld [vmem:[%s8889_s8 + $0x210] ss:$28 sps:$4 sm:$0xff]  }
 0x3c4   :  { %v8359_v44 = vpack.c.bf16 %v2747_v39, %v2743_v38 }
 0x3c5   :  { %v8361_v45 = vpack.c.bf16 %v2748_v42, %v2744_v41  ;;  %4000 = vmatpush1.bf16.msra.mxu1 %v6405_v36  ;;  %4146 = vmatpush1.bf16.msra.mxu0 %v6408_v37  ;;  %v2680_v46 = vpop.f32.mrb[32].mxu1  ;;  %v6438_v41 = vld [vmem:[%s8889_s8 + $0x50] ss:$28 sps:$4 sm:$0xff]  }
 0x3c6   :  { %v2681_v49 = vadd.f32 %v2680_v46, %v8347_v5  ;;  %v2682_v50 = vpop.f32.mrb[33].mxu1  ;;  %4001 = vmatprep.subr.bf16.mxu1 %v6413_v21  ;;  %4147 = vmatprep.subr.bf16.mxu0 %v6416_v40  ;;  %v6434_v40 = vld [vmem:[%s8889_s8 + $0x48] ss:$28 sps:$4 sm:$0xff]  }
 0x3c7   :  { %v2683_v52 = vadd.f32 %v2682_v50, %v8357_v43  ;;  %v2684_v55 = vpop.f32.mrb[34].mxu1  ;;  %3978 = vmatprep.mubr.bf16.mxu1 %v8361_v45  ;;  %4124 = vmatprep.mubr.bf16.mxu0 %v8361_v45 }
 0x3c8   :  { %v2685_v58 = vadd.f32 %v2684_v55, %v8347_v5  ;;  %v2686_v59 = vpop.f32.mrb[35].mxu1  ;;  %3979 = vmatmul.mubr.bf16.gmra.mrb[60].mxu1 %v8359_v44  ;;  %4125 = vmatmul.mubr.bf16.gmra.mrb[44].mxu0 %v8359_v44  ;;  %v2721_v8 = vmax.f32 %v2681_v49, 0.0  ;;  %v6439_v55 = vld [vmem:[%s8889_s8 + $0x80] ss:$28 sps:$4 sm:$0xff]  }
 0x3c9   :  { %v2687_v60 = vadd.f32 %v2686_v59, %v8357_v43  ;;  %4002 = vmatpush1.bf16.msra.mxu1 %v6411_v47  ;;  %4148 = vmatpush1.bf16.msra.mxu0 %v6414_v48  ;;  %v2722_v14 = vmax.f32 %v2683_v52, 0.0  ;;  %v6441_v47 = vld [vmem:[%s8889_s8 + $0x84] ss:$28 sps:$4 sm:$0xff]  }
 0x3ca   :  { %v2725_v9 = vmax.f32 %v2685_v58, 0.0  ;;  %4003 = vmatprep.subr.bf16.mxu1 %v6419_v20  ;;  %4149 = vmatprep.subr.bf16.mxu0 %v6422_v51  ;;  %v6442_v48 = vld [vmem:[%s8889_s8 + $0x248] ss:$28 sps:$4 sm:$0xff]  }
 0x3cb   :  { %v2726_v16 = vmax.f32 %v2687_v60, 0.0  ;;  %v6443_v58 = vld [vmem:[%s8889_s8 + $0x88] ss:$28 sps:$4 sm:$0xff]  }
 0x3cc   :  { %v8395_v17 = vpack.c.bf16 %v2725_v9, %v2721_v8 }
 0x3cd   :  { %v8397_v56 = vpack.c.bf16 %v2726_v16, %v2722_v14  ;;  %4004 = vmatpush1.bf16.msra.mxu1 %v6417_v0  ;;  %4150 = vmatpush1.bf16.msra.mxu0 %v6420_v7  ;;  %v2690_v18 = vpop.f32.mrb[36].mxu1  ;;  %v6446_v0 = vld [vmem:[%s8889_s8 + $0xbc] ss:$28 sps:$4 sm:$0xff]  }
 0x3ce   :  { %v2691_v57 = vadd.f32 %v2690_v18, %v8347_v5  ;;  %v2692_v19 = vpop.f32.mrb[37].mxu1  ;;  %4005 = vmatprep.subr.bf16.mxu1 %v6425_v11  ;;  %4151 = vmatprep.subr.bf16.mxu0 %v6428_v13  ;;  %v6447_v7 = vld [vmem:[%s8889_s8 + $0x280] ss:$28 sps:$4 sm:$0xff]   ;;  %v6444_v16 = vld [vmem:[%s8889_s8 + $0xb8] ss:$28 sps:$4 sm:$0xff]  }
 0x3cf   :  { %v2693_v26 = vadd.f32 %v2692_v19, %v8357_v43  ;;  %v2694_v24 = vpop.f32.mrb[38].mxu1  ;;  %5520 = vmatprep.mubr.msk.bf16.mxu1 %vm1322_vm0, %v8397_v56  ;;  %5524 = vmatprep.mubr.msk.bf16.mxu0 %vm1322_vm0, %v8397_v56  ;;  %v6448_v18 = vld [vmem:[%s8889_s8 + $0xc0] ss:$28 sps:$4 sm:$0xff]   ;;  %v6452_v19 = vld [vmem:[%s8889_s8 + $0x2b8] ss:$28 sps:$4 sm:$0xff]  }
 0x3d0   :  { %v2695_v27 = vadd.f32 %v2694_v24, %v8347_v5  ;;  %v2696_v28 = vpop.f32.mrb[39].mxu1  ;;  %v2729_v33 = vmax.f32 %v2691_v57, 0.0  ;;  %v6451_v57 = vld [vmem:[%s8889_s8 + $0xf4] ss:$28 sps:$4 sm:$0xff]  }
 0x3d1   :  { %v2697_v35 = vadd.f32 %v2696_v28, %v8357_v43  ;;  %4006 = vmatpush1.bf16.msra.mxu1 %v6423_v3  ;;  %4152 = vmatpush1.bf16.msra.mxu0 %v6426_v4  ;;  %v2730_v36 = vmax.f32 %v2693_v26, 0.0  ;;  %v6449_v28 = vld [vmem:[%s8889_s8 + $0xf0] ss:$28 sps:$4 sm:$0xff]  }
 0x3d2   :  { %v2733_v32 = vmax.f32 %v2695_v27, 0.0  ;;  %4208 = vmatprep.subr.bf16.mxu1 %v6431_v6  ;;  %5600 = vmatprep.subr.bf16.mxu0 %v6432_v25 }
 0x3d3   :  { %v2734_v37 = vmax.f32 %v2697_v35, 0.0  ;;  %v6453_v35 = vld [vmem:[%s8889_s8 + $0xf8] ss:$28 sps:$4 sm:$0xff]  }
 0x3d4   :  { %v8431_v38 = vpack.c.bf16 %v2733_v32, %v2729_v33  ;;  %4022 = vmatmul.mubr.bf16.vlgmr.msra.gmra.mrb[48].mxu1 %v8395_v17  ;;  %4168 = vmatmul.mubr.bf16.vlgmr.msra.gmra.mrb[32].mxu0 %v8395_v17 }
 0x3d5   :  { %v8435_v39 = vpack.c.bf16 %v2734_v37, %v2730_v36  ;;  %4209 = vmatpush1.bf16.msra.mxu1 %v6429_v29  ;;  %5601 = vmatpush3.bf16.msra.mxu0 %v6433_v30  ;;  %v2700_v21 = vpop.f32.mrb[40].mxu1  ;;  %v6454_v36 = vld [vmem:[%s8889_s8 + $0x128] ss:$28 sps:$4 sm:$0xff]   ;;  %v6458_v37 = vld [vmem:[%s8889_s8 + $0x130] ss:$28 sps:$4 sm:$0xff]  }
 0x3d6   :  { %v2701_v42 = vadd.f32 %v2700_v21, %v8347_v5  ;;  %v2702_v46 = vpop.f32.mrb[41].mxu1  ;;  %4210 = vmatprep.subr.bf16.mxu1 %v6436_v10  ;;  %5602 = vmatprep.subr.bf16.mxu0 %v6437_v34  ;;  %v6461_v21 = vld [vmem:[%s8889_s8 + $0x164] ss:$28 sps:$4 sm:$0xff]  }
 0x3d7   :  { %v2703_v49 = vadd.f32 %v2702_v46, %v8357_v43  ;;  %v2704_v50 = vpop.f32.mrb[42].mxu1  ;;  %5521 = vmatprep.mubr.msk.bf16.mxu1 %vm1322_vm0, %v8435_v39  ;;  %5525 = vmatprep.mubr.msk.bf16.mxu0 %vm1322_vm0, %v8435_v39  ;;  %v6466_v46 = vld [vmem:[%s8889_s8 + $0x19c] ss:$28 sps:$4 sm:$0xff]  }
 0x3d8   :  { %v2705_v20 = vadd.f32 %v2704_v50, %v8347_v5  ;;  %v2706_v51 = vpop.f32.mrb[43].mxu1  ;;  %v2737_v59 = vmax.f32 %v2701_v42, 0.0  ;;  %v6463_v42 = vld [vmem:[%s8889_s8 + $0x168] ss:$28 sps:$4 sm:$0xff]   ;;  %v6471_v50 = vld [vmem:[%s8889_s8 + $0x1d4] ss:$28 sps:$4 sm:$0xff]  }
 0x3d9   :  { %v2707_v52 = vadd.f32 %v2706_v51, %v8357_v43  ;;  %4211 = vmatpush1.bf16.msra.mxu1 %v6434_v40  ;;  %5603 = vmatpush3.bf16.msra.mxu0 %v6438_v41  ;;  %v2738_v8 = vmax.f32 %v2703_v49, 0.0  ;;  %v6462_v40 = vld [vmem:[%s8889_s8 + $0x328] ss:$28 sps:$4 sm:$0xff]   ;;  %v6459_v41 = vld [vmem:[%s8889_s8 + $0x160] ss:$28 sps:$4 sm:$0xff]  }
 0x3da   :  { %v2741_v60 = vmax.f32 %v2705_v20, 0.0  ;;  %4212 = vmatprep.subr.bf16.mxu1 %v6441_v47  ;;  %5604 = vmatprep.subr.bf16.mxu0 %v6442_v48  ;;  %v6467_v47 = vld [vmem:[%s8889_s8 + $0x360] ss:$28 sps:$4 sm:$0xff]   ;;  %v6464_v48 = vld [vmem:[%s8889_s8 + $0x198] ss:$28 sps:$4 sm:$0xff]  }
 0x3db   :  { %v2742_v9 = vmax.f32 %v2707_v52, 0.0  ;;  %v6468_v49 = vld [vmem:[%s8889_s8 + $0x1a0] ss:$28 sps:$4 sm:$0xff]   ;;  %v6469_v20 = vld [vmem:[%s8889_s8 + $0x1d0] ss:$28 sps:$4 sm:$0xff]  }
 0x3dc   :  { %v8469_v11 = vpack.c.bf16 %v2741_v60, %v2737_v59  ;;  %4032 = vmatmul.mubr.bf16.gmra.mrb[52].mxu1 %v8431_v38  ;;  %4178 = vmatmul.mubr.bf16.gmra.mrb[36].mxu0 %v8431_v38  ;;  %v6475_v51 = vld [vmem:[%s8889_s8 + $0x20c] ss:$28 sps:$4 sm:$0xff]   ;;  %v6477_v59 = vld [vmem:[%s8889_s8 + $0x240] ss:$28 sps:$4 sm:$0xff]  }
 0x3dd   :  { %v8473_v13 = vpack.c.bf16 %v2742_v9, %v2738_v8  ;;  %4213 = vmatpush1.bf16.msra.mxu1 %v6439_v55  ;;  %5605 = vmatpush3.bf16.msra.mxu0 %v6443_v58  ;;  %v2710_v14 = vpop.f32.mrb[44].mxu1  ;;  %v6473_v52 = vld [vmem:[%s8889_s8 + $0x208] ss:$28 sps:$4 sm:$0xff]   ;;  %v6476_v55 = vld [vmem:[%s8889_s8 + $0x3d0] ss:$28 sps:$4 sm:$0xff]  }
 0x3de   :  { %v2711_v3 = vadd.f32 %v2710_v14, %v8347_v5  ;;  %v2712_v4 = vpop.f32.mrb[45].mxu1  ;;  %4214 = vmatprep.subr.bf16.mxu1 %v6446_v0  ;;  %5606 = vmatprep.subr.bf16.mxu0 %v6447_v7  ;;  %v6479_v58 = vld [vmem:[%s8889_s8 + $0x244] ss:$28 sps:$4 sm:$0xff]   ;;  %v6483_v0 = vld [vmem:[%s8889_s8 + $0x27c] ss:$28 sps:$4 sm:$0xff]  }
 0x3df   :  { %v2713_v6 = vadd.f32 %v2712_v4, %v8357_v43  ;;  %v2714_v25 = vpop.f32.mrb[46].mxu1  ;;  %5522 = vmatprep.mubr.msk.bf16.mxu1 %vm1322_vm0, %v8473_v13  ;;  %5526 = vmatprep.mubr.msk.bf16.mxu0 %vm1322_vm0, %v8473_v13  ;;  %v6480_v60 = vld [vmem:[%s8889_s8 + $0x408] ss:$28 sps:$4 sm:$0xff]   ;;  %v6481_v7 = vld [vmem:[%s8889_s8 + $0x278] ss:$28 sps:$4 sm:$0xff]  }
 0x3e0   :  { %v2715_v26 = vadd.f32 %v2714_v25, %v8347_v5  ;;  %v2716_v24 = vpop.f32.mrb[47].mxu1  ;;  %v2745_v29 = vmax.f32 %v2711_v3, 0.0  ;;  %v6456_v5 = vld [vmem:[%s8889_s8 + $0x12c] ss:$28 sps:$4 sm:$0xff]   ;;  %v6484_v8 = vld [vmem:[%s8889_s8 + $0x440] ss:$28 sps:$4 sm:$0xff]  }
 0x3e1   :  { %v2717_v27 = vadd.f32 %v2716_v24, %v8357_v43  ;;  %4215 = vmatpush1.bf16.msra.mxu1 %v6444_v16  ;;  %5607 = vmatpush3.bf16.msra.mxu0 %v6448_v18  ;;  %v6457_v43 = vld [vmem:[%s8889_s8 + $0x2f0] ss:$28 sps:$4 sm:$0xff]   ;;  %v2746_v33 = vmax.f32 %v2713_v6, 0.0  ;;  %v6488_v16 = vld [vmem:[%s8889_s8 + $0x478] ss:$28 sps:$4 sm:$0xff]  }
 0x3e2   :  { %v2749_v30 = vmax.f32 %v2715_v26, 0.0  ;;  %4216 = vmatprep.subr.bf16.mxu1 %v6451_v57  ;;  %5608 = vmatprep.subr.bf16.mxu0 %v6452_v19  ;;  %v6487_v9 = vld [vmem:[%s8889_s8 + $0x2b4] ss:$28 sps:$4 sm:$0xff]   ;;  %v6491_v18 = vld [vmem:[%s8889_s8 + $0x2ec] ss:$28 sps:$4 sm:$0xff]  }
 0x3e3   :  { %v2750_v32 = vmax.f32 %v2717_v27, 0.0  ;;  %v6485_v14 = vld [vmem:[%s8889_s8 + $0x2b0] ss:$28 sps:$4 sm:$0xff]   ;;  %v6489_v3 = vld [vmem:[%s8889_s8 + $0x2e8] ss:$28 sps:$4 sm:$0xff]  }
 0x3e4   :  { %v8507_v10 = vpack.c.bf16 %v2749_v30, %v2745_v29  ;;  %4042 = vmatmul.mubr.bf16.gmra.mrb[56].mxu1 %v8469_v11  ;;  %4188 = vmatmul.mubr.bf16.gmra.mrb[40].mxu0 %v8469_v11  ;;  %v6492_v4 = vld [vmem:[%s8889_s8 + $0x4b0] ss:$28 sps:$4 sm:$0xff]   ;;  %v6495_v57 = vld [vmem:[%s8889_s8 + $0x324] ss:$28 sps:$4 sm:$0xff]   ;;  %v6499_v25 = vld [vmem:[%s8889_s8 + $0x35c] ss:$28 sps:$4 sm:$0xff]  }
 0x3e5   :  { %v8511_v34 = vpack.c.bf16 %v2750_v32, %v2746_v33  ;;  %4217 = vmatpush1.bf16.msra.mxu1 %v6449_v28  ;;  %5609 = vmatpush3.bf16.msra.mxu0 %v6453_v35  ;;  %v6493_v19 = vld [vmem:[%s8889_s8 + $0x320] ss:$28 sps:$4 sm:$0xff]   ;;  %v6496_v6 = vld [vmem:[%s8889_s8 + $0x4e8] ss:$28 sps:$4 sm:$0xff]   ;;  %v6497_v26 = vld [vmem:[%s8889_s8 + $0x358] ss:$28 sps:$4 sm:$0xff]  }
 0x3e6   :  { %4218 = vmatprep.subr.bf16.mxu1 %v6456_v5  ;;  %5610 = vmatprep.subr.bf16.mxu0 %v6457_v43  ;;  %v6500_v24 = vld [vmem:[%s8889_s8 + $0x520] ss:$28 sps:$4 sm:$0xff]   ;;  %v6503_v27 = vld [vmem:[%s8889_s8 + $0x394] ss:$28 sps:$4 sm:$0xff]   ;;  %v6507_v29 = vld [vmem:[%s8889_s8 + $0x3cc] ss:$28 sps:$4 sm:$0xff]  }
 0x3e7   :  { %5523 = vmatprep.mubr.msk.bf16.mxu1 %vm1322_vm0, %v8511_v34  ;;  %5527 = vmatprep.mubr.msk.bf16.mxu0 %vm1322_vm0, %v8511_v34  ;;  %v6501_v28 = vld [vmem:[%s8889_s8 + $0x390] ss:$28 sps:$4 sm:$0xff]   ;;  %v6504_v35 = vld [vmem:[%s8889_s8 + $0x558] ss:$28 sps:$4 sm:$0xff]   ;;  %v6505_v30 = vld [vmem:[%s8889_s8 + $0x3c8] ss:$28 sps:$4 sm:$0xff]  }
 0x3e8   :  { %v6510_v5 = vld [vmem:[%s8889_s8 + $0x404] ss:$28 sps:$4 sm:$0xff]   ;;  %v6516_v43 = vld [vmem:[%s8889_s8 + $0x474] ss:$28 sps:$4 sm:$0xff]  }
 0x3e9   :  { %4219 = vmatpush1.bf16.msra.mxu1 %v6454_v36  ;;  %5611 = vmatpush3.bf16.msra.mxu0 %v6458_v37  ;;  %v6514_v33 = vld [vmem:[%s8889_s8 + $0x470] ss:$28 sps:$4 sm:$0xff]   ;;  %v6522_v32 = vld [vmem:[%s8889_s8 + $0x4e4] ss:$28 sps:$4 sm:$0xff]  }
 0x3ea   :  { %4220 = vmatprep.subr.bf16.mxu1 %v6461_v21  ;;  %5612 = vmatprep.subr.bf16.mxu0 %v6462_v40  ;;  %v6520_v36 = vld [vmem:[%s8889_s8 + $0x4e0] ss:$28 sps:$4 sm:$0xff]   ;;  %v6528_v37 = vld [vmem:[%s8889_s8 + $0x554] ss:$28 sps:$4 sm:$0xff]  }
 0x3ec   :  { %4052 = vmatmul.mubr.bf16.gmra.mrb[60].mxu1 %v8507_v10  ;;  %4198 = vmatmul.mubr.bf16.gmra.mrb[44].mxu0 %v8507_v10 }
 0x3ed   :  { %4221 = vmatpush1.bf16.msra.mxu1 %v6459_v41  ;;  %4240 = vmatprep.mubr.bf16.mxu1 %v8245_v31 }
 0x3ee   :  { %5613 = vmatpush3.bf16.msra.mxu0 %v6463_v42  ;;  %4386 = vmatprep.mubr.bf16.mxu0 %v8245_v31  ;;  %v6472_v31 = vld [vmem:[%s8889_s8 + $0x398] ss:$28 sps:$4 sm:$0xff]  }
 0x3ef   :  { %4222 = vmatprep.subr.bf16.mxu1 %v6466_v46  ;;  %5614 = vmatprep.subr.bf16.mxu0 %v6467_v47 }
 0x3f1   :  { %4223 = vmatpush1.bf16.msra.mxu1 %v6464_v48 }
 0x3f2   :  { %5615 = vmatpush3.bf16.msra.mxu0 %v6468_v49  ;;  %4224 = vmatprep.subr.bf16.mxu1 %v6471_v50 }
 0x3f3   :  { %4419 = vmatprep.subr.bf16.mxu0 %v6793_v15 }
 0x3f5   :  { %4387 = vmatmul.mubr.bf16.vlgmr.msra.gmra.mrb[48].mxu0 %v8243_v12  ;;  %4225 = vmatpush1.bf16.msra.mxu1 %v6469_v20 }
 0x3f6   :  { %4394 = vmatprep.mubr.bf16.mxu0 %v8281_v54  ;;  %4420 = vmatpush1.bf16.msra.mxu0 %v6472_v31 }
 0x3f7   :  { %4226 = vmatprep.subr.bf16.mxu1 %v6475_v51  ;;  %4421 = vmatprep.subr.bf16.mxu0 %v6793_v15 }
 0x3f9   :  { %4227 = vmatpush1.bf16.msra.mxu1 %v6473_v52 }
 0x3fa   :  { %4422 = vmatpush1.bf16.msra.mxu0 %v6476_v55  ;;  %4228 = vmatprep.subr.bf16.mxu1 %v6479_v58 }
 0x3fb   :  { %4423 = vmatprep.subr.bf16.mxu0 %v6793_v15 }
 0x3fd   :  { %4395 = vmatmul.mubr.bf16.gmra.mrb[52].mxu0 %v8279_v53  ;;  %4229 = vmatpush1.bf16.msra.mxu1 %v6477_v59 }
 0x3fe   :  { %4402 = vmatprep.mubr.bf16.mxu0 %v8317_v23  ;;  %4424 = vmatpush1.bf16.msra.mxu0 %v6480_v60 }
 0x3ff   :  { %4230 = vmatprep.subr.bf16.mxu1 %v6483_v0  ;;  %4425 = vmatprep.subr.bf16.mxu0 %v6793_v15 }
 0x401   :  { %4231 = vmatpush1.bf16.msra.mxu1 %v6481_v7 }
 0x402   :  { %4426 = vmatpush1.bf16.msra.mxu0 %v6484_v8  ;;  %4232 = vmatprep.subr.bf16.mxu1 %v6487_v9 }
 0x403   :  { %4427 = vmatprep.subr.bf16.mxu0 %v6793_v15 }
 0x405   :  { %4403 = vmatmul.mubr.bf16.gmra.mrb[56].mxu0 %v8315_v22  ;;  %4233 = vmatpush1.bf16.msra.mxu1 %v6485_v14 }
 0x406   :  { %4410 = vmatprep.mubr.bf16.mxu0 %v8361_v45  ;;  %4428 = vmatpush1.bf16.msra.mxu0 %v6488_v16 }
 0x407   :  { %4234 = vmatprep.subr.bf16.mxu1 %v6491_v18  ;;  %4429 = vmatprep.subr.bf16.mxu0 %v6793_v15 }
 0x409   :  { %4235 = vmatpush1.bf16.msra.mxu1 %v6489_v3 }
 0x40a   :  { %4430 = vmatpush1.bf16.msra.mxu0 %v6492_v4  ;;  %4236 = vmatprep.subr.bf16.mxu1 %v6495_v57 }
 0x40b   :  { %4431 = vmatprep.subr.bf16.mxu0 %v6793_v15 }
 0x40d   :  { %4411 = vmatmul.mubr.bf16.gmra.mrb[60].mxu0 %v8359_v44  ;;  %4237 = vmatpush1.bf16.msra.mxu1 %v6493_v19 }
 0x40e   :  { %4432 = vmatpush1.bf16.msra.mxu0 %v6496_v6  ;;  %5532 = vmatprep.mubr.msk.bf16.mxu0 %vm1322_vm0, %v8397_v56 }
 0x40f   :  { %4238 = vmatprep.subr.bf16.mxu1 %v6499_v25  ;;  %4433 = vmatprep.subr.bf16.mxu0 %v6793_v15 }
 0x411   :  { %4239 = vmatpush1.bf16.msra.mxu1 %v6497_v26 }
 0x412   :  { %4434 = vmatpush1.bf16.msra.mxu0 %v6500_v24  ;;  %4281 = vmatprep.subr.bf16.mxu1 %v6503_v27 }
 0x413   :  { %4435 = vmatprep.subr.bf16.mxu0 %v6793_v15  ;;  %v6508_v15 = vld [vmem:[%s8889_s8 + $0x400] ss:$28 sps:$4 sm:$0xff]  }
 0x414   :  { %4241 = vmatmul.mubr.bf16.vlgmr.msra.gmra.mrb[64].mxu1 %v8243_v12  ;;  %v6513_v12 = vld [vmem:[%s8889_s8 + $0x43c] ss:$28 sps:$4 sm:$0xff]  }
 0x415   :  { %4250 = vmatprep.mubr.bf16.mxu1 %v8281_v54  ;;  %4282 = vmatpush1.bf16.msra.mxu1 %v6501_v28  ;;  %v6511_v54 = vld [vmem:[%s8889_s8 + $0x438] ss:$28 sps:$4 sm:$0xff]  }
 0x416   :  { %4436 = vmatpush1.bf16.msra.mxu0 %v6504_v35  ;;  %4283 = vmatprep.subr.bf16.mxu1 %v6507_v29 }
 0x419   :  { %4452 = vmatmul.mubr.bf16.vlgmr.msra.gmra.mrb[64].mxu0 %v8395_v17  ;;  %4284 = vmatpush1.bf16.msra.mxu1 %v6505_v30 }
 0x41a   :  { %5533 = vmatprep.mubr.msk.bf16.mxu0 %vm1322_vm0, %v8435_v39  ;;  %4285 = vmatprep.subr.bf16.mxu1 %v6510_v5 }
 0x41c   :  { %4251 = vmatmul.mubr.bf16.gmra.mrb[68].mxu1 %v8279_v53  ;;  %v6519_v53 = vld [vmem:[%s8889_s8 + $0x4ac] ss:$28 sps:$4 sm:$0xff]  }
 0x41d   :  { %4260 = vmatprep.mubr.bf16.mxu1 %v8317_v23  ;;  %4286 = vmatpush1.bf16.msra.mxu1 %v6508_v15  ;;  %v6517_v23 = vld [vmem:[%s8889_s8 + $0x4a8] ss:$28 sps:$4 sm:$0xff]  }
 0x41e   :  { %4287 = vmatprep.subr.bf16.mxu1 %v6513_v12 }
 0x421   :  { %4460 = vmatmul.mubr.bf16.gmra.mrb[68].mxu0 %v8431_v38  ;;  %4288 = vmatpush1.bf16.msra.mxu1 %v6511_v54 }
 0x422   :  { %5534 = vmatprep.mubr.msk.bf16.mxu0 %vm1322_vm0, %v8473_v13  ;;  %4289 = vmatprep.subr.bf16.mxu1 %v6516_v43 }
 0x424   :  { %4261 = vmatmul.mubr.bf16.gmra.mrb[72].mxu1 %v8315_v22  ;;  %v6525_v22 = vld [vmem:[%s8889_s8 + $0x51c] ss:$28 sps:$4 sm:$0xff]  }
 0x425   :  { %4270 = vmatprep.mubr.bf16.mxu1 %v8361_v45  ;;  %4290 = vmatpush1.bf16.msra.mxu1 %v6514_v33  ;;  %v6523_v45 = vld [vmem:[%s8889_s8 + $0x518] ss:$28 sps:$4 sm:$0xff]  }
 0x426   :  { %4291 = vmatprep.subr.bf16.mxu1 %v6519_v53 }
 0x429   :  { %4468 = vmatmul.mubr.bf16.gmra.mrb[72].mxu0 %v8469_v11  ;;  %4292 = vmatpush1.bf16.msra.mxu1 %v6517_v23 }
 0x42a   :  { %5535 = vmatprep.mubr.msk.bf16.mxu0 %vm1322_vm0, %v8511_v34  ;;  %4293 = vmatprep.subr.bf16.mxu1 %v6522_v32 }
 0x42c   :  { %4271 = vmatmul.mubr.bf16.gmra.mrb[76].mxu1 %v8359_v44  ;;  %v6526_v44 = vld [vmem:[%s8889_s8 + $0x550] ss:$28 sps:$4 sm:$0xff]  }
 0x42d   :  { %4294 = vmatpush1.bf16.msra.mxu1 %v6520_v36  ;;  %5528 = vmatprep.mubr.msk.bf16.mxu1 %vm1322_vm0, %v8397_v56  ;;  %v8730_v56 = vld [vmem:[%s8890_s9] sm:$0x7f]  ;;  %s6794_s9 = smov [#allocation2]  }
 0x42e   :  { %4295 = vmatprep.subr.bf16.mxu1 %v6525_v22  ;;  %s5050_s16 = sshll.u32 %s6794_s9, 4  ;;  %s5051_s16 = int_to_ptr.vmem [resolvable:$true] %s5050_s16 }
 0x42f   :  { %s6769_s17 = scalar_lea.vmem %s5051_s16, 3584  ;;  %p6774_p1 = scmp.lt.s32.totalorder %s5051_s16, %s5051_s16 }
 0x430   :  { %p6770_p0 = scmp.ne.s32.totalorder %s5051_s16, %s6769_s17  ;;  %p6775_p2 = scmp.lt.s32.totalorder %s6769_s17, %s6769_s17 }
 0x431   :  { %4476 = vmatmul.mubr.bf16.gmra.mrb[76].mxu0 %v8507_v10  ;;  %4296 = vmatpush1.bf16.msra.mxu1 %v6523_v45 }
 0x432   :  { %4297 = vmatprep.subr.bf16.mxu1 %v6528_v37  ;;  %p6776_p3 = por %p6775_p2, %p6774_p1 }
 0x434   :  { %p6777_p4 = pnand %p6776_p3, %p6770_p0 }
 0x435   :  { %4298 = vmatpush1.bf16.msra.mxu1 %v6526_v44 }
 0x438   :  { %4314 = vmatmul.mubr.bf16.vlgmr.msra.gmra.mrb[64].mxu1 %v8395_v17  ;;  %v8734_v17 = vrot.slane %v8730_v56, %v7743_v62 }
 0x439   :  { %5529 = vmatprep.mubr.msk.bf16.mxu1 %vm1322_vm0, %v8435_v39  ;;  %v8742_v39 = vrot.slane %v8730_v56, %v7752_v1 }
 0x440   :  { %4324 = vmatmul.mubr.bf16.gmra.mrb[68].mxu1 %v8431_v38  ;;  %v8738_v38 = vrot.slane %v8730_v56, %v7746_v63 }
 0x441   :  { %5530 = vmatprep.mubr.msk.bf16.mxu1 %vm1322_vm0, %v8473_v13 }
 0x448   :  { %4334 = vmatmul.mubr.bf16.gmra.mrb[72].mxu1 %v8469_v11  ;;  %v8746_v11 = vrot.slane %v8730_v56, %v7755_v2 }
 0x449   :  { %5531 = vmatprep.mubr.msk.bf16.mxu1 %vm1322_vm0, %v8511_v34 }
 0x450   :  { %4344 = vmatmul.mubr.bf16.gmra.mrb[76].mxu1 %v8507_v10 }
 0x4a7   :  { %v4023_v13 = vpop.f32.mrb[48].mxu1  ;;  %v4169_v10 = vpop.f32.mrb[32].mxu0 }
 0x4a8   :  { %v5688_v34 = vadd.f32 %v4023_v13, %v8734_v17  ;;  %v5704_v21 = vadd.f32 %v4169_v10, %v8738_v38  ;;  %v4025_v62 = vpop.f32.mrb[49].mxu1  ;;  %v4171_v40 = vpop.f32.mrb[33].mxu0 }
 0x4a9   :  { %v5689_v41 = vadd.f32 %v4025_v62, %v8742_v39  ;;  %v5705_v63 = vadd.f32 %v4171_v40, %v8746_v11  ;;  %v4027_v42 = vpop.f32.mrb[50].mxu1  ;;  %v4173_v46 = vpop.f32.mrb[34].mxu0 }
 0x4aa   :  { %v4484_v1 = vsub.f32 0.0, %v5688_v34  ;;  %v4486_v47 = vsub.f32 0.0, %v5704_v21  ;;  %v5690_v48 = vadd.f32 %v4027_v42, %v8734_v17  ;;  %v5706_v2 = vadd.f32 %v4173_v46, %v8738_v38  ;;  %v4029_v49 = vpop.f32.mrb[51].mxu1  ;;  %v4175_v50 = vpop.f32.mrb[35].mxu0 }
 0x4ab   :  { %v4485_v20 = vsub.f32 0.0, %v5689_v41  ;;  %v4487_v31 = vsub.f32 0.0, %v5705_v63  ;;  %v5691_v51 = vadd.f32 %v4029_v49, %v8742_v39  ;;  %v5707_v52 = vadd.f32 %v4175_v50, %v8746_v11 }
 0x4ac   :  { %v4540_v55 = vmul.f32 1.442695, %v4484_v1  ;;  %v4544_v58 = vmul.f32 1.442695, %v4486_v47  ;;  %v4491_v59 = vsub.f32 0.0, %v5690_v48  ;;  %v4493_v60 = vsub.f32 0.0, %v5706_v2 }
 0x4ad   :  { %v4542_v0 = vmul.f32 1.442695, %v4485_v20  ;;  %v4546_v7 = vmul.f32 1.442695, %v4487_v31  ;;  %v4492_v8 = vsub.f32 0.0, %v5691_v51  ;;  %v4494_v9 = vsub.f32 0.0, %v5707_v52 }
 0x4ae   :  { %6545 = vpow2.f32 %v4540_v55  ;;  %v4554_v14 = vmul.f32 1.442695, %v4491_v59  ;;  %v4558_v16 = vmul.f32 1.442695, %v4493_v60 }
 0x4af   :  { %6547 = vpow2.f32 %v4544_v58  ;;  %v4033_v18 = vpop.f32.mrb[52].mxu1  ;;  %v4179_v3 = vpop.f32.mrb[36].mxu0  ;;  %v4556_v4 = vmul.f32 1.442695, %v4492_v8  ;;  %v4560_v26 = vmul.f32 1.442695, %v4494_v9 }
 0x4b0   :  { %6549 = vpow2.f32 %v4542_v0  ;;  %v5692_v57 = vadd.f32 %v4033_v18, %v8734_v17  ;;  %v5708_v19 = vadd.f32 %v4179_v3, %v8738_v38  ;;  %v4035_v6 = vpop.f32.mrb[53].mxu1  ;;  %v4181_v25 = vpop.f32.mrb[37].mxu0 }
 0x4b1   :  { %6551 = vpow2.f32 %v4546_v7  ;;  %v5693_v24 = vadd.f32 %v4035_v6, %v8742_v39  ;;  %v5709_v27 = vadd.f32 %v4181_v25, %v8746_v11  ;;  %v4037_v28 = vpop.f32.mrb[54].mxu1  ;;  %v4183_v35 = vpop.f32.mrb[38].mxu0 }
 0x4b2   :  { %6553 = vpow2.f32 %v4554_v14  ;;  %v4498_v29 = vsub.f32 0.0, %v5692_v57  ;;  %v4500_v30 = vsub.f32 0.0, %v5708_v19  ;;  %v5694_v5 = vadd.f32 %v4037_v28, %v8734_v17  ;;  %v4039_v15 = vpop.f32.mrb[55].mxu1  ;;  %v4185_v12 = vpop.f32.mrb[39].mxu0 }
 0x4b3   :  { %6555 = vpow2.f32 %v4558_v16  ;;  %v4499_v54 = vsub.f32 0.0, %v5693_v24  ;;  %v4501_v43 = vsub.f32 0.0, %v5709_v27  ;;  %v5710_v45 = vadd.f32 %v4183_v35, %v8738_v38 }
 0x4b4   :  { %6557 = vpow2.f32 %v4556_v4  ;;  %v4568_v33 = vmul.f32 1.442695, %v4498_v29  ;;  %v4572_v53 = vmul.f32 1.442695, %v4500_v30  ;;  %v4505_v23 = vsub.f32 0.0, %v5694_v5 }
 0x4b5   :  { %6559 = vpow2.f32 %v4560_v26  ;;  %v4570_v32 = vmul.f32 1.442695, %v4499_v54  ;;  %v4574_v36 = vmul.f32 1.442695, %v4501_v43  ;;  %v5695_v40 = vadd.f32 %v4039_v15, %v8742_v39 }
 0x4b6   :  { %6561 = vpow2.f32 %v4568_v33  ;;  %v4582_v22 = vmul.f32 1.442695, %v4505_v23  ;;  %v4507_v2 = vsub.f32 0.0, %v5710_v45  ;;  %v5711_v31 = vadd.f32 %v4185_v12, %v8746_v11 }
 0x4b7   :  { %6563 = vpow2.f32 %v4572_v53  ;;  %v4043_v37 = vpop.f32.mrb[56].mxu1  ;;  %v4189_v44 = vpop.f32.mrb[40].mxu0  ;;  %v4506_v55 = vsub.f32 0.0, %v5695_v40 }
 0x4b8   :  { %v6546_v13 = vpop.eup %6545  ;;  %6565 = vpow2.f32 %v4570_v32  ;;  %v4045_v10 = vpop.f32.mrb[57].mxu1  ;;  %v5696_v60 = vadd.f32 %v4043_v37, %v8734_v17  ;;  %v4586_v8 = vmul.f32 1.442695, %v4507_v2  ;;  %v4508_v3 = vsub.f32 0.0, %v5711_v31 }
 0x4b9   :  { %v4191_v34 = vpop.f32.mrb[41].mxu0  ;;  %v6548_v21 = vpop.eup %6547  ;;  %v4652_v62 = vadd.f32 1.0, %v6546_v13  ;;  %6567 = vpow2.f32 %v4574_v36  ;;  %v5712_v4 = vadd.f32 %v4189_v44, %v8738_v38  ;;  %v4584_v26 = vmul.f32 1.442695, %v4506_v55 }
 0x4ba   :  { %v4047_v41 = vpop.f32.mrb[58].mxu1  ;;  %v4193_v63 = vpop.f32.mrb[42].mxu0  ;;  %v4654_v46 = vadd.f32 1.0, %v6548_v21  ;;  %6569 = vpow2.f32 %v4582_v22  ;;  %v5697_v24 = vadd.f32 %v4045_v10, %v8742_v39  ;;  %v4512_v30 = vsub.f32 0.0, %v5696_v60 }
 0x4bb   :  { %v6550_v42 = vpop.eup %6549  ;;  %v4049_v1 = vpop.f32.mrb[59].mxu1  ;;  %6571 = vrcp.f32 %v4652_v62  ;;  %v5713_v5 = vadd.f32 %v4191_v34, %v8746_v11  ;;  %v5698_v33 = vadd.f32 %v4047_v41, %v8734_v17  ;;  %v5714_v53 = vadd.f32 %v4193_v63, %v8738_v38 }
 0x4bc   :  { %v6552_v47 = vpop.eup %6551  ;;  %v4653_v48 = vadd.f32 1.0, %v6550_v42  ;;  %v4195_v49 = vpop.f32.mrb[43].mxu0  ;;  %6573 = vrcp.f32 %v4654_v46  ;;  %v4588_v36 = vmul.f32 1.442695, %v4508_v3  ;;  %v4514_v22 = vsub.f32 0.0, %v5712_v4 }
 0x4bd   :  { %v6554_v50 = vpop.eup %6553  ;;  %v4655_v20 = vadd.f32 1.0, %v6552_v47  ;;  %v4513_v44 = vsub.f32 0.0, %v5697_v24  ;;  %v5699_v13 = vadd.f32 %v4049_v1, %v8742_v39  ;;  %v4596_v34 = vmul.f32 1.442695, %v4512_v30 }
 0x4be   :  { %v6556_v51 = vpop.eup %6555  ;;  %6575 = vrcp.f32 %v4653_v48  ;;  %v4659_v52 = vadd.f32 1.0, %v6554_v50  ;;  %v4515_v21 = vsub.f32 0.0, %v5713_v5  ;;  %v5715_v62 = vadd.f32 %v4195_v49, %v8746_v11 }
 0x4bf   :  { %v6558_v58 = vpop.eup %6557  ;;  %6577 = vrcp.f32 %v4655_v20  ;;  %v4661_v59 = vadd.f32 1.0, %v6556_v51  ;;  %v4053_v9 = vpop.f32.mrb[60].mxu1  ;;  %v4519_v41 = vsub.f32 0.0, %v5698_v33  ;;  %v4521_v63 = vsub.f32 0.0, %v5714_v53 }
 0x4c0   :  { %v6560_v0 = vpop.eup %6559  ;;  %6579 = vrcp.f32 %v4659_v52  ;;  %v4660_v7 = vadd.f32 1.0, %v6558_v58  ;;  %v4199_v14 = vpop.f32.mrb[44].mxu0  ;;  %v5700_v42 = vadd.f32 %v4053_v9, %v8734_v17  ;;  %v4600_v48 = vmul.f32 1.442695, %v4514_v22 }
 0x4c1   :  { %v6562_v16 = vpop.eup %6561  ;;  %6581 = vrcp.f32 %v4661_v59  ;;  %v4662_v18 = vadd.f32 1.0, %v6560_v0  ;;  %v8766_v57 = vpop.f32.mrb[61].mxu1  ;;  %v5716_v2 = vadd.f32 %v4199_v14, %v8738_v38  ;;  %v4598_v31 = vmul.f32 1.442695, %v4513_v44 }
 0x4c2   :  { %v8768_v19 = vpop.f32.mrb[45].mxu0  ;;  %v6564_v6 = vpop.eup %6563  ;;  %6583 = vrcp.f32 %v4660_v7  ;;  %v4666_v25 = vadd.f32 1.0, %v6562_v16  ;;  %v4520_v51 = vsub.f32 0.0, %v5699_v13  ;;  %v4602_v55 = vmul.f32 1.442695, %v4515_v21 }
 0x4c3   :  { %v8771_v27 = vpop.f32.mrb[62].mxu1  ;;  %v8773_v28 = vpop.f32.mrb[46].mxu0  ;;  %6585 = vrcp.f32 %v4662_v18  ;;  %v4668_v29 = vadd.f32 1.0, %v6564_v6  ;;  %v4522_v58 = vsub.f32 0.0, %v5715_v62  ;;  %v4610_v0 = vmul.f32 1.442695, %v4519_v41 }
 0x4c4   :  { %v6566_v35 = vpop.eup %6565  ;;  %v8776_v15 = vpop.f32.mrb[63].mxu1  ;;  %6587 = vrcp.f32 %v4666_v25  ;;  %v4614_v7 = vmul.f32 1.442695, %v4521_v63  ;;  %v4528_v18 = vsub.f32 0.0, %v5716_v2  ;;  %v4612_v25 = vmul.f32 1.442695, %v4520_v51 }
 0x4c5   :  { %v8778_v12 = vpop.f32.mrb[47].mxu0  ;;  %v6568_v54 = vpop.eup %6567  ;;  %v4667_v43 = vadd.f32 1.0, %v6566_v35  ;;  %6589 = vrcp.f32 %v4668_v29  ;;  %v4616_v24 = vmul.f32 1.442695, %v4522_v58  ;;  %v5701_v41 = vadd.f32 %v8766_v57, %v8742_v39 }
 0x4c6   :  { %v6570_v23 = vpop.eup %6569  ;;  %v4669_v32 = vadd.f32 1.0, %v6568_v54 }
 0x4c7   :  { %v6572_v45 = vpop.eup %6571  ;;  %6591 = vrcp.f32 %v4667_v43  ;;  %v4673_v37 = vadd.f32 1.0, %v6570_v23  ;;  %v4628_v43 = vmul.f32 1.442695, %v4528_v18  ;;  %v4527_v57 = vsub.f32 0.0, %v5701_v41 }
 0x4c8   :  { %v6574_v10 = vpop.eup %6573  ;;  %6593 = vrcp.f32 %v4669_v32  ;;  %v5616_v50 = vpop.f32.mrb[48].mxu0 }
 0x4c9   :  { %v6576_v40 = vpop.eup %6575  ;;  %6595 = vrcp.f32 %v4673_v37  ;;  %v5617_v52 = vpop.f32.mrb[49].mxu0 }
 0x4ca   :  { %v6578_v46 = vpop.eup %6577  ;;  %v5568_v47 = vpack.c.bf16 %v6576_v40, %v6572_v45  ;;  %6597 = vpow2.f32 %v4586_v8  ;;  %v5619_v59 = vpop.f32.mrb[50].mxu0  ;;  %v4526_v8 = vsub.f32 0.0, %v5700_v42  ;;  %v8786_v3 = vadd.f32 %v5617_v52, %v5616_v50 }
 0x4cb   :  { %v6580_v1 = vpop.eup %6579  ;;  %v5569_v20 = vpack.c.bf16 %v6578_v46, %v6574_v10  ;;  %6599 = vpow2.f32 %v4584_v26  ;;  %v5620_v9 = vpop.f32.mrb[51].mxu0  ;;  %v5718_v52 = vadd.f32 %v8773_v28, %v8738_v38 }
 0x4cc   :  { %v6582_v49 = vpop.eup %6581  ;;  %4996 = vst [vmem:[#allocation2] sm:$0xff] %v5568_v47  ;;  %6601 = vpow2.f32 %v4588_v36  ;;  %v8788_v35 = vadd.f32 %v5620_v9, %v5619_v59  ;;  %v4624_v30 = vmul.f32 1.442695, %v4526_v8 }
 0x4cd   :  { %v6584_v60 = vpop.eup %6583  ;;  %4997 = vst [vmem:[#allocation2 + $0x8] sm:$0xff] %v5569_v20  ;;  %6603 = vpow2.f32 %v4596_v34 }
 0x4ce   :  { %v6586_v14 = vpop.eup %6585  ;;  %v5572_v16 = vpack.c.bf16 %v6584_v60, %v6580_v1  ;;  %6605 = vpow2.f32 %v4600_v48  ;;  %v5717_v48 = vadd.f32 %v8768_v19, %v8746_v11  ;;  %v5702_v1 = vadd.f32 %v8771_v27, %v8734_v17 }
 0x4cf   :  { %v6588_v4 = vpop.eup %6587  ;;  %v5573_v6 = vpack.c.bf16 %v6586_v14, %v6582_v49  ;;  %6607 = vpow2.f32 %v4598_v31  ;;  %v5703_v19 = vadd.f32 %v8776_v15, %v8742_v39  ;;  %v4535_v15 = vsub.f32 0.0, %v5718_v52 }
 0x4d0   :  { %v6590_v26 = vpop.eup %6589  ;;  %5001 = vst [vmem:[#allocation2 + $0x1c] sm:$0xff] %v5572_v16  ;;  %6609 = vpow2.f32 %v4602_v55  ;;  %v5622_v33 = vpop.f32.mrb[52].mxu0  ;;  %v4529_v27 = vsub.f32 0.0, %v5717_v48  ;;  %v4533_v28 = vsub.f32 0.0, %v5702_v1 }
 0x4d1   :  { %v6592_v29 = vpop.eup %6591  ;;  %5002 = vst [vmem:[#allocation2 + $0x24] sm:$0xff] %v5573_v6  ;;  %6611 = vpow2.f32 %v4610_v0  ;;  %v5623_v32 = vpop.f32.mrb[53].mxu0  ;;  %v4534_v6 = vsub.f32 0.0, %v5703_v19 }
 0x4d2   :  { %v6594_v5 = vpop.eup %6593  ;;  %v5576_v54 = vpack.c.bf16 %v6592_v29, %v6588_v4  ;;  %6613 = vpow2.f32 %v4614_v7  ;;  %v8792_v22 = vadd.f32 %v5623_v32, %v5622_v33  ;;  %v5625_v45 = vpop.f32.mrb[54].mxu0  ;;  %v5719_v7 = vadd.f32 %v8778_v12, %v8746_v11 }
 0x4d3   :  { %v8790_v53 = vpop.eup %6595  ;;  %v5577_v23 = vpack.c.bf16 %v6594_v5, %v6590_v26  ;;  %6615 = vpow2.f32 %v4612_v25  ;;  %v5626_v13 = vpop.f32.mrb[55].mxu0  ;;  %v4626_v4 = vmul.f32 1.442695, %v4527_v57  ;;  %v4630_v26 = vmul.f32 1.442695, %v4529_v27 }
 0x4d4   :  { %v6598_v36 = vpop.eup %6597  ;;  %5005 = vst [vmem:[#allocation2 + $0x38] sm:$0xff] %v5576_v54  ;;  %6617 = vpow2.f32 %v4616_v24  ;;  %v8794_v21 = vadd.f32 %v5626_v13, %v5625_v45  ;;  %v4536_v24 = vsub.f32 0.0, %v5719_v7  ;;  %v4638_v12 = vmul.f32 1.442695, %v4533_v28 }
 0x4d5   :  { %v6600_v37 = vpop.eup %6599  ;;  %5006 = vst [vmem:[#allocation2 + $0x40] sm:$0xff] %v5577_v23  ;;  %v4675_v44 = vadd.f32 1.0, %v6598_v36  ;;  %6619 = vpow2.f32 %v4624_v30  ;;  %v4642_v54 = vmul.f32 1.442695, %v4535_v15  ;;  %v4640_v32 = vmul.f32 1.442695, %v4534_v6 }
 0x4d6   :  { %v6602_v10 = vpop.eup %6601  ;;  %v4674_v34 = vadd.f32 1.0, %v6600_v37  ;;  %6621 = vpow2.f32 %v4628_v43 }
 0x4d7   :  { %v6604_v62 = vpop.eup %6603  ;;  %6623 = vrcp.f32 %v4675_v44  ;;  %v4676_v40 = vadd.f32 1.0, %v6602_v10  ;;  %v4644_v44 = vmul.f32 1.442695, %v4536_v24  ;;  %v2995_v10 = vsub.s32 6, %v7740_v61 }
 0x4d8   :  { %v6606_v63 = vpop.eup %6605  ;;  %6625 = vrcp.f32 %v4674_v34  ;;  %v4680_v42 = vadd.f32 1.0, %v6604_v62  ;;  %v5628_v20 = vpop.f32.mrb[56].mxu0 }
 0x4d9   :  { %v6608_v46 = vpop.eup %6607  ;;  %6627 = vrcp.f32 %v4676_v40  ;;  %v4682_v47 = vadd.f32 1.0, %v6606_v63  ;;  %v5629_v49 = vpop.f32.mrb[57].mxu0 }
 0x4da   :  { %v6610_v2 = vpop.eup %6609  ;;  %6629 = vrcp.f32 %v4680_v42  ;;  %v4681_v50 = vadd.f32 1.0, %v6608_v46  ;;  %v8806_v59 = vadd.f32 %v5629_v49, %v5628_v20  ;;  %v5631_v60 = vpop.f32.mrb[58].mxu0  ;;  %v8819_v46 = vrot.slane %v8730_v56, %v2995_v10 }
 0x4db   :  { %v6612_v31 = vpop.eup %6611  ;;  %6631 = vrcp.f32 %v4682_v47  ;;  %v4683_v51 = vadd.f32 1.0, %v6610_v2  ;;  %v5632_v8 = vpop.f32.mrb[59].mxu0 }
 0x4dc   :  { %v6614_v55 = vpop.eup %6613  ;;  %6633 = vrcp.f32 %v4681_v50  ;;  %v4687_v58 = vadd.f32 1.0, %v6612_v31  ;;  %v8810_v14 = vadd.f32 %v5632_v8, %v5631_v60  ;;  %v4389_v31 = vadd.f32 %v8786_v3, %v8819_v46 }
 0x4dd   :  { %v6616_v0 = vpop.eup %6615  ;;  %6635 = vrcp.f32 %v4683_v51  ;;  %v4689_v17 = vadd.f32 1.0, %v6614_v55  ;;  %v4392_v19 = vadd.f32 %v8788_v35, %v8819_v46  ;;  %v4397_v6 = vadd.f32 %v8792_v22, %v8819_v46 }
 0x4de   :  { %v6618_v9 = vpop.eup %6617  ;;  %6637 = vrcp.f32 %v4687_v58  ;;  %v4688_v38 = vadd.f32 1.0, %v6616_v0  ;;  %v4405_v10 = vadd.f32 %v8806_v59, %v8819_v46 }
 0x4df   :  { %v6620_v16 = vpop.eup %6619  ;;  %6639 = vrcp.f32 %v4689_v17  ;;  %v4690_v39 = vadd.f32 1.0, %v6618_v9 }
 0x4e0   :  { %v6622_v18 = vpop.eup %6621  ;;  %6641 = vrcp.f32 %v4688_v38  ;;  %v5634_v29 = vpop.f32.mrb[60].mxu0  ;;  %v4694_v50 = vadd.f32 1.0, %v6620_v16 }
 0x4e1   :  { %v6624_v25 = vpop.eup %6623  ;;  %6643 = vrcp.f32 %v4690_v39  ;;  %v5635_v43 = vpop.f32.mrb[61].mxu0  ;;  %v4696_v20 = vadd.f32 1.0, %v6622_v18 }
 0x4e2   :  { %v6626_v11 = vpop.eup %6625  ;;  %6645 = vpow2.f32 %v4626_v4  ;;  %v8813_v36 = vadd.f32 %v5635_v43, %v5634_v29  ;;  %v5637_v45 = vpop.f32.mrb[62].mxu0 }
 0x4e3   :  { %v6628_v30 = vpop.eup %6627  ;;  %v5580_v5 = vpack.c.bf16 %v6626_v11, %v8790_v53  ;;  %6647 = vpow2.f32 %v4630_v26  ;;  %v5638_v13 = vpop.f32.mrb[63].mxu0  ;;  %v4400_v11 = vadd.f32 %v8794_v21, %v8819_v46 }
 0x4e4   :  { %v6630_v33 = vpop.eup %6629  ;;  %v5581_v23 = vpack.c.bf16 %v6628_v30, %v6624_v25  ;;  %6649 = vpow2.f32 %v4638_v12  ;;  %v8816_v53 = vadd.f32 %v5638_v13, %v5637_v45 }
 0x4e5   :  { %v6632_v37 = vpop.eup %6631  ;;  %5009 = vst [vmem:[#allocation2 + $0x54] sm:$0xff] %v5580_v5  ;;  %6651 = vpow2.f32 %v4642_v54 }
 0x4e6   :  { %v6634_v34 = vpop.eup %6633  ;;  %5010 = vst [vmem:[#allocation2 + $0x5c] sm:$0xff] %v5581_v23  ;;  %6653 = vpow2.f32 %v4640_v32 }
 0x4e7   :  { %v6636_v62 = vpop.eup %6635  ;;  %v5584_v40 = vpack.c.bf16 %v6634_v34, %v6630_v33  ;;  %6655 = vpow2.f32 %v4644_v44 }
 0x4e8   :  { %v6638_v41 = vpop.eup %6637  ;;  %v5585_v63 = vpack.c.bf16 %v6636_v62, %v6632_v37  ;;  %6657 = vrcp.f32 %v4694_v50 }
 0x4e9   :  { %v6640_v42 = vpop.eup %6639  ;;  %5013 = vst [vmem:[#allocation2 + $0x70] sm:$0xff] %v5584_v40  ;;  %6659 = vrcp.f32 %v4696_v20 }
 0x4ea   :  { %v6642_v47 = vpop.eup %6641  ;;  %5014 = vst [vmem:[#allocation2 + $0x78] sm:$0xff] %v5585_v63  ;;  %v4408_v63 = vadd.f32 %v8810_v14, %v8819_v46  ;;  %v4413_v14 = vadd.f32 %v8813_v36, %v8819_v46 }
 0x4eb   :  { %v6644_v48 = vpop.eup %6643  ;;  %v5588_v2 = vpack.c.bf16 %v6642_v47, %v6638_v41 }
 0x4ec   :  { %v5589_v1 = vpack.c.bf16 %v6644_v48, %v6640_v42  ;;  %v6646_v51 = vpop.eup %6645  ;;  %v4453_v57 = vpop.f32.mrb[64].mxu0 }
 0x4ed   :  { %5017 = vst [vmem:[#allocation2 + $0x8c] sm:$0xff] %v5588_v2  ;;  %v6648_v52 = vpop.eup %6647  ;;  %v4695_v49 = vadd.f32 1.0, %v6646_v51  ;;  %v4454_v55 = vadd.f32 %v4453_v57, %v4389_v31  ;;  %v4455_v58 = vpop.f32.mrb[65].mxu0 }
 0x4ee   :  { %5018 = vst [vmem:[#allocation2 + $0x94] sm:$0xff] %v5589_v1  ;;  %v6650_v60 = vpop.eup %6649  ;;  %v4697_v0 = vadd.f32 1.0, %v6648_v52  ;;  %v4456_v17 = vpop.f32.mrb[66].mxu0 }
 0x4ef   :  { %v6652_v27 = vpop.eup %6651  ;;  %6661 = vrcp.f32 %v4695_v49  ;;  %v4701_v7 = vadd.f32 1.0, %v6650_v60  ;;  %v4490_v8 = vsub.f32 0.0, %v4454_v55  ;;  %v4457_v3 = vadd.f32 %v4456_v17, %v4392_v19  ;;  %v4458_v9 = vpop.f32.mrb[67].mxu0 }
 0x4f0   :  { %v6654_v38 = vpop.eup %6653  ;;  %6663 = vrcp.f32 %v4697_v0  ;;  %v4703_v28 = vadd.f32 1.0, %v6652_v27  ;;  %v2987_v19 = vsub.s32 4, %v7740_v61  ;;  %v4416_v27 = vadd.f32 %v8816_v53, %v8819_v46 }
 0x4f1   :  { %v6656_v16 = vpop.eup %6655  ;;  %6665 = vrcp.f32 %v4701_v7  ;;  %v4702_v39 = vadd.f32 1.0, %v6654_v38  ;;  %v4552_v15 = vmul.f32 1.442695, %v4490_v8  ;;  %v4497_v18 = vsub.f32 0.0, %v4457_v3 }
 0x4f2   :  { %6667 = vrcp.f32 %v4703_v28  ;;  %v4704_v35 = vadd.f32 1.0, %v6656_v16  ;;  %v6658_v29 = vpop.eup %6657  ;;  %v2991_v7 = vsub.s32 5, %v7740_v61 }
 0x4f3   :  { %6669 = vrcp.f32 %v4702_v39  ;;  %v4566_v4 = vmul.f32 1.442695, %v4497_v18  ;;  %v6660_v43 = vpop.eup %6659  ;;  %v8840_v39 = vrot.slane %v8730_v56, %v2987_v19 }
 0x4f4   :  { %6671 = vrcp.f32 %v4704_v35  ;;  %v4461_v25 = vpop.f32.mrb[68].mxu0  ;;  %v8843_v35 = vrot.slane %v8730_v56, %v2991_v7 }
 0x4f5   :  { %6673 = vpow2.f32 %v4552_v15  ;;  %v4462_v26 = vadd.f32 %v4461_v25, %v4397_v6  ;;  %v4463_v24 = vpop.f32.mrb[69].mxu0 }
 0x4f6   :  { %6675 = vpow2.f32 %v4566_v4  ;;  %v4464_v12 = vpop.f32.mrb[70].mxu0 }
 0x4f7   :  { %v4504_v30 = vsub.f32 0.0, %v4462_v26  ;;  %v4465_v5 = vadd.f32 %v4464_v12, %v4400_v11  ;;  %v4466_v54 = vpop.f32.mrb[71].mxu0 }
 0x4f9   :  { %v6662_v33 = vpop.eup %6661  ;;  %v4580_v23 = vmul.f32 1.442695, %v4504_v30  ;;  %v4511_v32 = vsub.f32 0.0, %v4465_v5 }
 0x4fa   :  { %v6664_v45 = vpop.eup %6663  ;;  %v5592_v22 = vpack.c.bf16 %v6662_v33, %v6658_v29 }
 0x4fb   :  { %v6666_v37 = vpop.eup %6665  ;;  %v5593_v44 = vpack.c.bf16 %v6664_v45, %v6660_v43  ;;  %6677 = vpow2.f32 %v4580_v23  ;;  %v4594_v13 = vmul.f32 1.442695, %v4511_v32 }
 0x4fc   :  { %v6668_v21 = vpop.eup %6667  ;;  %5021 = vst [vmem:[#allocation2 + $0xa8] sm:$0xff] %v5592_v22  ;;  %v4469_v34 = vpop.f32.mrb[72].mxu0 }
 0x4fd   :  { %v6670_v62 = vpop.eup %6669  ;;  %5022 = vst [vmem:[#allocation2 + $0xb0] sm:$0xff] %v5593_v44  ;;  %6679 = vpow2.f32 %v4594_v13  ;;  %v4470_v40 = vadd.f32 %v4469_v34, %v4405_v10  ;;  %v4471_v41 = vpop.f32.mrb[73].mxu0 }
 0x4fe   :  { %v6672_v42 = vpop.eup %6671  ;;  %v5596_v47 = vpack.c.bf16 %v6670_v62, %v6666_v37  ;;  %v4472_v48 = vpop.f32.mrb[74].mxu0 }
 0x4ff   :  { %v6674_v2 = vpop.eup %6673  ;;  %v5597_v50 = vpack.c.bf16 %v6672_v42, %v6668_v21  ;;  %v4518_v1 = vsub.f32 0.0, %v4470_v40  ;;  %v4473_v20 = vadd.f32 %v4472_v48, %v4408_v63  ;;  %v4474_v31 = vpop.f32.mrb[75].mxu0 }
 0x500   :  { %v6676_v59 = vpop.eup %6675  ;;  %5025 = vst [vmem:[#allocation2 + $0xc4] sm:$0xff] %v5596_v47  ;;  %v4658_v51 = vadd.f32 1.0, %v6674_v2 }
 0x501   :  { %5026 = vst [vmem:[#allocation2 + $0xcc] sm:$0xff] %v5597_v50  ;;  %v4665_v57 = vadd.f32 1.0, %v6676_v59  ;;  %v4608_v52 = vmul.f32 1.442695, %v4518_v1  ;;  %v4525_v49 = vsub.f32 0.0, %v4473_v20 }
 0x502   :  { %6681 = vrcp.f32 %v4658_v51 }
 0x503   :  { %6683 = vrcp.f32 %v4665_v57  ;;  %v4622_v55 = vmul.f32 1.442695, %v4525_v49 }
 0x504   :  { %6685 = vpow2.f32 %v4608_v52  ;;  %v4477_v58 = vpop.f32.mrb[76].mxu0 }
 0x505   :  { %v6678_v60 = vpop.eup %6677  ;;  %6687 = vpow2.f32 %v4622_v55  ;;  %v4478_v0 = vadd.f32 %v4477_v58, %v4413_v14  ;;  %v4479_v17 = vpop.f32.mrb[77].mxu0 }
 0x506   :  { %v4672_v8 = vadd.f32 1.0, %v6678_v60  ;;  %v4480_v3 = vpop.f32.mrb[78].mxu0 }
 0x507   :  { %v6680_v9 = vpop.eup %6679  ;;  %v4532_v38 = vsub.f32 0.0, %v4478_v0  ;;  %v4481_v28 = vadd.f32 %v4480_v3, %v4416_v27  ;;  %v4482_v16 = vpop.f32.mrb[79].mxu0 }
 0x508   :  { %6689 = vrcp.f32 %v4672_v8  ;;  %v4679_v36 = vadd.f32 1.0, %v6680_v9 }
 0x509   :  { %v4636_v15 = vmul.f32 1.442695, %v4532_v38  ;;  %v4539_v18 = vsub.f32 0.0, %v4481_v28 }
 0x50a   :  { %6691 = vrcp.f32 %v4679_v36 }
 0x50b   :  { %6693 = vpow2.f32 %v4636_v15  ;;  %v4650_v53 = vmul.f32 1.442695, %v4539_v18  ;;  %v4315_v61 = vpop.f32.mrb[64].mxu1 }
 0x50c   :  { %v6682_v46 = vpop.eup %6681  ;;  %v5720_v4 = vadd.f32 %v4315_v61, %v8840_v39  ;;  %v4317_v6 = vpop.f32.mrb[65].mxu1 }
 0x50d   :  { %v6684_v25 = vpop.eup %6683  ;;  %v5571_v26 = vpack.c.bf16 %v6682_v46, %v6682_v46  ;;  %6695 = vpow2.f32 %v4650_v53  ;;  %v5721_v24 = vadd.f32 %v4317_v6, %v8843_v35  ;;  %v4319_v11 = vpop.f32.mrb[66].mxu1 }
 0x50e   :  { %v6686_v12 = vpop.eup %6685  ;;  %v5575_v29 = vpack.c.bf16 %v6684_v25, %v6684_v25  ;;  %v4488_v30 = vsub.f32 0.0, %v5720_v4  ;;  %v5722_v56 = vadd.f32 %v4319_v11, %v8840_v39  ;;  %v4321_v5 = vpop.f32.mrb[67].mxu1 }
 0x50f   :  { %v6688_v54 = vpop.eup %6687  ;;  %5000 = vst.msk [vmem:[#allocation2 + $0x18] sm:$0xf] %vm4999_vm3, %v5571_v26  ;;  %v4686_v43 = vadd.f32 1.0, %v6686_v12  ;;  %v4489_v33 = vsub.f32 0.0, %v5721_v24  ;;  %v5723_v23 = vadd.f32 %v4321_v5, %v8843_v35 }
 0x510   :  { %5004 = vst.msk [vmem:[#allocation2 + $0x34] sm:$0xf] %vm4999_vm3, %v5575_v29  ;;  %v4693_v32 = vadd.f32 1.0, %v6688_v54  ;;  %v4548_v45 = vmul.f32 1.442695, %v4488_v30  ;;  %v4495_v22 = vsub.f32 0.0, %v5722_v56 }
 0x511   :  { %6697 = vrcp.f32 %v4686_v43  ;;  %v4550_v37 = vmul.f32 1.442695, %v4489_v33  ;;  %v4496_v44 = vsub.f32 0.0, %v5723_v23 }
 0x512   :  { %v6690_v13 = vpop.eup %6689  ;;  %6699 = vrcp.f32 %v4693_v32  ;;  %v4562_v10 = vmul.f32 1.442695, %v4495_v22 }
 0x513   :  { %v5579_v21 = vpack.c.bf16 %v6690_v13, %v6690_v13  ;;  %6701 = vpow2.f32 %v4548_v45  ;;  %v4564_v34 = vmul.f32 1.442695, %v4496_v44  ;;  %v4325_v62 = vpop.f32.mrb[68].mxu1 }
 0x514   :  { %v6692_v40 = vpop.eup %6691  ;;  %6703 = vpow2.f32 %v4550_v37  ;;  %v5724_v41 = vadd.f32 %v4325_v62, %v8840_v39  ;;  %v4327_v63 = vpop.f32.mrb[69].mxu1 }
 0x515   :  { %v6694_v42 = vpop.eup %6693  ;;  %5008 = vst.msk [vmem:[#allocation2 + $0x50] sm:$0xf] %vm4999_vm3, %v5579_v21  ;;  %v5583_v47 = vpack.c.bf16 %v6692_v40, %v6692_v40  ;;  %6705 = vpow2.f32 %v4562_v10  ;;  %v5725_v48 = vadd.f32 %v4327_v63, %v8843_v35  ;;  %v4329_v2 = vpop.f32.mrb[70].mxu1 }
 0x516   :  { %v4700_v50 = vadd.f32 1.0, %v6694_v42  ;;  %6707 = vpow2.f32 %v4564_v34  ;;  %v4502_v1 = vsub.f32 0.0, %v5724_v41  ;;  %v5726_v20 = vadd.f32 %v4329_v2, %v8840_v39  ;;  %v4331_v31 = vpop.f32.mrb[71].mxu1 }
 0x517   :  { %v6696_v59 = vpop.eup %6695  ;;  %5012 = vst.msk [vmem:[#allocation2 + $0x6c] sm:$0xf] %vm4999_vm3, %v5583_v47  ;;  %v4503_v51 = vsub.f32 0.0, %v5725_v48  ;;  %v5727_v57 = vadd.f32 %v4331_v31, %v8843_v35 }
 0x518   :  { %6709 = vrcp.f32 %v4700_v50  ;;  %v4707_v52 = vadd.f32 1.0, %v6696_v59  ;;  %v4576_v49 = vmul.f32 1.442695, %v4502_v1  ;;  %v4509_v55 = vsub.f32 0.0, %v5726_v20 }
 0x519   :  { %v4578_v14 = vmul.f32 1.442695, %v4503_v51  ;;  %v4510_v58 = vsub.f32 0.0, %v5727_v57 }
 0x51a   :  { %6711 = vrcp.f32 %v4707_v52  ;;  %v4590_v19 = vmul.f32 1.442695, %v4509_v55 }
 0x51b   :  { %v6698_v60 = vpop.eup %6697  ;;  %6713 = vpow2.f32 %v4576_v49  ;;  %v4592_v0 = vmul.f32 1.442695, %v4510_v58  ;;  %v4335_v17 = vpop.f32.mrb[72].mxu1 }
 0x51c   :  { %v6700_v27 = vpop.eup %6699  ;;  %v5587_v7 = vpack.c.bf16 %v6698_v60, %v6698_v60  ;;  %6715 = vpow2.f32 %v4578_v14  ;;  %v5728_v8 = vadd.f32 %v4335_v17, %v8840_v39  ;;  %v4337_v3 = vpop.f32.mrb[73].mxu1 }
 0x51d   :  { %v6702_v9 = vpop.eup %6701  ;;  %v5591_v38 = vpack.c.bf16 %v6700_v27, %v6700_v27  ;;  %6717 = vpow2.f32 %v4590_v19  ;;  %v5729_v28 = vadd.f32 %v4337_v3, %v8843_v35  ;;  %v4339_v16 = vpop.f32.mrb[74].mxu1 }
 0x51e   :  { %v6704_v36 = vpop.eup %6703  ;;  %5016 = vst.msk [vmem:[#allocation2 + $0x88] sm:$0xf] %vm4999_vm3, %v5587_v7  ;;  %v4656_v15 = vadd.f32 1.0, %v6702_v9  ;;  %6719 = vpow2.f32 %v4592_v0  ;;  %v4516_v18 = vsub.f32 0.0, %v5728_v8  ;;  %v5730_v53 = vadd.f32 %v4339_v16, %v8840_v39  ;;  %v4341_v61 = vpop.f32.mrb[75].mxu1 }
 0x51f   :  { %v6706_v46 = vpop.eup %6705  ;;  %5020 = vst.msk [vmem:[#allocation2 + $0xa4] sm:$0xf] %vm4999_vm3, %v5591_v38  ;;  %v4657_v4 = vadd.f32 1.0, %v6704_v36  ;;  %v4517_v6 = vsub.f32 0.0, %v5729_v28  ;;  %v5731_v25 = vadd.f32 %v4341_v61, %v8843_v35 }
 0x520   :  { %v6708_v26 = vpop.eup %6707  ;;  %6721 = vrcp.f32 %v4656_v15  ;;  %v4663_v24 = vadd.f32 1.0, %v6706_v46  ;;  %v4604_v11 = vmul.f32 1.442695, %v4516_v18  ;;  %v4523_v12 = vsub.f32 0.0, %v5730_v53 }
 0x521   :  { %6723 = vrcp.f32 %v4657_v4  ;;  %v4664_v29 = vadd.f32 1.0, %v6708_v26  ;;  %v4606_v30 = vmul.f32 1.442695, %v4517_v6  ;;  %v4524_v56 = vsub.f32 0.0, %v5731_v25 }
 0x522   :  { %v6710_v5 = vpop.eup %6709  ;;  %6725 = vrcp.f32 %v4663_v24  ;;  %v4618_v54 = vmul.f32 1.442695, %v4523_v12 }
 0x523   :  { %v5595_v43 = vpack.c.bf16 %v6710_v5, %v6710_v5  ;;  %6727 = vrcp.f32 %v4664_v29  ;;  %v4620_v33 = vmul.f32 1.442695, %v4524_v56  ;;  %v4345_v23 = vpop.f32.mrb[76].mxu1 }
 0x524   :  { %v6712_v32 = vpop.eup %6711  ;;  %6729 = vpow2.f32 %v4604_v11  ;;  %v5732_v45 = vadd.f32 %v4345_v23, %v8840_v39  ;;  %v4347_v22 = vpop.f32.mrb[77].mxu1 }
 0x525   :  { %v6714_v37 = vpop.eup %6713  ;;  %5024 = vst.msk [vmem:[#allocation2 + $0xc0] sm:$0xf] %vm4999_vm3, %v5595_v43  ;;  %v5599_v44 = vpack.c.bf16 %v6712_v32, %v6712_v32  ;;  %6731 = vpow2.f32 %v4606_v30  ;;  %v5733_v13 = vadd.f32 %v4347_v22, %v8843_v35  ;;  %v4349_v10 = vpop.f32.mrb[78].mxu1 }
 0x526   :  { %v6716_v21 = vpop.eup %6715  ;;  %v4670_v34 = vadd.f32 1.0, %v6714_v37  ;;  %6733 = vpow2.f32 %v4618_v54  ;;  %v4530_v62 = vsub.f32 0.0, %v5732_v45  ;;  %v5734_v40 = vadd.f32 %v4349_v10, %v8840_v39  ;;  %v4351_v41 = vpop.f32.mrb[79].mxu1 }
 0x527   :  { %v6718_v63 = vpop.eup %6717  ;;  %5028 = vst.msk [vmem:[#allocation2 + $0xdc] sm:$0xf] %vm4999_vm3, %v5599_v44  ;;  %v4671_v42 = vadd.f32 1.0, %v6716_v21  ;;  %6735 = vpow2.f32 %v4620_v33  ;;  %v4531_v47 = vsub.f32 0.0, %v5733_v13  ;;  %v5735_v48 = vadd.f32 %v4351_v41, %v8843_v35 }
 0x528   :  { %v6720_v2 = vpop.eup %6719  ;;  %6737 = vrcp.f32 %v4670_v34  ;;  %v4677_v50 = vadd.f32 1.0, %v6718_v63  ;;  %v4632_v1 = vmul.f32 1.442695, %v4530_v62  ;;  %v4537_v20 = vsub.f32 0.0, %v5734_v40 }
 0x529   :  { %6739 = vrcp.f32 %v4671_v42  ;;  %v4678_v31 = vadd.f32 1.0, %v6720_v2  ;;  %v4634_v59 = vmul.f32 1.442695, %v4531_v47  ;;  %v4538_v51 = vsub.f32 0.0, %v5735_v48 }
 0x52a   :  { %v6722_v57 = vpop.eup %6721  ;;  %6741 = vrcp.f32 %v4677_v50  ;;  %v4646_v39 = vmul.f32 1.442695, %v4537_v20 }
 0x52b   :  { %v6724_v52 = vpop.eup %6723  ;;  %6743 = vrcp.f32 %v4678_v31  ;;  %v4648_v49 = vmul.f32 1.442695, %v4538_v51 }
 0x52c   :  { %v6726_v55 = vpop.eup %6725  ;;  %v5570_v14 = vpack.c.bf16 %v6724_v52, %v6722_v57  ;;  %6745 = vpow2.f32 %v4632_v1 }
 0x52d   :  { %v6728_v58 = vpop.eup %6727  ;;  %6747 = vpow2.f32 %v4634_v59 }
 0x52e   :  { %v6730_v35 = vpop.eup %6729  ;;  %4998 = vst [vmem:[#allocation2 + $0x10] sm:$0xff] %v5570_v14  ;;  %v5574_v19 = vpack.c.bf16 %v6728_v58, %v6726_v55  ;;  %6749 = vpow2.f32 %v4646_v39 }
 0x52f   :  { %v6732_v60 = vpop.eup %6731  ;;  %v4684_v0 = vadd.f32 1.0, %v6730_v35  ;;  %6751 = vpow2.f32 %v4648_v49 }
 0x530   :  { %v6734_v17 = vpop.eup %6733  ;;  %5003 = vst [vmem:[#allocation2 + $0x2c] sm:$0xff] %v5574_v19  ;;  %v4685_v27 = vadd.f32 1.0, %v6732_v60 }
 0x531   :  { %v6736_v7 = vpop.eup %6735  ;;  %6753 = vrcp.f32 %v4684_v0  ;;  %v4691_v8 = vadd.f32 1.0, %v6734_v17 }
 0x532   :  { %v6738_v3 = vpop.eup %6737  ;;  %6755 = vrcp.f32 %v4685_v27  ;;  %v4692_v9 = vadd.f32 1.0, %v6736_v7 }
 0x533   :  { %v6740_v38 = vpop.eup %6739  ;;  %6757 = vrcp.f32 %v4691_v8 }
 0x534   :  { %v6742_v28 = vpop.eup %6741  ;;  %v5578_v16 = vpack.c.bf16 %v6740_v38, %v6738_v3  ;;  %6759 = vrcp.f32 %v4692_v9 }
 0x535   :  { %v6744_v36 = vpop.eup %6743 }
 0x536   :  { %v6746_v15 = vpop.eup %6745  ;;  %5007 = vst [vmem:[#allocation2 + $0x48] sm:$0xff] %v5578_v16  ;;  %v5582_v18 = vpack.c.bf16 %v6744_v36, %v6742_v28 }
 0x537   :  { %v6748_v53 = vpop.eup %6747  ;;  %v4698_v61 = vadd.f32 1.0, %v6746_v15 }
 0x538   :  { %v6750_v46 = vpop.eup %6749  ;;  %5011 = vst [vmem:[#allocation2 + $0x64] sm:$0xff] %v5582_v18  ;;  %v4699_v4 = vadd.f32 1.0, %v6748_v53 }
 0x539   :  { %v6752_v6 = vpop.eup %6751  ;;  %6761 = vrcp.f32 %v4698_v61  ;;  %v4705_v25 = vadd.f32 1.0, %v6750_v46 }
 0x53a   :  { %6763 = vrcp.f32 %v4699_v4  ;;  %v4706_v26 = vadd.f32 1.0, %v6752_v6 }
 0x53b   :  { %v6754_v24 = vpop.eup %6753  ;;  %6765 = vrcp.f32 %v4705_v25 }
 0x53c   :  { %v6756_v11 = vpop.eup %6755  ;;  %6767 = vrcp.f32 %v4706_v26 }
 0x53d   :  { %v6758_v12 = vpop.eup %6757  ;;  %v5586_v29 = vpack.c.bf16 %v6756_v11, %v6754_v24 }
 0x53e   :  { %v6760_v30 = vpop.eup %6759 }
 0x53f   :  { %5015 = vst [vmem:[#allocation2 + $0x80] sm:$0xff] %v5586_v29  ;;  %v5590_v56 = vpack.c.bf16 %v6760_v30, %v6758_v12 }
 0x541   :  { %5019 = vst [vmem:[#allocation2 + $0x9c] sm:$0xff] %v5590_v56 }
 0x543   :  { %v6762_v5 = vpop.eup %6761 }
 0x544   :  { %v6764_v54 = vpop.eup %6763 }
 0x545   :  { %v6766_v43 = vpop.eup %6765  ;;  %v5594_v33 = vpack.c.bf16 %v6764_v54, %v6762_v5 }
 0x546   :  { %v6768_v23 = vpop.eup %6767 }
 0x547   :  { %5023 = vst [vmem:[#allocation2 + $0xb8] sm:$0xff] %v5594_v33  ;;  %v5598_v32 = vpack.c.bf16 %v6768_v23, %v6766_v43 }
 0x549   :  { %5027 = vst [vmem:[#allocation2 + $0xd4] sm:$0xff] %v5598_v32 }
 0x54a   :  { %6780 = shalt.err (!%p6777_p4)
}
 0x54b   :  { %s6781_s19 = scalar_lea.hbm %s8891_s10, 3584 }
 0x54c   :  { %p6782_p5 = scmp.ne.s32.totalorder %s8891_s10, %s6781_s19  ;;  %p6785_p6 = scmp.lt.u32.totalorder %s6781_s19, %s8891_s10 }
 0x54e   :  { %p6787_p7 = pnand %p6785_p6, %p6782_p5 }
 0x550   :  { %6790 = shalt.err (!%p6787_p7)
}
 0x551   :  { %s6795_s22 = smov 448   ;;  %s6796_s23 = smov 28  }
 0x552   :  { %5056 = dma.vmem_to_hbm [thread:$0]  %s5051_s16, 3584, %s8891_s10, [#allocation3], %s6795_s22, %s6795_s22, %s6796_s23  }
 0x553   :  { %6791 = dma.done.wait [#allocation3], 3584  }
 0x554   :  { %6792 = vsyncadd [#allocation3], 4294963712 }
 0x555   :  { %5068 = vsyncpa [#allocation3], 1 }

</bundles_post_ra>
